<compile_context>
chip_gen: v6e
topology: v6e:2x2x1
jax: 0.10.0
libtpu: 0.0.40
codegen_flags: <defaults>
</compile_context>

<pallas_src>
import functools

import jax
import jax.numpy as jnp
from jax.experimental import pallas as pl
from jax.experimental.pallas import tpu as pltpu


def _round_up(x, m):
    return (x + m - 1) // m * m


def _pick_stripe_rows(ho, wo, cout_p, max_rows=None, budget_bytes=6 << 20):
    """Largest divisor of ho whose per-stripe state stays under ~budget_bytes."""
    per_row = wo * cout_p * 14          # f32 acc1+acc2 (+halo), bf16 mid, 2x bf16 out block
    cap = max(1, budget_bytes // max(per_row, 1))
    if max_rows is not None:
        cap = max(1, min(cap, int(max_rows)))
    best = 1
    for d in range(1, ho + 1):
        if ho % d == 0 and d <= cap:
            best = d
    return best


# ----------------------------------------------------------------------------
# Fused ResBlk kernel: one (batch element, row stripe) per grid step
# ----------------------------------------------------------------------------
def _resblk_kernel(*refs, stride, tho, wo, has_extra):
    """refs (has_extra=True) : x, w1, b1, w2, b2, we, out, mid
       refs (has_extra=False): x, w1, b1, w2, b2,     out, mid

       x_ref  : (1, s*s, hq+2, wq, cin_p) bf16  phase-decomposed, zero-padded input
                (resident across the stripes of one batch element)
       w1_ref : (9, cin_p, cout_p)        bf16  conv1 weights, BN1 scale folded in
       b1_ref : (1, cout_p)               f32   conv1+BN1 bias
       w2_ref : (9, cout_p, cout_p)       bf16  conv2 weights, BN2 scale folded in
       b2_ref : (1, cout_p)               f32   conv2+BN2 bias (+ folded shortcut-BN bias)
       we_ref : (cin_p, cout_p)           bf16  1x1 projection shortcut (only if has_extra)
       out_ref: (1, tho, wo, cout_p)      bf16  one output row-stripe
       mid_ref: (tho+2, 8+~wo+8, cout_p)  bf16  VMEM scratch; interior starts at column 8
    """
    if has_extra:
        x_ref, w1_ref, b1_ref, w2_ref, b2_ref, we_ref, out_ref, mid_ref = refs
    else:
        x_ref, w1_ref, b1_ref, w2_ref, b2_ref, out_ref, mid_ref = refs
        we_ref = None

    s = stride
    cin_p = x_ref.shape[-1]
    cout_p = out_ref.shape[-1]
    th2 = tho + 2                      # out1 rows this stripe (1-row halo above/below)
    p2 = th2 * wo
    p = tho * wo
    t = pl.program_id(1)
    r0 = t * tho                       # first output row of this stripe

    # ---- conv1 (3x3, stride s) + folded BN1 + ReLU: 9 accumulating MXU matmuls ----
    acc = jnp.zeros((p2, cout_p), jnp.float32)
    x_center = None
    for kh in range(3):
        for kw in range(3):
            ph = (kh % s) * s + (kw % s)      # phase plane
            i0, j0 = kh // s, kw // s         # unit-stride window offsets
            xt = x_ref[0, ph, pl.ds(r0 + i0, th2), j0:j0 + wo, :]
            if kh == 1 and kw == 1:
                x_center = xt                 # reused by the shortcut below
            acc += jnp.dot(xt.reshape(p2, cin_p), w1_ref[kh * 3 + kw],
                           preferred_element_type=jnp.float32)
    out1 = jnp.maximum(acc + b1_ref[...], 0.0)

    # ---- stash out1 into the sublane-aligned interior of the mid scratch ----
    mid_ref[:, 8:8 + wo, :] = out1.reshape(th2, wo, cout_p).astype(mid_ref.dtype)
    # zero only the 1-wide ring columns conv2 reads (left: col 7, right: col 8+wo)
    ring = jnp.zeros((th2, 1, cout_p), mid_ref.dtype)
    mid_ref[:, 7:8, :] = ring
    mid_ref[:, 8 + wo:9 + wo, :] = ring
    # conv2's zero-padding rows exist only at the image top / bottom stripes
    row0 = jnp.zeros((1, wo, cout_p), mid_ref.dtype)

    @pl.when(t == 0)
    def _():
        mid_ref[0:1, 8:8 + wo, :] = row0

    @pl.when(t == pl.num_programs(1) - 1)
    def _():
        mid_ref[th2 - 1:th2, 8:8 + wo, :] = row0

    # ---- shortcut (1x1 conv + folded BN, or identity), reusing conv1's center tap ----
    xs = x_center[1:tho + 1].reshape(p, cin_p)
    if has_extra:
        sc = jnp.dot(xs, we_ref[...], preferred_element_type=jnp.float32)
    else:
        sc = xs.astype(jnp.float32)            # ch_in == ch_out, stride == 1

    # ---- conv2 (3x3, stride 1) + folded BN2, accumulated on top of the shortcut ----
    acc2 = sc + b2_ref[...]
    for kh in range(3):
        for kw in range(3):
            yt = mid_ref[kh:kh + tho, 7 + kw:7 + kw + wo, :]
            acc2 += jnp.dot(yt.reshape(p, cout_p), w2_ref[kh * 3 + kw],
                            preferred_element_type=jnp.float32)

    # Dropout in eval mode == identity.
    out_ref[0] = jnp.maximum(acc2, 0.0).reshape(tho, wo, cout_p).astype(out_ref.dtype)


# ----------------------------------------------------------------------------
# Host-side glue: BN folding, channel padding, stride phase decomposition
# ----------------------------------------------------------------------------
def _fold_conv_bn(w_oihw, b, gamma, beta, mean, var, cin_pad, cout_pad, eps=1e-5):
    """Fold eval-mode BN into conv weights/bias; flatten, zero-pad, cast to bf16."""
    cout, cin, kh, kw = w_oihw.shape
    scale = gamma / jnp.sqrt(var + eps)                      # (cout,)
    wf = w_oihw * scale[:, None, None, None]
    bf = (b - mean) * scale + beta
    wf = jnp.transpose(wf, (2, 3, 1, 0)).reshape(kh * kw, cin, cout)
    wf = jnp.pad(wf, ((0, 0), (0, cin_pad - cin), (0, cout_pad - cout)))
    bf = jnp.pad(bf, (0, cout_pad - cout)).reshape(1, cout_pad)
    return wf.astype(jnp.bfloat16), bf.astype(jnp.float32)


def res_blk_forward(x_nchw, params, stride=1, *, max_rows_per_stripe=None):
    """NCHW in / NCHW out. Eval-mode BatchNorm, Dropout == identity."""
    x = jnp.transpose(x_nchw, (0, 2, 3, 1)).astype(jnp.float32)   # NHWC
    n, h, w, cin = x.shape
    cout = params["conv1_w"].shape[0]
    s = int(stride)
    if h % s or w % s:
        raise ValueError("spatial dims must be divisible by stride")
    ho, wo = h // s, w // s
    has_extra = (cin != cout)
    if not has_extra and s != 1:
        raise ValueError("identity shortcut requires stride == 1 (as in PyTorch)")

    # Lane-dense output channels (multiple of 128); lane-dense input channels when wide.
    cout_p = _round_up(cout, 128)
    if not has_extra:
        cin_p = cout_p
    elif cin >= 32:
        cin_p = _round_up(cin, 128)
    else:
        cin_p = _round_up(cin, 8)

    # Row-stripe size: largest divisor of ho that keeps the per-stripe state small.
    tho = _pick_stripe_rows(ho, wo, cout_p, max_rows_per_stripe)
    n_stripes = ho // tho
    wc = 8 + _round_up(wo + 1, 8)          # mid scratch columns (interior starts at 8)

    # Spatial zero-pad (halo of 1), channel pad, phase-decompose by stride so the kernel
    # only needs unit-stride shifted windows, then add one extra zero row top+bottom so
    # stripe-edge halo rows always read in-bounds.
    hp, wp = h + 2, w + 2
    hq, wq = -(-hp // s), -(-wp // s)
    hq2 = hq + 2
    xp = jnp.pad(x, ((0, 0), (1, 1 + hq * s - hp), (1, 1 + wq * s - wp),
                     (0, cin_p - cin)))
    x_ph = xp.reshape(n, hq, s, wq, s, cin_p).transpose(0, 2, 4, 1, 3, 5)
    x_ph = x_ph.reshape(n, s * s, hq, wq, cin_p)
    x_ph = jnp.pad(x_ph, ((0, 0), (0, 0), (1, 1), (0, 0), (0, 0)))
    x_ph = x_ph.astype(jnp.bfloat16)

    w1, b1 = _fold_conv_bn(params["conv1_w"], params["conv1_b"],
                           params["bn1_gamma"], params["bn1_beta"],
                           params["bn1_mean"], params["bn1_var"], cin_p, cout_p)
    w2, b2 = _fold_conv_bn(params["conv2_w"], params["conv2_b"],
                           params["bn2_gamma"], params["bn2_beta"],
                           params["bn2_mean"], params["bn2_var"], cout_p, cout_p)
    if has_extra:
        we, be = _fold_conv_bn(params["extra_w"], params["extra_b"],
                               params["bne_gamma"], params["bne_beta"],
                               params["bne_mean"], params["bne_var"], cin_p, cout_p)
        we = we.reshape(cin_p, cout_p)
        b2 = b2 + be                        # fold shortcut-BN bias into conv2 bias

    # ---- cost estimate (advisory) ----
    p_out = ho * wo
    flops = 2 * n * p_out * (9 * cin_p * cout_p + 9 * cout_p * cout_p
                             + (cin_p * cout_p if has_extra else 0))
    w_bytes = (w1.size + w2.size + (we.size if has_extra else 0)) * 2 \
        + (b1.size + b2.size) * 4
    bytes_accessed = x_ph.size * 2 + w_bytes + n * p_out * cout_p * 2

    # ---- VMEM footprint estimate -> scoped limit with headroom ----
    x_block_b = s * s * hq2 * wq * cin_p * 2
    out_block_b = tho * wo * cout_p * 2
    mid_b = (tho + 2) * wc * cout_p * 2
    acc_b = ((tho + 2) + tho) * wo * cout_p * 4
    est = 2 * x_block_b + 2 * w_bytes + 2 * out_block_b + mid_b + 3 * acc_b
    vmem_limit = int(min(max(2 * est, 32 << 20), 100 << 20))

    inputs = [x_ph, w1, b1, w2, b2]
    in_specs = [
        pl.BlockSpec((1, s * s, hq2, wq, cin_p), lambda b, t: (b, 0, 0, 0, 0)),
        pl.BlockSpec((9, cin_p, cout_p), lambda b, t: (0, 0, 0)),
        pl.BlockSpec((1, cout_p), lambda b, t: (0, 0)),
        pl.BlockSpec((9, cout_p, cout_p), lambda b, t: (0, 0, 0)),
        pl.BlockSpec((1, cout_p), lambda b, t: (0, 0)),
    ]
    if has_extra:
        inputs.append(we)
        in_specs.append(pl.BlockSpec((cin_p, cout_p), lambda b, t: (0, 0)))

    kernel = functools.partial(_resblk_kernel, stride=s, tho=tho, wo=wo,
                               has_extra=has_extra)
    out = pl.pallas_call(
        kernel,
        out_shape=jax.ShapeDtypeStruct((n, ho, wo, cout_p), jnp.bfloat16),
        grid=(n, n_stripes),
        in_specs=in_specs,
        out_specs=pl.BlockSpec((1, tho, wo, cout_p), lambda b, t: (b, t, 0, 0)),
        scratch_shapes=[pltpu.VMEM((tho + 2, wc, cout_p), jnp.bfloat16)],
        compiler_params=pltpu.CompilerParams(
            dimension_semantics=("parallel", "parallel"),
            vmem_limit_bytes=vmem_limit),
        cost_estimate=pl.CostEstimate(flops=flops, transcendentals=0,
                                      bytes_accessed=bytes_accessed),
    )(*inputs)

    out = out[..., :cout].astype(jnp.float32)
    return jnp.transpose(out, (0, 3, 1, 2))   # NCHW


# ----------------------------------------------------------------------------
# Pure-JAX reference (mirrors the PyTorch forward, eval-mode BN)
# ----------------------------------------------------------------------------
def res_blk_reference(x, params, stride=1, eps=1e-5):
    def conv(x, w, b, s, pad):
        y = jax.lax.conv_general_dilated(
            x, w, (s, s), [(pad, pad), (pad, pad)],
            dimension_numbers=("NCHW", "OIHW", "NCHW"))
        return y + b[None, :, None, None]

    def bn(x, g, b, m, v):
        return ((x - m[None, :, None, None])
                / jnp.sqrt(v[None, :, None, None] + eps)
                ) * g[None, :, None, None] + b[None, :, None, None]

    out = jax.nn.relu(bn(conv(x, params["conv1_w"], params["conv1_b"], stride, 1),
                         params["bn1_gamma"], params["bn1_beta"],
                         params["bn1_mean"], params["bn1_var"]))
    out = bn(conv(out, params["conv2_w"], params["conv2_b"], 1, 1),
             params["bn2_gamma"], params["bn2_beta"],
             params["bn2_mean"], params["bn2_var"])
    cout, cin = params["conv1_w"].shape[0], params["conv1_w"].shape[1]
    if cin != cout:
        sc = bn(conv(x, params["extra_w"], params["extra_b"], stride, 0),
                params["bne_gamma"], params["bne_beta"],
                params["bne_mean"], params["bne_var"])
    else:
        sc = x
    return jax.nn.relu(out + sc)


def init_params(key, ch_in, ch_out):
    ks = jax.random.split(key, 18)

    def nrm(k, shape, s=0.1):
        return s * jax.random.normal(k, shape, jnp.float32)

    return {
        "conv1_w": nrm(ks[0], (ch_out, ch_in, 3, 3)),
        "conv1_b": nrm(ks[1], (ch_out,)),
        "bn1_gamma": 1.0 + nrm(ks[2], (ch_out,)),
        "bn1_beta": nrm(ks[3], (ch_out,)),
        "bn1_mean": nrm(ks[4], (ch_out,)),
        "bn1_var": 1.0 + jnp.abs(nrm(ks[5], (ch_out,))),
        "conv2_w": nrm(ks[6], (ch_out, ch_out, 3, 3)),
        "conv2_b": nrm(ks[7], (ch_out,)),
        "bn2_gamma": 1.0 + nrm(ks[8], (ch_out,)),
        "bn2_beta": nrm(ks[9], (ch_out,)),
        "bn2_mean": nrm(ks[10], (ch_out,)),
        "bn2_var": 1.0 + jnp.abs(nrm(ks[11], (ch_out,))),
        "extra_w": nrm(ks[12], (ch_out, ch_in, 1, 1)),
        "extra_b": nrm(ks[13], (ch_out,)),
        "bne_gamma": 1.0 + nrm(ks[14], (ch_out,)),
        "bne_beta": nrm(ks[15], (ch_out,)),
        "bne_mean": nrm(ks[16], (ch_out,)),
        "bne_var": 1.0 + jnp.abs(nrm(ks[17], (ch_out,))),
    }


if __name__ == "__main__":
    key = jax.random.PRNGKey(0)
    batch, spatial = 2, 16

    # (ch_in, ch_out, stride, max_rows_per_stripe) — exercises the projection and
    # identity shortcut paths, stride 1/2, and single- vs multi-stripe tiling.
    configs = [
        (4, 8, 2, None),   # projection shortcut + downsample, single stripe
        (4, 8, 2, 4),      # same, split into 2 row-stripes (halo path)
        (8, 8, 1, 4),      # identity shortcut, 4 row-stripes
    ]

    for idx, (ch_in, ch_out, stride, max_rows) in enumerate(configs):
        k_x, k_p, key = jax.random.split(key, 3)
        x = jax.random.normal(k_x, (batch, ch_in, spatial, spatial), jnp.float32)
        params = init_params(k_p, ch_in, ch_out)

        fwd = jax.jit(functools.partial(res_blk_forward, stride=stride,
                                        max_rows_per_stripe=max_rows))
        out = jax.block_until_ready(fwd(x, params))

        ref = res_blk_reference(x, params, stride=stride)
        assert out.shape == ref.shape == (batch, ch_out, spatial // stride,
                                          spatial // stride), f"shape (config {idx})"
        # bf16 MXU operands -> compare against f32 reference with bf16-appropriate tolerance
        assert jnp.allclose(out, ref, atol=5e-2, rtol=5e-2), f"mismatch (config {idx})"

    print("KERNEL_OK")
</pallas_src>

<mosaic_0001>
module attributes {stable_mosaic.version = 11 : i64} {
  func.func @_resblk_kernel(%arg0: i32, %arg1: i32, %arg2: memref<1x4x11x9x8xbf16, #tpu.memory_space<vmem>>, %arg3: memref<9x8x128xbf16, #tpu.memory_space<vmem>>, %arg4: memref<1x128xf32, #tpu.memory_space<vmem>>, %arg5: memref<9x128x128xbf16, #tpu.memory_space<vmem>>, %arg6: memref<1x128xf32, #tpu.memory_space<vmem>>, %arg7: memref<8x128xbf16, #tpu.memory_space<vmem>>, %arg8: memref<1x8x8x128xbf16, #tpu.memory_space<vmem>>, %arg9: memref<10x24x128xbf16, #tpu.memory_space<vmem>>) attributes {dimension_semantics = [#tpu.dimension_semantics<parallel>, #tpu.dimension_semantics<parallel>], iteration_bounds = array<i64: 2, 1>, scalar_prefetch = 0 : i64, scratch_operands = 1 : i64, tpu.core_type = #tpu.core_type<tc>, window_params = [{transform_indices = @transform_0, window_bounds = array<i64: 1, 4, 11, 9, 8>}, {pipeline_mode = #tpu.pipeline_mode<synchronous>, transform_indices = @transform_1, window_bounds = array<i64: 9, 8, 128>}, {pipeline_mode = #tpu.pipeline_mode<synchronous>, transform_indices = @transform_2, window_bounds = array<i64: 1, 128>}, {pipeline_mode = #tpu.pipeline_mode<synchronous>, transform_indices = @transform_3, window_bounds = array<i64: 9, 128, 128>}, {pipeline_mode = #tpu.pipeline_mode<synchronous>, transform_indices = @transform_4, window_bounds = array<i64: 1, 128>}, {pipeline_mode = #tpu.pipeline_mode<synchronous>, transform_indices = @transform_5, window_bounds = array<i64: 8, 128>}, {transform_indices = @transform_6, window_bounds = array<i64: 1, 8, 8, 128>}]} {
    %c8_i32 = arith.constant 8 : i32
    %0 = arith.muli %arg1, %c8_i32 : i32
    %cst = arith.constant 0.000000e+00 : f32
    %1 = vector.broadcast %cst : f32 to vector<80x128xf32>
    %c0_i32 = arith.constant 0 : i32
    %2 = arith.addi %0, %c0_i32 : i32
    %c0 = arith.constant 0 : index
    %c0_0 = arith.constant 0 : index
    %3 = arith.index_cast %2 : i32 to index
    %c0_1 = arith.constant 0 : index
    %c0_2 = arith.constant 0 : index
    %4 = vector.load %arg2[%c0, %c0_0, %3, %c0_1, %c0_2] : memref<1x4x11x9x8xbf16, #tpu.memory_space<vmem>>, vector<1x1x10x8x8xbf16>
    %5 = vector.shape_cast %4 : vector<1x1x10x8x8xbf16> to vector<10x8x8xbf16>
    %6 = vector.shape_cast %5 : vector<10x8x8xbf16> to vector<80x8xbf16>
    %c0_3 = arith.constant 0 : index
    %c0_4 = arith.constant 0 : index
    %c0_5 = arith.constant 0 : index
    %7 = vector.load %arg3[%c0_3, %c0_4, %c0_5] : memref<9x8x128xbf16, #tpu.memory_space<vmem>>, vector<1x8x128xbf16>
    %8 = vector.shape_cast %7 : vector<1x8x128xbf16> to vector<8x128xbf16>
    %cst_6 = arith.constant dense<0.000000e+00> : vector<80x128xf32>
    %9 = tpu.matmul %6, %8, %cst_6 {dimension_numbers = #tpu.dot_dimension_numbers<[1], [0], [0], [1], [0, 0, 1, 1], [], []>} : vector<80x8xbf16>, vector<8x128xbf16>, vector<80x128xf32> -> vector<80x128xf32>
    %10 = arith.addf %1, %9 : vector<80x128xf32>
    %c0_i32_7 = arith.constant 0 : i32
    %11 = arith.addi %0, %c0_i32_7 : i32
    %c0_8 = arith.constant 0 : index
    %c1 = arith.constant 1 : index
    %12 = arith.index_cast %11 : i32 to index
    %c0_9 = arith.constant 0 : index
    %c0_10 = arith.constant 0 : index
    %13 = vector.load %arg2[%c0_8, %c1, %12, %c0_9, %c0_10] : memref<1x4x11x9x8xbf16, #tpu.memory_space<vmem>>, vector<1x1x10x8x8xbf16>
    %14 = vector.shape_cast %13 : vector<1x1x10x8x8xbf16> to vector<10x8x8xbf16>
    %15 = vector.shape_cast %14 : vector<10x8x8xbf16> to vector<80x8xbf16>
    %c1_11 = arith.constant 1 : index
    %c0_12 = arith.constant 0 : index
    %c0_13 = arith.constant 0 : index
    %16 = vector.load %arg3[%c1_11, %c0_12, %c0_13] : memref<9x8x128xbf16, #tpu.memory_space<vmem>>, vector<1x8x128xbf16>
    %17 = vector.shape_cast %16 : vector<1x8x128xbf16> to vector<8x128xbf16>
    %cst_14 = arith.constant dense<0.000000e+00> : vector<80x128xf32>
    %18 = tpu.matmul %15, %17, %cst_14 {dimension_numbers = #tpu.dot_dimension_numbers<[1], [0], [0], [1], [0, 0, 1, 1], [], []>} : vector<80x8xbf16>, vector<8x128xbf16>, vector<80x128xf32> -> vector<80x128xf32>
    %19 = arith.addf %10, %18 : vector<80x128xf32>
    %c0_i32_15 = arith.constant 0 : i32
    %20 = arith.addi %0, %c0_i32_15 : i32
    %c0_16 = arith.constant 0 : index
    %c0_17 = arith.constant 0 : index
    %21 = arith.index_cast %20 : i32 to index
    %c1_18 = arith.constant 1 : index
    %c0_19 = arith.constant 0 : index
    %22 = vector.load %arg2[%c0_16, %c0_17, %21, %c1_18, %c0_19] : memref<1x4x11x9x8xbf16, #tpu.memory_space<vmem>>, vector<1x1x10x8x8xbf16>
    %23 = vector.shape_cast %22 : vector<1x1x10x8x8xbf16> to vector<10x8x8xbf16>
    %24 = vector.shape_cast %23 : vector<10x8x8xbf16> to vector<80x8xbf16>
    %c2 = arith.constant 2 : index
    %c0_20 = arith.constant 0 : index
    %c0_21 = arith.constant 0 : index
    %25 = vector.load %arg3[%c2, %c0_20, %c0_21] : memref<9x8x128xbf16, #tpu.memory_space<vmem>>, vector<1x8x128xbf16>
    %26 = vector.shape_cast %25 : vector<1x8x128xbf16> to vector<8x128xbf16>
    %cst_22 = arith.constant dense<0.000000e+00> : vector<80x128xf32>
    %27 = tpu.matmul %24, %26, %cst_22 {dimension_numbers = #tpu.dot_dimension_numbers<[1], [0], [0], [1], [0, 0, 1, 1], [], []>} : vector<80x8xbf16>, vector<8x128xbf16>, vector<80x128xf32> -> vector<80x128xf32>
    %28 = arith.addf %19, %27 : vector<80x128xf32>
    %c0_i32_23 = arith.constant 0 : i32
    %29 = arith.addi %0, %c0_i32_23 : i32
    %c0_24 = arith.constant 0 : index
    %c2_25 = arith.constant 2 : index
    %30 = arith.index_cast %29 : i32 to index
    %c0_26 = arith.constant 0 : index
    %c0_27 = arith.constant 0 : index
    %31 = vector.load %arg2[%c0_24, %c2_25, %30, %c0_26, %c0_27] : memref<1x4x11x9x8xbf16, #tpu.memory_space<vmem>>, vector<1x1x10x8x8xbf16>
    %32 = vector.shape_cast %31 : vector<1x1x10x8x8xbf16> to vector<10x8x8xbf16>
    %33 = vector.shape_cast %32 : vector<10x8x8xbf16> to vector<80x8xbf16>
    %c3 = arith.constant 3 : index
    %c0_28 = arith.constant 0 : index
    %c0_29 = arith.constant 0 : index
    %34 = vector.load %arg3[%c3, %c0_28, %c0_29] : memref<9x8x128xbf16, #tpu.memory_space<vmem>>, vector<1x8x128xbf16>
    %35 = vector.shape_cast %34 : vector<1x8x128xbf16> to vector<8x128xbf16>
    %cst_30 = arith.constant dense<0.000000e+00> : vector<80x128xf32>
    %36 = tpu.matmul %33, %35, %cst_30 {dimension_numbers = #tpu.dot_dimension_numbers<[1], [0], [0], [1], [0, 0, 1, 1], [], []>} : vector<80x8xbf16>, vector<8x128xbf16>, vector<80x128xf32> -> vector<80x128xf32>
    %37 = arith.addf %28, %36 : vector<80x128xf32>
    %c0_i32_31 = arith.constant 0 : i32
    %38 = arith.addi %0, %c0_i32_31 : i32
    %c0_32 = arith.constant 0 : index
    %c3_33 = arith.constant 3 : index
    %39 = arith.index_cast %38 : i32 to index
    %c0_34 = arith.constant 0 : index
    %c0_35 = arith.constant 0 : index
    %40 = vector.load %arg2[%c0_32, %c3_33, %39, %c0_34, %c0_35] : memref<1x4x11x9x8xbf16, #tpu.memory_space<vmem>>, vector<1x1x10x8x8xbf16>
    %41 = vector.shape_cast %40 : vector<1x1x10x8x8xbf16> to vector<10x8x8xbf16>
    %42 = vector.shape_cast %41 : vector<10x8x8xbf16> to vector<80x8xbf16>
    %c4 = arith.constant 4 : index
    %c0_36 = arith.constant 0 : index
    %c0_37 = arith.constant 0 : index
    %43 = vector.load %arg3[%c4, %c0_36, %c0_37] : memref<9x8x128xbf16, #tpu.memory_space<vmem>>, vector<1x8x128xbf16>
    %44 = vector.shape_cast %43 : vector<1x8x128xbf16> to vector<8x128xbf16>
    %cst_38 = arith.constant dense<0.000000e+00> : vector<80x128xf32>
    %45 = tpu.matmul %42, %44, %cst_38 {dimension_numbers = #tpu.dot_dimension_numbers<[1], [0], [0], [1], [0, 0, 1, 1], [], []>} : vector<80x8xbf16>, vector<8x128xbf16>, vector<80x128xf32> -> vector<80x128xf32>
    %46 = arith.addf %37, %45 : vector<80x128xf32>
    %c0_i32_39 = arith.constant 0 : i32
    %47 = arith.addi %0, %c0_i32_39 : i32
    %c0_40 = arith.constant 0 : index
    %c2_41 = arith.constant 2 : index
    %48 = arith.index_cast %47 : i32 to index
    %c1_42 = arith.constant 1 : index
    %c0_43 = arith.constant 0 : index
    %49 = vector.load %arg2[%c0_40, %c2_41, %48, %c1_42, %c0_43] : memref<1x4x11x9x8xbf16, #tpu.memory_space<vmem>>, vector<1x1x10x8x8xbf16>
    %50 = vector.shape_cast %49 : vector<1x1x10x8x8xbf16> to vector<10x8x8xbf16>
    %51 = vector.shape_cast %50 : vector<10x8x8xbf16> to vector<80x8xbf16>
    %c5 = arith.constant 5 : index
    %c0_44 = arith.constant 0 : index
    %c0_45 = arith.constant 0 : index
    %52 = vector.load %arg3[%c5, %c0_44, %c0_45] : memref<9x8x128xbf16, #tpu.memory_space<vmem>>, vector<1x8x128xbf16>
    %53 = vector.shape_cast %52 : vector<1x8x128xbf16> to vector<8x128xbf16>
    %cst_46 = arith.constant dense<0.000000e+00> : vector<80x128xf32>
    %54 = tpu.matmul %51, %53, %cst_46 {dimension_numbers = #tpu.dot_dimension_numbers<[1], [0], [0], [1], [0, 0, 1, 1], [], []>} : vector<80x8xbf16>, vector<8x128xbf16>, vector<80x128xf32> -> vector<80x128xf32>
    %55 = arith.addf %46, %54 : vector<80x128xf32>
    %c1_i32 = arith.constant 1 : i32
    %56 = arith.addi %0, %c1_i32 : i32
    %c0_47 = arith.constant 0 : index
    %c0_48 = arith.constant 0 : index
    %57 = arith.index_cast %56 : i32 to index
    %c0_49 = arith.constant 0 : index
    %c0_50 = arith.constant 0 : index
    %58 = vector.load %arg2[%c0_47, %c0_48, %57, %c0_49, %c0_50] : memref<1x4x11x9x8xbf16, #tpu.memory_space<vmem>>, vector<1x1x10x8x8xbf16>
    %59 = vector.shape_cast %58 : vector<1x1x10x8x8xbf16> to vector<10x8x8xbf16>
    %60 = vector.shape_cast %59 : vector<10x8x8xbf16> to vector<80x8xbf16>
    %c6 = arith.constant 6 : index
    %c0_51 = arith.constant 0 : index
    %c0_52 = arith.constant 0 : index
    %61 = vector.load %arg3[%c6, %c0_51, %c0_52] : memref<9x8x128xbf16, #tpu.memory_space<vmem>>, vector<1x8x128xbf16>
    %62 = vector.shape_cast %61 : vector<1x8x128xbf16> to vector<8x128xbf16>
    %cst_53 = arith.constant dense<0.000000e+00> : vector<80x128xf32>
    %63 = tpu.matmul %60, %62, %cst_53 {dimension_numbers = #tpu.dot_dimension_numbers<[1], [0], [0], [1], [0, 0, 1, 1], [], []>} : vector<80x8xbf16>, vector<8x128xbf16>, vector<80x128xf32> -> vector<80x128xf32>
    %64 = arith.addf %55, %63 : vector<80x128xf32>
    %c1_i32_54 = arith.constant 1 : i32
    %65 = arith.addi %0, %c1_i32_54 : i32
    %c0_55 = arith.constant 0 : index
    %c1_56 = arith.constant 1 : index
    %66 = arith.index_cast %65 : i32 to index
    %c0_57 = arith.constant 0 : index
    %c0_58 = arith.constant 0 : index
    %67 = vector.load %arg2[%c0_55, %c1_56, %66, %c0_57, %c0_58] : memref<1x4x11x9x8xbf16, #tpu.memory_space<vmem>>, vector<1x1x10x8x8xbf16>
    %68 = vector.shape_cast %67 : vector<1x1x10x8x8xbf16> to vector<10x8x8xbf16>
    %69 = vector.shape_cast %68 : vector<10x8x8xbf16> to vector<80x8xbf16>
    %c7 = arith.constant 7 : index
    %c0_59 = arith.constant 0 : index
    %c0_60 = arith.constant 0 : index
    %70 = vector.load %arg3[%c7, %c0_59, %c0_60] : memref<9x8x128xbf16, #tpu.memory_space<vmem>>, vector<1x8x128xbf16>
    %71 = vector.shape_cast %70 : vector<1x8x128xbf16> to vector<8x128xbf16>
    %cst_61 = arith.constant dense<0.000000e+00> : vector<80x128xf32>
    %72 = tpu.matmul %69, %71, %cst_61 {dimension_numbers = #tpu.dot_dimension_numbers<[1], [0], [0], [1], [0, 0, 1, 1], [], []>} : vector<80x8xbf16>, vector<8x128xbf16>, vector<80x128xf32> -> vector<80x128xf32>
    %73 = arith.addf %64, %72 : vector<80x128xf32>
    %c1_i32_62 = arith.constant 1 : i32
    %74 = arith.addi %0, %c1_i32_62 : i32
    %c0_63 = arith.constant 0 : index
    %c0_64 = arith.constant 0 : index
    %75 = arith.index_cast %74 : i32 to index
    %c1_65 = arith.constant 1 : index
    %c0_66 = arith.constant 0 : index
    %76 = vector.load %arg2[%c0_63, %c0_64, %75, %c1_65, %c0_66] : memref<1x4x11x9x8xbf16, #tpu.memory_space<vmem>>, vector<1x1x10x8x8xbf16>
    %77 = vector.shape_cast %76 : vector<1x1x10x8x8xbf16> to vector<10x8x8xbf16>
    %78 = vector.shape_cast %77 : vector<10x8x8xbf16> to vector<80x8xbf16>
    %c8 = arith.constant 8 : index
    %c0_67 = arith.constant 0 : index
    %c0_68 = arith.constant 0 : index
    %79 = vector.load %arg3[%c8, %c0_67, %c0_68] : memref<9x8x128xbf16, #tpu.memory_space<vmem>>, vector<1x8x128xbf16>
    %80 = vector.shape_cast %79 : vector<1x8x128xbf16> to vector<8x128xbf16>
    %cst_69 = arith.constant dense<0.000000e+00> : vector<80x128xf32>
    %81 = tpu.matmul %78, %80, %cst_69 {dimension_numbers = #tpu.dot_dimension_numbers<[1], [0], [0], [1], [0, 0, 1, 1], [], []>} : vector<80x8xbf16>, vector<8x128xbf16>, vector<80x128xf32> -> vector<80x128xf32>
    %82 = arith.addf %73, %81 : vector<80x128xf32>
    %c0_70 = arith.constant 0 : index
    %c0_71 = arith.constant 0 : index
    %83 = vector.load %arg4[%c0_70, %c0_71] : memref<1x128xf32, #tpu.memory_space<vmem>>, vector<1x128xf32>
    %84 = vector.broadcast %83 : vector<1x128xf32> to vector<80x128xf32>
    %85 = arith.addf %82, %84 : vector<80x128xf32>
    %cst_72 = arith.constant 0.000000e+00 : f32
    %86 = vector.broadcast %cst_72 : f32 to vector<80x128xf32>
    %87 = arith.maximumf %85, %86 : vector<80x128xf32>
    %88 = vector.shape_cast %87 : vector<80x128xf32> to vector<10x8x128xf32>
    %89 = arith.truncf %88 : vector<10x8x128xf32> to vector<10x8x128xbf16>
    %c0_73 = arith.constant 0 : index
    %c8_74 = arith.constant 8 : index
    %c0_75 = arith.constant 0 : index
    %90 = vector.load %arg9[%c0_73, %c8_74, %c0_75] : memref<10x24x128xbf16, #tpu.memory_space<vmem>>, vector<10x8x128xbf16>
    tpu.vector_store %arg9[%c0_73, %c8_74, %c0_75], %89 {strides = array<i32>} : memref<10x24x128xbf16, #tpu.memory_space<vmem>>, vector<10x8x128xbf16>,
    %cst_76 = arith.constant 0.000000e+00 : bf16
    %91 = vector.broadcast %cst_76 : bf16 to vector<10x1x128xbf16>
    %c0_77 = arith.constant 0 : index
    %c7_78 = arith.constant 7 : index
    %c0_79 = arith.constant 0 : index
    %92 = vector.load %arg9[%c0_77, %c7_78, %c0_79] : memref<10x24x128xbf16, #tpu.memory_space<vmem>>, vector<10x1x128xbf16>
    tpu.vector_store %arg9[%c0_77, %c7_78, %c0_79], %91 {strides = array<i32>} : memref<10x24x128xbf16, #tpu.memory_space<vmem>>, vector<10x1x128xbf16>,
    %c0_80 = arith.constant 0 : index
    %c16 = arith.constant 16 : index
    %c0_81 = arith.constant 0 : index
    %93 = vector.load %arg9[%c0_80, %c16, %c0_81] : memref<10x24x128xbf16, #tpu.memory_space<vmem>>, vector<10x1x128xbf16>
    tpu.vector_store %arg9[%c0_80, %c16, %c0_81], %91 {strides = array<i32>} : memref<10x24x128xbf16, #tpu.memory_space<vmem>>, vector<10x1x128xbf16>,
    %cst_82 = arith.constant 0.000000e+00 : bf16
    %94 = vector.broadcast %cst_82 : bf16 to vector<1x8x128xbf16>
    %c0_i32_83 = arith.constant 0 : i32
    %95 = arith.cmpi eq, %arg1, %c0_i32_83 : i32
    %96 = arith.extui %95 : i1 to i32
    %c0_i32_84 = arith.constant 0 : i32
    %97 = arith.cmpi ne, %96, %c0_i32_84 : i32
    scf.if %97 {
      %c0_159 = arith.constant 0 : index
      %c8_160 = arith.constant 8 : index
      %c0_161 = arith.constant 0 : index
      %169 = vector.load %arg9[%c0_159, %c8_160, %c0_161] : memref<10x24x128xbf16, #tpu.memory_space<vmem>>, vector<1x8x128xbf16>
      tpu.vector_store %arg9[%c0_159, %c8_160, %c0_161], %94 {strides = array<i32>} : memref<10x24x128xbf16, #tpu.memory_space<vmem>>, vector<1x8x128xbf16>,
    } else {
    }
    %c0_i32_85 = arith.constant 0 : i32
    %98 = arith.cmpi eq, %arg1, %c0_i32_85 : i32
    %99 = arith.extui %98 : i1 to i32
    %c0_i32_86 = arith.constant 0 : i32
    %100 = arith.cmpi ne, %99, %c0_i32_86 : i32
    scf.if %100 {
      %c9_159 = arith.constant 9 : index
      %c8_160 = arith.constant 8 : index
      %c0_161 = arith.constant 0 : index
      %169 = vector.load %arg9[%c9_159, %c8_160, %c0_161] : memref<10x24x128xbf16, #tpu.memory_space<vmem>>, vector<1x8x128xbf16>
      tpu.vector_store %arg9[%c9_159, %c8_160, %c0_161], %94 {strides = array<i32>} : memref<10x24x128xbf16, #tpu.memory_space<vmem>>, vector<1x8x128xbf16>,
    } else {
    }
    %101 = vector.extract_strided_slice %41 {offsets = [1, 0, 0], sizes = [8, 8, 8], strides = [1, 1, 1]} : vector<10x8x8xbf16> to vector<8x8x8xbf16>
    %102 = vector.shape_cast %101 : vector<8x8x8xbf16> to vector<64x8xbf16>
    %c0_87 = arith.constant 0 : index
    %c0_88 = arith.constant 0 : index
    %103 = vector.load %arg7[%c0_87, %c0_88] : memref<8x128xbf16, #tpu.memory_space<vmem>>, vector<8x128xbf16>
    %cst_89 = arith.constant dense<0.000000e+00> : vector<64x128xf32>
    %104 = tpu.matmul %102, %103, %cst_89 {dimension_numbers = #tpu.dot_dimension_numbers<[1], [0], [0], [1], [0, 0, 1, 1], [], []>} : vector<64x8xbf16>, vector<8x128xbf16>, vector<64x128xf32> -> vector<64x128xf32>
    %c0_90 = arith.constant 0 : index
    %c0_91 = arith.constant 0 : index
    %105 = vector.load %arg6[%c0_90, %c0_91] : memref<1x128xf32, #tpu.memory_space<vmem>>, vector<1x128xf32>
    %106 = vector.broadcast %105 : vector<1x128xf32> to vector<64x128xf32>
    %107 = arith.addf %104, %106 : vector<64x128xf32>
    %c0_92 = arith.constant 0 : index
    %c7_93 = arith.constant 7 : index
    %c0_94 = arith.constant 0 : index
    %108 = vector.load %arg9[%c0_92, %c7_93, %c0_94] : memref<10x24x128xbf16, #tpu.memory_space<vmem>>, vector<8x8x128xbf16>
    %109 = vector.shape_cast %108 : vector<8x8x128xbf16> to vector<64x128xbf16>
    %c0_95 = arith.constant 0 : index
    %c0_96 = arith.constant 0 : index
    %c0_97 = arith.constant 0 : index
    %110 = vector.load %arg5[%c0_95, %c0_96, %c0_97] : memref<9x128x128xbf16, #tpu.memory_space<vmem>>, vector<1x128x128xbf16>
    %111 = vector.shape_cast %110 : vector<1x128x128xbf16> to vector<128x128xbf16>
    %cst_98 = arith.constant dense<0.000000e+00> : vector<64x128xf32>
    %112 = tpu.matmul %109, %111, %cst_98 {dimension_numbers = #tpu.dot_dimension_numbers<[1], [0], [0], [1], [0, 0, 1, 1], [], []>} : vector<64x128xbf16>, vector<128x128xbf16>, vector<64x128xf32> -> vector<64x128xf32>
    %113 = arith.addf %107, %112 : vector<64x128xf32>
    %c0_99 = arith.constant 0 : index
    %c8_100 = arith.constant 8 : index
    %c0_101 = arith.constant 0 : index
    %114 = vector.load %arg9[%c0_99, %c8_100, %c0_101] : memref<10x24x128xbf16, #tpu.memory_space<vmem>>, vector<8x8x128xbf16>
    %115 = vector.shape_cast %114 : vector<8x8x128xbf16> to vector<64x128xbf16>
    %c1_102 = arith.constant 1 : index
    %c0_103 = arith.constant 0 : index
    %c0_104 = arith.constant 0 : index
    %116 = vector.load %arg5[%c1_102, %c0_103, %c0_104] : memref<9x128x128xbf16, #tpu.memory_space<vmem>>, vector<1x128x128xbf16>
    %117 = vector.shape_cast %116 : vector<1x128x128xbf16> to vector<128x128xbf16>
    %cst_105 = arith.constant dense<0.000000e+00> : vector<64x128xf32>
    %118 = tpu.matmul %115, %117, %cst_105 {dimension_numbers = #tpu.dot_dimension_numbers<[1], [0], [0], [1], [0, 0, 1, 1], [], []>} : vector<64x128xbf16>, vector<128x128xbf16>, vector<64x128xf32> -> vector<64x128xf32>
    %119 = arith.addf %113, %118 : vector<64x128xf32>
    %c0_106 = arith.constant 0 : index
    %c9 = arith.constant 9 : index
    %c0_107 = arith.constant 0 : index
    %120 = vector.load %arg9[%c0_106, %c9, %c0_107] : memref<10x24x128xbf16, #tpu.memory_space<vmem>>, vector<8x8x128xbf16>
    %121 = vector.shape_cast %120 : vector<8x8x128xbf16> to vector<64x128xbf16>
    %c2_108 = arith.constant 2 : index
    %c0_109 = arith.constant 0 : index
    %c0_110 = arith.constant 0 : index
    %122 = vector.load %arg5[%c2_108, %c0_109, %c0_110] : memref<9x128x128xbf16, #tpu.memory_space<vmem>>, vector<1x128x128xbf16>
    %123 = vector.shape_cast %122 : vector<1x128x128xbf16> to vector<128x128xbf16>
    %cst_111 = arith.constant dense<0.000000e+00> : vector<64x128xf32>
    %124 = tpu.matmul %121, %123, %cst_111 {dimension_numbers = #tpu.dot_dimension_numbers<[1], [0], [0], [1], [0, 0, 1, 1], [], []>} : vector<64x128xbf16>, vector<128x128xbf16>, vector<64x128xf32> -> vector<64x128xf32>
    %125 = arith.addf %119, %124 : vector<64x128xf32>
    %c1_112 = arith.constant 1 : index
    %c7_113 = arith.constant 7 : index
    %c0_114 = arith.constant 0 : index
    %126 = vector.load %arg9[%c1_112, %c7_113, %c0_114] : memref<10x24x128xbf16, #tpu.memory_space<vmem>>, vector<8x8x128xbf16>
    %127 = vector.shape_cast %126 : vector<8x8x128xbf16> to vector<64x128xbf16>
    %c3_115 = arith.constant 3 : index
    %c0_116 = arith.constant 0 : index
    %c0_117 = arith.constant 0 : index
    %128 = vector.load %arg5[%c3_115, %c0_116, %c0_117] : memref<9x128x128xbf16, #tpu.memory_space<vmem>>, vector<1x128x128xbf16>
    %129 = vector.shape_cast %128 : vector<1x128x128xbf16> to vector<128x128xbf16>
    %cst_118 = arith.constant dense<0.000000e+00> : vector<64x128xf32>
    %130 = tpu.matmul %127, %129, %cst_118 {dimension_numbers = #tpu.dot_dimension_numbers<[1], [0], [0], [1], [0, 0, 1, 1], [], []>} : vector<64x128xbf16>, vector<128x128xbf16>, vector<64x128xf32> -> vector<64x128xf32>
    %131 = arith.addf %125, %130 : vector<64x128xf32>
    %c1_119 = arith.constant 1 : index
    %c8_120 = arith.constant 8 : index
    %c0_121 = arith.constant 0 : index
    %132 = vector.load %arg9[%c1_119, %c8_120, %c0_121] : memref<10x24x128xbf16, #tpu.memory_space<vmem>>, vector<8x8x128xbf16>
    %133 = vector.shape_cast %132 : vector<8x8x128xbf16> to vector<64x128xbf16>
    %c4_122 = arith.constant 4 : index
    %c0_123 = arith.constant 0 : index
    %c0_124 = arith.constant 0 : index
    %134 = vector.load %arg5[%c4_122, %c0_123, %c0_124] : memref<9x128x128xbf16, #tpu.memory_space<vmem>>, vector<1x128x128xbf16>
    %135 = vector.shape_cast %134 : vector<1x128x128xbf16> to vector<128x128xbf16>
    %cst_125 = arith.constant dense<0.000000e+00> : vector<64x128xf32>
    %136 = tpu.matmul %133, %135, %cst_125 {dimension_numbers = #tpu.dot_dimension_numbers<[1], [0], [0], [1], [0, 0, 1, 1], [], []>} : vector<64x128xbf16>, vector<128x128xbf16>, vector<64x128xf32> -> vector<64x128xf32>
    %137 = arith.addf %131, %136 : vector<64x128xf32>
    %c1_126 = arith.constant 1 : index
    %c9_127 = arith.constant 9 : index
    %c0_128 = arith.constant 0 : index
    %138 = vector.load %arg9[%c1_126, %c9_127, %c0_128] : memref<10x24x128xbf16, #tpu.memory_space<vmem>>, vector<8x8x128xbf16>
    %139 = vector.shape_cast %138 : vector<8x8x128xbf16> to vector<64x128xbf16>
    %c5_129 = arith.constant 5 : index
    %c0_130 = arith.constant 0 : index
    %c0_131 = arith.constant 0 : index
    %140 = vector.load %arg5[%c5_129, %c0_130, %c0_131] : memref<9x128x128xbf16, #tpu.memory_space<vmem>>, vector<1x128x128xbf16>
    %141 = vector.shape_cast %140 : vector<1x128x128xbf16> to vector<128x128xbf16>
    %cst_132 = arith.constant dense<0.000000e+00> : vector<64x128xf32>
    %142 = tpu.matmul %139, %141, %cst_132 {dimension_numbers = #tpu.dot_dimension_numbers<[1], [0], [0], [1], [0, 0, 1, 1], [], []>} : vector<64x128xbf16>, vector<128x128xbf16>, vector<64x128xf32> -> vector<64x128xf32>
    %143 = arith.addf %137, %142 : vector<64x128xf32>
    %c2_133 = arith.constant 2 : index
    %c7_134 = arith.constant 7 : index
    %c0_135 = arith.constant 0 : index
    %144 = vector.load %arg9[%c2_133, %c7_134, %c0_135] : memref<10x24x128xbf16, #tpu.memory_space<vmem>>, vector<8x8x128xbf16>
    %145 = vector.shape_cast %144 : vector<8x8x128xbf16> to vector<64x128xbf16>
    %c6_136 = arith.constant 6 : index
    %c0_137 = arith.constant 0 : index
    %c0_138 = arith.constant 0 : index
    %146 = vector.load %arg5[%c6_136, %c0_137, %c0_138] : memref<9x128x128xbf16, #tpu.memory_space<vmem>>, vector<1x128x128xbf16>
    %147 = vector.shape_cast %146 : vector<1x128x128xbf16> to vector<128x128xbf16>
    %cst_139 = arith.constant dense<0.000000e+00> : vector<64x128xf32>
    %148 = tpu.matmul %145, %147, %cst_139 {dimension_numbers = #tpu.dot_dimension_numbers<[1], [0], [0], [1], [0, 0, 1, 1], [], []>} : vector<64x128xbf16>, vector<128x128xbf16>, vector<64x128xf32> -> vector<64x128xf32>
    %149 = arith.addf %143, %148 : vector<64x128xf32>
    %c2_140 = arith.constant 2 : index
    %c8_141 = arith.constant 8 : index
    %c0_142 = arith.constant 0 : index
    %150 = vector.load %arg9[%c2_140, %c8_141, %c0_142] : memref<10x24x128xbf16, #tpu.memory_space<vmem>>, vector<8x8x128xbf16>
    %151 = vector.shape_cast %150 : vector<8x8x128xbf16> to vector<64x128xbf16>
    %c7_143 = arith.constant 7 : index
    %c0_144 = arith.constant 0 : index
    %c0_145 = arith.constant 0 : index
    %152 = vector.load %arg5[%c7_143, %c0_144, %c0_145] : memref<9x128x128xbf16, #tpu.memory_space<vmem>>, vector<1x128x128xbf16>
    %153 = vector.shape_cast %152 : vector<1x128x128xbf16> to vector<128x128xbf16>
    %cst_146 = arith.constant dense<0.000000e+00> : vector<64x128xf32>
    %154 = tpu.matmul %151, %153, %cst_146 {dimension_numbers = #tpu.dot_dimension_numbers<[1], [0], [0], [1], [0, 0, 1, 1], [], []>} : vector<64x128xbf16>, vector<128x128xbf16>, vector<64x128xf32> -> vector<64x128xf32>
    %155 = arith.addf %149, %154 : vector<64x128xf32>
    %c2_147 = arith.constant 2 : index
    %c9_148 = arith.constant 9 : index
    %c0_149 = arith.constant 0 : index
    %156 = vector.load %arg9[%c2_147, %c9_148, %c0_149] : memref<10x24x128xbf16, #tpu.memory_space<vmem>>, vector<8x8x128xbf16>
    %157 = vector.shape_cast %156 : vector<8x8x128xbf16> to vector<64x128xbf16>
    %c8_150 = arith.constant 8 : index
    %c0_151 = arith.constant 0 : index
    %c0_152 = arith.constant 0 : index
    %158 = vector.load %arg5[%c8_150, %c0_151, %c0_152] : memref<9x128x128xbf16, #tpu.memory_space<vmem>>, vector<1x128x128xbf16>
    %159 = vector.shape_cast %158 : vector<1x128x128xbf16> to vector<128x128xbf16>
    %cst_153 = arith.constant dense<0.000000e+00> : vector<64x128xf32>
    %160 = tpu.matmul %157, %159, %cst_153 {dimension_numbers = #tpu.dot_dimension_numbers<[1], [0], [0], [1], [0, 0, 1, 1], [], []>} : vector<64x128xbf16>, vector<128x128xbf16>, vector<64x128xf32> -> vector<64x128xf32>
    %161 = arith.addf %155, %160 : vector<64x128xf32>
    %cst_154 = arith.constant 0.000000e+00 : f32
    %162 = vector.broadcast %cst_154 : f32 to vector<64x128xf32>
    %163 = arith.maximumf %161, %162 : vector<64x128xf32>
    %164 = vector.shape_cast %163 : vector<64x128xf32> to vector<8x8x128xf32>
    %165 = arith.truncf %164 : vector<8x8x128xf32> to vector<8x8x128xbf16>
    %c0_155 = arith.constant 0 : index
    %c0_156 = arith.constant 0 : index
    %c0_157 = arith.constant 0 : index
    %c0_158 = arith.constant 0 : index
    %166 = vector.load %arg8[%c0_155, %c0_156, %c0_157, %c0_158] : memref<1x8x8x128xbf16, #tpu.memory_space<vmem>>, vector<1x8x8x128xbf16>
    %167 = vector.shape_cast %166 : vector<1x8x8x128xbf16> to vector<8x8x128xbf16>
    %168 = vector.shape_cast %165 : vector<8x8x128xbf16> to vector<1x8x8x128xbf16>
    tpu.vector_store %arg8[%c0_155, %c0_156, %c0_157, %c0_158], %168 {strides = array<i32>} : memref<1x8x8x128xbf16, #tpu.memory_space<vmem>>, vector<1x8x8x128xbf16>,
    return
  }
  func.func @transform_0(%arg0: i32, %arg1: i32) -> (i32, i32, i32, i32, i32) {
    %c0_i32 = arith.constant 0 : i32
    %c0_i32_0 = arith.constant 0 : i32
    %c0_i32_1 = arith.constant 0 : i32
    %c0_i32_2 = arith.constant 0 : i32
    %c0_i32_3 = arith.constant 0 : i32
    return %arg0, %c0_i32, %c0_i32_0, %c0_i32_1, %c0_i32_2 : i32, i32, i32, i32, i32
  }
  func.func @transform_1(%arg0: i32, %arg1: i32) -> (i32, i32, i32) {
    %c0_i32 = arith.constant 0 : i32
    %c0_i32_0 = arith.constant 0 : i32
    %c0_i32_1 = arith.constant 0 : i32
    %c0_i32_2 = arith.constant 0 : i32
    return %c0_i32, %c0_i32_0, %c0_i32_1 : i32, i32, i32
  }
  func.func @transform_2(%arg0: i32, %arg1: i32) -> (i32, i32) {
    %c0_i32 = arith.constant 0 : i32
    %c0_i32_0 = arith.constant 0 : i32
    %c0_i32_1 = arith.constant 0 : i32
    return %c0_i32, %c0_i32_0 : i32, i32
  }
  func.func @transform_3(%arg0: i32, %arg1: i32) -> (i32, i32, i32) {
    %c0_i32 = arith.constant 0 : i32
    %c0_i32_0 = arith.constant 0 : i32
    %c0_i32_1 = arith.constant 0 : i32
    %c0_i32_2 = arith.constant 0 : i32
    return %c0_i32, %c0_i32_0, %c0_i32_1 : i32, i32, i32
  }
  func.func @transform_4(%arg0: i32, %arg1: i32) -> (i32, i32) {
    %c0_i32 = arith.constant 0 : i32
    %c0_i32_0 = arith.constant 0 : i32
    %c0_i32_1 = arith.constant 0 : i32
    return %c0_i32, %c0_i32_0 : i32, i32
  }
  func.func @transform_5(%arg0: i32, %arg1: i32) -> (i32, i32) {
    %c0_i32 = arith.constant 0 : i32
    %c0_i32_0 = arith.constant 0 : i32
    %c0_i32_1 = arith.constant 0 : i32
    return %c0_i32, %c0_i32_0 : i32, i32
  }
  func.func @transform_6(%arg0: i32, %arg1: i32) -> (i32, i32, i32, i32) {
    %c0_i32 = arith.constant 0 : i32
    %c0_i32_0 = arith.constant 0 : i32
    %c0_i32_1 = arith.constant 0 : i32
    return %arg0, %arg1, %c0_i32, %c0_i32_0 : i32, i32, i32, i32
  }
}

</mosaic_0001>

<bundles_post_ra>
// kernel: res_blk_forward.1
= control target key start
LH: loop header
LB: loop body
LE: loop exit
PB: predicated region body
PF: predicated region fallthrough
CT: control target
= control target key end

     0   :  { %s5729_s21 = smov 0   ;;  %s5731_s22 = smov 0   ;;  %s6952_s0 = inlined_call_operand.vmem [shape: bf16[2,4,11,9,8], index: 0, kind: input, shape index: {}]   ;;  %s6953_s1 = inlined_call_operand.vmem [shape: bf16[9,8,128], index: 1, kind: input, shape index: {}]   ;;  %s6954_s2 = inlined_call_operand.vmem [shape: f32[1,128], index: 2, kind: input, shape index: {}]   ;;  %s6955_s3 = inlined_call_operand.vmem [shape: bf16[9,128,128], index: 3, kind: input, shape index: {}]   ;;  %s6956_s4 = inlined_call_operand.vmem [shape: f32[1,128], index: 4, kind: input, shape index: {}]   ;;  %s6957_s5 = inlined_call_operand.vmem [shape: bf16[8,128], index: 5, kind: input, shape index: {}]   ;;  %s6958_s6 = inlined_call_operand.vmem [shape: bf16[2,8,8,128], index: 6, kind: output, shape index: {}]  }
   0x1   :  { %s5733_s23 = smov 0  }
   0x2 LB: > { %s28_s24 = sadd.s32 1, %s5685_s22  ;;  %p4443_p0 = scmp.ge.s32.totalorder %s5689_s23, 1  ;;  %s5689_s23 = sphi %s5733_s23, %s16_s23   ;;  %s5685_s22 = sphi %s5731_s22, %s6990_s22   ;;  %s5681_s21 = sphi %s5729_s21, %s6989_s21  }
   0x3   : > { %p30_p1 = scmp.ge.s32.totalorder %s28_s24, 2  ;;  %p226_p2 = scmp.lt.s32.totalorder %s5689_s23, 3 }
   0x5   : > { %s6992_s24 = smov (%p30_p1, %s28_s24), 0  ;;  %p227_p3 = pnand %p4443_p0, %p226_p2 }
   0x7   : > { %230 = sbr.rel (%p227_p3) target bundleno = 759 (0x2f7), region = 44 }
   0xc   : > { %v4457_v0 = vld [vmem:[%s6953_s1 + $0x4] sm:$0xf]  ;;  %vm347_vm0 = vcmask 1043456   ;;  %p260_p4 = scmp.lt.s32.totalorder %s5681_s21, 1  ;;  %v5691_v1 = vmov 0.0   ;;  %vm5692_vm1 = vmmov 0  }
   0xd   : > { %5098 = vmatprep.subr.bf16.mxu0 %v5691_v1  ;;  %v349_v2 = vsel %vm347_vm0, %v4457_v0, 0  ;;  %5100 = vmatprep.mubr.msk.bf16.mxu0 %vm5692_vm1, %v5691_v1  ;;  %v290_v3 = vld [vmem:[%s6953_s1] sm:$0xf]  ;;  %v4499_v5 = vld [vmem:[%s6953_s1 + $0xc] sm:$0xf]  ;;  %vm331_vm2 = vcmask 64512  }
   0xe   : > { %5099 = vmatpush3.bf16.msra.mxu0 %v349_v2  ;;  %s6994_s21 = smov (!%p260_p4, %s5681_s21), 1  ;;  %v465_v4 = vsel %vm347_vm0, %v290_v3, 0  ;;  %5522 = vmatprep.subr.bf16.mxu1 %v5691_v1  ;;  %v877_v7 = vsel %vm347_vm0, %v4499_v5, 0  ;;  %v4551_v23 = vld [vmem:[%s6953_s1 + $0x14] sm:$0xf]  ;;  %vm1989_vm6 = vcmask 1043459  }
   0xf   : > { %5120 = vmatprep.subr.bf16.mxu0 %v5691_v1  ;;  %5523 = vmatpush3.bf16.msra.mxu1 %v465_v4  ;;  %s5525_s29 = smul.u32 352, %s6994_s21  ;;  %v1296_v39 = vsel %vm347_vm0, %v4551_v23, 0  ;;  %vm560_vm3 = vsmask.f32 3328  ;;  %vm561_vm4 = vsmask.f32 7440 }
  0x10   : > { %5126 = vmatprep.mubr.msk.bf16.mxu1 %vm5692_vm1, %v5691_v1  ;;  %5164 = vmatprep.subr.bf16.mxu1 %v5691_v1  ;;  %v4478_v49 = vld [vmem:[%s6953_s1 + $0x8] sm:$0xf]  ;;  %vm5836_vm5 = vmor %vm560_vm3, %vm561_vm4  ;;  %vm1990_vm7 = vsmask.f32 7950  ;;  %vm2023_vm9 = vsmask.f32 256 }
  0x11   : > { %s5772_s10 = scalar_lea.vmem %s6952_s0, %s5525_s29  ;;  %v736_v0 = vsel %vm347_vm0, %v4478_v49, 0  ;;  %vm6202_vm8 = vmand %vm1989_vm6, %vm1990_vm7  ;;  %vm2022_vm10 = vcmask 1040384   ;;  %vm2170_vm12 = vsmask.f32 4368  ;;  %s4907_s13 = sshll.u32 %s6994_s21, 5 }
  0x12   : > { %v5553_v6 = vld [vmem:[%s5772_s10 + $0x58] ss:$8 sps:$4 sm:$0xff]   ;;  %v5554_v9 = vld [vmem:[%s5772_s10 + $0x68] ss:$8 sps:$4 sm:$0xff]   ;;  %v541_v24 = vld [vmem:[%s5772_s10 + $0x4] sm:$0x1]  ;;  %s273_s16 = scalar_lea.vmem %s6958_s6, %s4907_s13 }
  0x13   : > { %5101 = vmatmul.mubr.msk.bf16.vlgmr.msra.gmra.mxu0 %vm331_vm2, %v5553_v6  ;;  %v5555_v8 = vld [vmem:[%s5772_s10 + $0x10] ss:$8 sps:$4 sm:$0xff]   ;;  %v5557_v10 = vld [vmem:[%s5772_s10 + $0x20] ss:$8 sps:$4 sm:$0xff]   ;;  %v543_v28 = vld [vmem:[%s5772_s10 + $0xc] sm:$0x1] }
  0x14   : > { %5121 = vmatpush3.bf16.msra.mxu0 %v465_v4  ;;  %5104 = vmatprep.mubr.msk.bf16.mxu0 %vm5692_vm1, %v5691_v1  ;;  %v5556_v11 = vld [vmem:[%s5772_s10 + $0x78] ss:$8 sps:$4 sm:$0xff]   ;;  %v5558_v13 = vld [vmem:[%s5772_s10 + $0x88] ss:$8 sps:$4 sm:$0xff]   ;;  %v573_v37 = vshll.u32 %v541_v24, 16  ;;  %v587_v38 = vshll.u32 %v543_v28, 16  ;;  %vm6220_vm11 = vmand %vm2022_vm10, %vm2023_vm9 }
  0x15   : > { %5127 = vmatmul.mubr.msk.bf16.vlgmr.msra.gmra.mxu1 %vm331_vm2, %v5555_v8  ;;  %5142 = vmatprep.subr.bf16.mxu0 %v5691_v1  ;;  %v5559_v12 = vld [vmem:[%s5772_s10 + $0x30] ss:$8 sps:$4 sm:$0xff]   ;;  %v540_v14 = vld [vmem:[%s5772_s10] sm:$0xf]  ;;  %v542_v15 = vld [vmem:[%s5772_s10 + $0x8] sm:$0xf] }
  0x16   : > { %5130 = vmatprep.mubr.msk.bf16.mxu1 %vm5692_vm1, %v5691_v1  ;;  %5165 = vmatpush3.bf16.msra.mxu1 %v877_v7  ;;  %v5561_v16 = vld [vmem:[%s5772_s10 + $0x40] ss:$8 sps:$4 sm:$0xff]   ;;  %v564_v17 = vshrl.u32 %v540_v14, 16  ;;  %v567_v18 = vshll.u32 %v540_v14, 16  ;;  %v578_v19 = vshrl.u32 %v542_v15, 16  ;;  %v581_v20 = vshll.u32 %v542_v15, 16  ;;  %vm6469_vm13 = vmor %vm2023_vm9, %vm2170_vm12 }
  0x17   : > { %5208 = vmatprep.subr.bf16.mxu1 %v5691_v1  ;;  %v544_v21 = vld [vmem:[%s5772_s10 + $0x10] sm:$0xf]  ;;  %v5560_v22 = vld [vmem:[%s5772_s10 + $0x98] ss:$8 sps:$4 sm:$0xff]   ;;  %v545_v41 = vld [vmem:[%s5772_s10 + $0x14] sm:$0x1] }
  0x18   : > { %v566_v25 = vrot.slane %v564_v17, 4  ;;  %v569_v26 = vrot.slane %v567_v18, 5  ;;  %v546_v27 = vld [vmem:[%s5772_s10 + $0x18] sm:$0xf]  ;;  %v580_v29 = vrot.slane %v578_v19, 4  ;;  %v583_v30 = vrot.slane %v581_v20, 5 }
  0x19   : > { %v592_v31 = vshrl.u32 %v544_v21, 16  ;;  %v595_v32 = vshll.u32 %v544_v21, 16  ;;  %v5563_v33 = vld [vmem:[%s5772_s10 + $0xb0] ss:$8 sps:$4 sm:$0xff]   ;;  %v606_v34 = vshrl.u32 %v546_v27, 16  ;;  %v609_v35 = vshll.u32 %v546_v27, 16 }
  0x1a   : > { %v570_v36 = vor.u32 %v569_v26, %v566_v25  ;;  %v584_v40 = vor.u32 %v583_v30, %v580_v29  ;;  %v547_v42 = vld [vmem:[%s5772_s10 + $0x1c] sm:$0x1]  ;;  %v548_v47 = vld [vmem:[%s5772_s10 + $0x20] sm:$0xf]  ;;  %v550_v48 = vld [vmem:[%s5772_s10 + $0x28] sm:$0xf] }
  0x1b   : > { %5105 = vmatmul.mubr.msk.bf16.gmra.mxu0 %vm331_vm2, %v5554_v9  ;;  %v594_v43 = vrot.slane %v592_v31, 4  ;;  %v597_v44 = vrot.slane %v595_v32, 5  ;;  %v608_v45 = vrot.slane %v606_v34, 4  ;;  %v611_v46 = vrot.slane %v609_v35, 5  ;;  %v5562_v54 = vld [vmem:[%s5772_s10] ss:$8 sps:$4 sm:$0xff]  }
  0x1c   : > { %5108 = vmatprep.mubr.msk.bf16.mxu0 %vm5692_vm1, %v5691_v1  ;;  %v571_v50 = vrot.slane %v570_v36, 4  ;;  %v575_v51 = vrot.slane %v573_v37, 5  ;;  %v601_v52 = vshll.u32 %v545_v41, 16  ;;  %v615_v53 = vshll.u32 %v547_v42, 16  ;;  %v552_v63 = vld [vmem:[%s5772_s10 + $0x30] sm:$0xf] }
  0x1d   : > { %5131 = vmatmul.mubr.msk.bf16.gmra.mxu1 %vm331_vm2, %v5557_v10  ;;  %v585_v56 = vrot.slane %v584_v40, 4  ;;  %v589_v57 = vrot.slane %v587_v38, 5  ;;  %v598_v58 = vor.u32 %v597_v44, %v594_v43  ;;  %v620_v59 = vshrl.u32 %v548_v47, 16  ;;  %v5564_v3 = vld [vmem:[%s5772_s10 + $0xc0] ss:$8 sps:$4 sm:$0xff]  }
  0x1e   : > { %5134 = vmatprep.mubr.msk.bf16.mxu1 %vm5692_vm1, %v5691_v1  ;;  %v623_v60 = vshll.u32 %v548_v47, 16  ;;  %v634_v61 = vshrl.u32 %v550_v48, 16  ;;  %v637_v62 = vshll.u32 %v550_v48, 16  ;;  %v612_v2 = vor.u32 %v611_v46, %v608_v45  ;;  %v549_v7 = vld [vmem:[%s5772_s10 + $0x24] sm:$0x1] }
  0x1f   : > { %v576_v4 = vsel %vm5836_vm5, %v571_v50, %v575_v51  ;;  %v603_v5 = vrot.slane %v601_v52, 5  ;;  %v617_v6 = vrot.slane %v615_v53, 5  ;;  %v554_v8 = vld [vmem:[%s5772_s10 + $0x38] sm:$0xf]  ;;  %v590_v9 = vsel %vm5836_vm5, %v585_v56, %v589_v57  ;;  %v4520_v10 = vld [vmem:[%s6953_s1 + $0x10] sm:$0xf] }
  0x20   : > { %v551_v14 = vld [vmem:[%s5772_s10 + $0x2c] sm:$0x1]  ;;  %v622_v15 = vrot.slane %v620_v59, 4  ;;  %v636_v17 = vrot.slane %v634_v61, 4  ;;  %v639_v18 = vrot.slane %v637_v62, 5  ;;  %v613_v19 = vrot.slane %v612_v2, 4 }
  0x21   : > { %v629_v20 = vshll.u32 %v549_v7, 16  ;;  %v553_v21 = vld [vmem:[%s5772_s10 + $0x34] sm:$0x1]  ;;  %v665_v23 = vshll.u32 %v554_v8, 16  ;;  %v4479_v24 = vcombine.low %v576_v4, %v590_v9  ;;  %v555_v25 = vld [vmem:[%s5772_s10 + $0x3c] sm:$0x1] }
  0x22   : > { %v5864_v26 = vld [vmem:[%s5772_s10 + $0x120] sm:$0xf]  ;;  %v5867_v27 = vld [vmem:[%s5772_s10 + $0x128] sm:$0xf]  ;;  %v643_v28 = vshll.u32 %v551_v14, 16  ;;  %v640_v35 = vor.u32 %v639_v18, %v636_v17  ;;  %v657_v37 = vshll.u32 %v553_v21, 16  ;;  %v618_v42 = vsel %vm5836_vm5, %v613_v19, %v617_v6 }
  0x23   : > { %5109 = vmatmul.mubr.msk.bf16.gmra.mxu0 %vm331_vm2, %v5556_v11  ;;  %v599_v11 = vrot.slane %v598_v58, 4  ;;  %v4531_v31 = vld [vmem:[%s5772_s10 + $0xb0] sm:$0xf]  ;;  %v4638_v32 = vcombine.low %v5864_v26, %v5867_v27  ;;  %v671_v40 = vshll.u32 %v555_v25, 16  ;;  %v631_v45 = vrot.slane %v629_v20, 5 }
  0x24   : > { %5112 = vmatprep.mubr.msk.bf16.mxu0 %vm5692_vm1, %v5691_v1  ;;  %v5565_v36 = vld [vmem:[%s5772_s10 + $0xd0] ss:$8 sps:$4 sm:$0xff]   ;;  %v1124_v43 = vshrl.u32 %v4531_v31, 16  ;;  %v1127_v44 = vshll.u32 %v4531_v31, 16  ;;  %v645_v46 = vrot.slane %v643_v28, 5  ;;  %v641_v50 = vrot.slane %v640_v35, 4 }
  0x25   : > { %5135 = vmatmul.mubr.msk.bf16.gmra.mxu1 %vm331_vm2, %v5559_v12  ;;  %v648_v12 = vshrl.u32 %v552_v63, 16  ;;  %v604_v41 = vsel %vm5836_vm5, %v599_v11, %v603_v5  ;;  %v4533_v48 = vld [vmem:[%s5772_s10 + $0xb8] sm:$0xf]  ;;  %v556_v51 = vld [vmem:[%s5772_s10 + $0x40] sm:$0xf]  ;;  %v5887_v57 = vrot.slane %v671_v40, 5 }
  0x26   : > { %5138 = vmatprep.mubr.msk.bf16.mxu1 %vm5692_vm1, %v5691_v1  ;;  %v558_v52 = vld [vmem:[%s5772_s10 + $0x48] sm:$0xf]  ;;  %v4480_v53 = vcombine.low %v604_v41, %v618_v42  ;;  %v5890_v58 = vld [vmem:[%s5772_s10 + $0x44] sm:$0x1]  ;;  %v4532_v59 = vld [vmem:[%s5772_s10 + $0xb4] sm:$0x1]  ;;  %v646_v9 = vsel %vm5836_vm5, %v641_v50, %v645_v46 }
  0x27   : > { %v650_v29 = vrot.slane %v648_v12, 4  ;;  %v1129_v61 = vrot.slane %v1127_v44, 5  ;;  %v1138_v62 = vshrl.u32 %v4533_v48, 16  ;;  %v5566_v2 = vld [vmem:[%s5772_s10 + $0xe0] ss:$8 sps:$4 sm:$0xff]   ;;  %v676_v4 = vshrl.u32 %v556_v51, 16 }
  0x28   : > { %v679_v5 = vshll.u32 %v556_v51, 16  ;;  %v690_v6 = vshrl.u32 %v558_v52, 16  ;;  %v4534_v7 = vld [vmem:[%s5772_s10 + $0xbc] sm:$0x1]  ;;  %v685_v12 = vshll.u32 %v5890_v58, 16  ;;  %v1133_v14 = vshll.u32 %v4532_v59, 16 }
  0x29   : > { %v1140_v17 = vrot.slane %v1138_v62, 4  ;;  %v1147_v19 = vshll.u32 %v4534_v7, 16  ;;  %v678_v20 = vrot.slane %v676_v4, 4  ;;  %v4539_v41 = vld [vmem:[%s5772_s10 + $0xd0] sm:$0xf] }
  0x2a   : > { %v681_v21 = vrot.slane %v679_v5, 5  ;;  %v1135_v31 = vrot.slane %v1133_v14, 5  ;;  %v4538_v42 = vld [vmem:[%s5772_s10 + $0xcc] sm:$0x1]  ;;  %v1180_v50 = vshrl.u32 %v4539_v41, 16  ;;  %v1183_v51 = vshll.u32 %v4539_v41, 16 }
  0x2b   : > { %5113 = vmatmul.mubr.msk.bf16.gmra.mxu0 %vm331_vm2, %v5558_v13  ;;  %v651_v13 = vshll.u32 %v552_v63, 16  ;;  %v1141_v63 = vshll.u32 %v4533_v48, 16  ;;  %v1149_v35 = vrot.slane %v1147_v19, 5  ;;  %v687_v62 = vrot.slane %v685_v12, 5  ;;  %v4593_v5 = vld [vmem:[%s6953_s1 + $0x1c] sm:$0xf] }
  0x2c   : > { %5116 = vmatprep.mubr.msk.bf16.mxu0 %vm5692_vm1, %v5691_v1  ;;  %v682_v48 = vor.u32 %v681_v21, %v678_v20  ;;  %v1182_v7 = vrot.slane %v1180_v50, 4  ;;  %v4545_v19 = vld [vmem:[%s5772_s10 + $0xe8] sm:$0xf]  ;;  %v1579_v20 = vsel %vm347_vm0, %v4593_v5, 0  ;;  %v4547_v41 = vld [vmem:[%s5772_s10 + $0xf0] sm:$0xf] }
  0x2d   : > { %5139 = vmatmul.mubr.msk.bf16.gmra.mxu1 %vm331_vm2, %v5561_v16  ;;  %v625_v16 = vrot.slane %v623_v60, 5  ;;  %v653_v30 = vrot.slane %v651_v13, 5  ;;  %v1126_v60 = vrot.slane %v1124_v43, 4  ;;  %v693_v13 = vshll.u32 %v558_v52, 16  ;;  %v4546_v50 = vld [vmem:[%s5772_s10 + $0xec] sm:$0x1] }
  0x2e   : > { %5166 = vmatprep.mubr.msk.bf16.mxu1 %vm5692_vm1, %v5691_v1  ;;  %v1143_v18 = vrot.slane %v1141_v63, 5 }
  0x2f   : > { %v626_v34 = vor.u32 %v625_v16, %v622_v15  ;;  %v654_v47 = vor.u32 %v653_v30, %v650_v29  ;;  %v4537_v15 = vld [vmem:[%s5772_s10 + $0xc8] sm:$0xf]  ;;  %v1130_v16 = vor.u32 %v1129_v61, %v1126_v60  ;;  %v695_v30 = vrot.slane %v693_v13, 5 }
  0x30   : > { %v1166_v28 = vshrl.u32 %v4537_v15, 16  ;;  %v1169_v29 = vshll.u32 %v4537_v15, 16  ;;  %v1175_v61 = vshll.u32 %v4538_v42, 16  ;;  %v4542_v15 = vld [vmem:[%s5772_s10 + $0xdc] sm:$0x1] }
  0x31   : > { %v627_v49 = vrot.slane %v626_v34, 4  ;;  %v1144_v34 = vor.u32 %v1143_v18, %v1140_v17  ;;  %v4543_v18 = vld [vmem:[%s5772_s10 + $0xe0] sm:$0xf] }
  0x32   : > { %v1168_v43 = vrot.slane %v1166_v28, 4  ;;  %v1171_v44 = vrot.slane %v1169_v29, 5  ;;  %v1177_v14 = vrot.slane %v1175_v61, 5  ;;  %v1208_v29 = vshrl.u32 %v4543_v18, 16 }
  0x33   : > { %5117 = vmatmul.mubr.msk.bf16.gmra.mxu0 %vm331_vm2, %v5560_v22  ;;  %v662_v22 = vshrl.u32 %v554_v8, 16  ;;  %v632_v8 = vsel %vm5836_vm5, %v627_v49, %v631_v45  ;;  %v4541_v45 = vld [vmem:[%s5772_s10 + $0xd8] sm:$0xf]  ;;  %v1145_v46 = vrot.slane %v1144_v34, 4 }
  0x34   : > { %5122 = vmatprep.mubr.msk.bf16.mxu0 %vm5692_vm1, %v5691_v1  ;;  %v1197_v58 = vshll.u32 %v4541_v45, 16  ;;  %v1172_v60 = vor.u32 %v1171_v44, %v1168_v43  ;;  %v1210_v42 = vrot.slane %v1208_v29, 4  ;;  %v6004_v29 = vld [vmem:[%s5772_s10 + $0x130] sm:$0xf] }
  0x35   : > { %5167 = vmatmul.mubr.msk.bf16.vlgmr.msra.gmra.mxu1 %vm331_vm2, %v5563_v33  ;;  %v1018_v33 = vsel %vm347_vm0, %v4520_v10, 0  ;;  %v664_v38 = vrot.slane %v662_v22, 4  ;;  %v4535_v10 = vld [vmem:[%s5772_s10 + $0xc0] sm:$0xf] }
  0x36   : > { %5170 = vmatprep.mubr.msk.bf16.mxu1 %vm5692_vm1, %v5691_v1  ;;  %5209 = vmatpush3.bf16.msra.mxu1 %v1296_v39  ;;  %v667_v39 = vrot.slane %v665_v23, 5  ;;  %v1152_v22 = vshrl.u32 %v4535_v10, 16  ;;  %v1155_v23 = vshll.u32 %v4535_v10, 16  ;;  %v1199_v10 = vrot.slane %v1197_v58, 5 }
  0x37   : > { %5252 = vmatprep.subr.bf16.mxu1 %v5691_v1  ;;  %v1173_v13 = vrot.slane %v1172_v60, 4  ;;  %v1236_v58 = vshrl.u32 %v4547_v41, 16 }
  0x38   : > { %v668_v56 = vor.u32 %v667_v39, %v664_v38  ;;  %v5567_v38 = vld [vmem:[%s5772_s10 + $0xf0] ss:$8 sps:$4 sm:$0xff]   ;;  %v1154_v39 = vrot.slane %v1152_v22, 4  ;;  %v1157_v40 = vrot.slane %v1155_v23, 5 }
  0x39   : > { %v1178_v28 = vsel %vm5836_vm5, %v1173_v13, %v1177_v14  ;;  %v4624_v14 = vld [vmem:[%s6953_s1 + $0x20] sm:$0xf] }
  0x3a   : > { %v669_v11 = vrot.slane %v668_v56, 4  ;;  %v1194_v56 = vshrl.u32 %v4541_v45, 16  ;;  %v1158_v59 = vor.u32 %v1157_v40, %v1154_v39  ;;  %v4544_v40 = vld [vmem:[%s5772_s10 + $0xe4] sm:$0x1] }
  0x3b   : > { %5123 = vmatmul.mubr.msk.bf16.vlgmr.msra.gmra.mxu0 %vm331_vm2, %v5562_v54  ;;  %v5885_v54 = vrot.slane %v657_v37, 5  ;;  %v4481_v37 = vcombine.low %v632_v8, %v646_v9  ;;  %v1185_v8 = vrot.slane %v1183_v51, 5 }
  0x3c   : > { %5143 = vmatpush3.bf16.msra.mxu0 %v736_v0  ;;  %5144 = vmatprep.mubr.msk.bf16.mxu0 %vm5692_vm1, %v5691_v1  ;;  %v5896_v0 = vrot.slane %v654_v47, 4  ;;  %v1196_v9 = vrot.slane %v1194_v56, 4  ;;  %v1159_v12 = vrot.slane %v1158_v59, 4  ;;  %v4548_v56 = vld [vmem:[%s5772_s10 + $0xf4] sm:$0x1]  ;;  %v1239_v59 = vshll.u32 %v4547_v41, 16 }
  0x3d   : > { %5186 = vmatprep.subr.bf16.mxu0 %v5691_v1  ;;  %5171 = vmatmul.mubr.msk.bf16.gmra.mxu1 %vm331_vm2, %v5564_v3  ;;  %v559_v3 = vld [vmem:[%s5772_s10 + $0x4c] sm:$0x1]  ;;  %v1186_v21 = vor.u32 %v1185_v8, %v1182_v7  ;;  %v1245_v5 = vshll.u32 %v4548_v56, 16 }
  0x3e   : > { %5174 = vmatprep.mubr.msk.bf16.mxu1 %vm5692_vm1, %v5691_v1  ;;  %v699_v25 = vshll.u32 %v559_v3, 16  ;;  %v660_v52 = vsel %vm5836_vm5, %v5896_v0, %v5885_v54  ;;  %v1200_v23 = vor.u32 %v1199_v10, %v1196_v9  ;;  %v1241_v7 = vrot.slane %v1239_v59, 5  ;;  %v5580_v59 = vld [vmem:[%s5772_s10 + $0x38] ss:$8 sps:$4 sm:$0xff]  }
  0x40   : > { %v701_v63 = vrot.slane %v699_v25, 5 }
  0x43   : > { %5145 = vmatmul.mubr.msk.bf16.vlgmr.msra.gmra.mxu0 %vm331_vm2, %v4479_v24  ;;  %v692_v24 = vrot.slane %v690_v6, 4  ;;  %v4540_v6 = vld [vmem:[%s5772_s10 + $0xd4] sm:$0x1] }
  0x44   : > { %5187 = vmatpush3.bf16.msra.mxu0 %v1018_v33  ;;  %5148 = vmatprep.mubr.msk.bf16.mxu0 %vm5692_vm1, %v5691_v1  ;;  %v1131_v33 = vrot.slane %v1130_v16, 4  ;;  %v1189_v22 = vshll.u32 %v4540_v6, 16  ;;  %v1238_v6 = vrot.slane %v1236_v58, 4 }
  0x45   : > { %5175 = vmatmul.mubr.msk.bf16.gmra.mxu1 %vm331_vm2, %v5565_v36  ;;  %5230 = vmatprep.subr.bf16.mxu0 %v5691_v1  ;;  %v4536_v36 = vld [vmem:[%s5772_s10 + $0xc4] sm:$0x1]  ;;  %v696_v49 = vor.u32 %v695_v30, %v692_v24  ;;  %v1203_v24 = vshll.u32 %v4542_v15, 16  ;;  %v1211_v30 = vshll.u32 %v4543_v18, 16  ;;  %v5990_v15 = vld [vmem:[%s5772_s10 + $0x118] sm:$0xf] }
  0x46   : > { %5178 = vmatprep.mubr.msk.bf16.mxu1 %vm5692_vm1, %v5691_v1  ;;  %v1161_v47 = vshll.u32 %v4536_v36, 16  ;;  %v1136_v54 = vsel %vm5836_vm5, %v1131_v33, %v1135_v31  ;;  %v1222_v31 = vshrl.u32 %v4545_v19, 16  ;;  %v1225_v33 = vshll.u32 %v4545_v19, 16 }
  0x47   : > { %v697_v3 = vrot.slane %v696_v49, 4  ;;  %v1191_v36 = vrot.slane %v1189_v22, 5  ;;  %v1213_v43 = vrot.slane %v1211_v30, 5  ;;  %v4572_v49 = vld [vmem:[%s6953_s1 + $0x18] sm:$0xf]  ;;  %v1857_v22 = vsel %vm347_vm0, %v4624_v14, 0 }
  0x48   : > { %v1163_v4 = vrot.slane %v1161_v47, 5  ;;  %v1224_v44 = vrot.slane %v1222_v31, 4  ;;  %v1227_v45 = vrot.slane %v1225_v33, 5  ;;  %v4510_v47 = vld [vmem:[%s5772_s10 + $0x108] sm:$0xf]  ;;  %v4523_v33 = vcombine.low %v5867_v27, %v6004_v29 }
  0x49   : > { %v702_v17 = vsel %vm5836_vm5, %v697_v3, %v701_v63 }
  0x4a   : > { %v1164_v25 = vsel %vm5836_vm5, %v1159_v12, %v1163_v4  ;;  %v1228_v63 = vor.u32 %v1227_v45, %v1224_v44  ;;  %v5579_v44 = vld [vmem:[%s5772_s10 + $0x80] ss:$8 sps:$4 sm:$0xff]  }
  0x4b   : > { %5149 = vmatmul.mubr.msk.bf16.gmra.mxu0 %vm331_vm2, %v4480_v53  ;;  %v674_v53 = vsel %vm5836_vm5, %v669_v11, %v5887_v57  ;;  %v1150_v57 = vsel %vm5836_vm5, %v1145_v46, %v1149_v35  ;;  %v1187_v35 = vrot.slane %v1186_v21, 4  ;;  %v4553_v39 = vcombine.low %v1164_v25, %v1178_v28  ;;  %v4549_v46 = vld [vmem:[%s5772_s10 + $0xf8] sm:$0xf] }
  0x4c   : > { %5152 = vmatprep.mubr.msk.bf16.mxu0 %vm5692_vm1, %v5691_v1  ;;  %v4482_v0 = vcombine.low %v660_v52, %v674_v53  ;;  %v4552_v11 = vcombine.low %v1136_v54, %v1150_v57  ;;  %v1217_v53 = vshll.u32 %v4544_v40, 16  ;;  %v1250_v60 = vshrl.u32 %v4549_v46, 16  ;;  %v4519_v40 = vld [vmem:[%s5772_s10 + $0x150] sm:$0xf]  ;;  %v5576_v45 = vld [vmem:[%s5772_s10 + $0x18] ss:$8 sps:$4 sm:$0xff]  }
  0x4d   : > { %5179 = vmatmul.mubr.msk.bf16.gmra.mxu1 %vm331_vm2, %v5566_v2  ;;  %v683_v2 = vrot.slane %v682_v48, 4  ;;  %v5964_v48 = vld [vmem:[%s5772_s10 + $0x110] sm:$0xf]  ;;  %v1192_v51 = vsel %vm5836_vm5, %v1187_v35, %v1191_v36  ;;  %v1253_v61 = vshll.u32 %v4549_v46, 16  ;;  %v1231_v54 = vshll.u32 %v4546_v50, 16 }
  0x4e   : > { %5182 = vmatprep.mubr.msk.bf16.mxu1 %vm5692_vm1, %v5691_v1  ;;  %v4521_v57 = vcombine.low %v4510_v47, %v5964_v48  ;;  %v1219_v4 = vrot.slane %v1217_v53, 5  ;;  %v1252_v8 = vrot.slane %v1250_v60, 4  ;;  %v6019_v35 = vld [vmem:[%s5772_s10 + $0x138] sm:$0xf]  ;;  %v6022_v36 = vld [vmem:[%s5772_s10 + $0x140] sm:$0xf] }
  0x4f   : > { %v688_v16 = vsel %vm5836_vm5, %v683_v2, %v687_v62  ;;  %v1214_v62 = vor.u32 %v1213_v43, %v1210_v42  ;;  %v1438_v2 = vsel %vm347_vm0, %v4572_v49, 0  ;;  %v1255_v9 = vrot.slane %v1253_v61, 5  ;;  %v5577_v42 = vld [vmem:[%s5772_s10 + $0x70] ss:$8 sps:$4 sm:$0xff]   ;;  %v4604_v49 = vld [vmem:[%s5772_s10 + $0x8] sm:$0xf] }
  0x50   : > { %v4483_v34 = vcombine.low %v688_v16, %v702_v17  ;;  %v1233_v12 = vrot.slane %v1231_v54, 5  ;;  %v1242_v16 = vor.u32 %v1241_v7, %v1238_v6  ;;  %v1247_v17 = vrot.slane %v1245_v5, 5  ;;  %v5574_v43 = vld [vmem:[%s5772_s10 + $0x8] ss:$8 sps:$4 sm:$0xff]  }
  0x51   : > { %v1215_v10 = vrot.slane %v1214_v62, 4  ;;  %v1256_v18 = vor.u32 %v1255_v9, %v1252_v8  ;;  %v5581_v46 = vld [vmem:[%s5772_s10 + $0x90] ss:$8 sps:$4 sm:$0xff]   ;;  %v5583_v50 = vld [vmem:[%s5772_s10 + $0xa0] ss:$8 sps:$4 sm:$0xff]   ;;  %v1688_v53 = vshll.u32 %v4604_v49, 16 }
  0x52   : > { %v1243_v25 = vrot.slane %v1242_v16, 4  ;;  %v5578_v47 = vld [vmem:[%s5772_s10 + $0x28] ss:$8 sps:$4 sm:$0xff]   ;;  %v4605_v62 = vld [vmem:[%s5772_s10 + $0xc] sm:$0x1] }
  0x53   : > { %5153 = vmatmul.mubr.msk.bf16.gmra.mxu0 %vm331_vm2, %v4481_v37  ;;  %v1201_v37 = vrot.slane %v1200_v23, 4  ;;  %v1220_v19 = vsel %vm5836_vm5, %v1215_v10, %v1219_v4  ;;  %v4522_v23 = vcombine.low %v5990_v15, %v5864_v26  ;;  %v1257_v28 = vrot.slane %v1256_v18, 4  ;;  %v4612_v18 = vld [vmem:[%s5772_s10 + $0x28] sm:$0xf] }
  0x54   : > { %5156 = vmatprep.mubr.msk.bf16.mxu0 %vm5692_vm1, %v5691_v1  ;;  %v1248_v30 = vsel %vm5836_vm5, %v1243_v25, %v1247_v17  ;;  %v1690_v61 = vrot.slane %v1688_v53, 5  ;;  %v1694_v4 = vshll.u32 %v4605_v62, 16  ;;  %v1741_v25 = vshrl.u32 %v4612_v18, 16  ;;  %v5588_v26 = vld [vmem:[%s6955_s3 + $0x68] sm:$0xff]  }
  0x55   : > { %5183 = vmatmul.mubr.msk.bf16.gmra.mxu1 %vm331_vm2, %v5567_v38  ;;  %v1205_v38 = vrot.slane %v1203_v24, 5 }
  0x56   : > { %5210 = vmatprep.mubr.msk.bf16.mxu1 %vm5692_vm1, %v5691_v1  ;;  %v1696_v14 = vrot.slane %v1694_v4, 5 }
  0x57   : > { %v1206_v52 = vsel %vm5836_vm5, %v1201_v37, %v1205_v38  ;;  %v4524_v37 = vcombine.low %v6019_v35, %v6022_v36  ;;  %v5575_v38 = vld [vmem:[%s5772_s10 + $0x60] ss:$8 sps:$4 sm:$0xff]  }
  0x58   : > { %v4554_v3 = vcombine.low %v1192_v51, %v1206_v52  ;;  %v4606_v51 = vld [vmem:[%s5772_s10 + $0x10] sm:$0xf]  ;;  %v1685_v52 = vshrl.u32 %v4604_v49, 16  ;;  %v4615_v49 = vld [vmem:[%s5772_s10 + $0x34] sm:$0x1] }
  0x59   : > { %v1699_v56 = vshrl.u32 %v4606_v51, 16  ;;  %v1702_v58 = vshll.u32 %v4606_v51, 16  ;;  %v1764_v62 = vshll.u32 %v4615_v49, 16 }
  0x5a   : > { %v1687_v60 = vrot.slane %v1685_v52, 4 }
  0x5b   : > { %5157 = vmatmul.mubr.msk.bf16.gmra.mxu0 %vm331_vm2, %v4482_v0  ;;  %v4550_v0 = vld [vmem:[%s5772_s10 + $0xfc] sm:$0x1]  ;;  %v1704_v54 = vrot.slane %v1702_v58, 5  ;;  %v4618_v58 = vld [vmem:[%s5772_s10 + $0x40] sm:$0xf] }
  0x5c   : > { %5160 = vmatprep.mubr.msk.bf16.mxu0 %vm5692_vm1, %v5691_v1  ;;  %v1259_v13 = vshll.u32 %v4550_v0, 16  ;;  %v4607_v0 = vld [vmem:[%s5772_s10 + $0x14] sm:$0x1] }
  0x5d   : > { %5211 = vmatmul.mubr.msk.bf16.vlgmr.msra.gmra.mxu1 %vm331_vm2, %v4552_v11  ;;  %v1229_v11 = vrot.slane %v1228_v63, 4  ;;  %v1701_v63 = vrot.slane %v1699_v56, 4  ;;  %v1708_v8 = vshll.u32 %v4607_v0, 16  ;;  %v4616_v56 = vld [vmem:[%s5772_s10 + $0x38] sm:$0xf] }
  0x5e   : > { %5214 = vmatprep.mubr.msk.bf16.mxu1 %vm5692_vm1, %v5691_v1  ;;  %5253 = vmatpush3.bf16.msra.mxu1 %v1579_v20  ;;  %v1261_v21 = vrot.slane %v1259_v13, 5 }
  0x5f   : > { %v1234_v20 = vsel %vm5836_vm5, %v1229_v11, %v1233_v12  ;;  %v1705_v7 = vor.u32 %v1704_v54, %v1701_v63  ;;  %v5582_v11 = vld [vmem:[%s5772_s10 + $0x48] ss:$8 sps:$4 sm:$0xff]   ;;  %v4609_v12 = vld [vmem:[%s5772_s10 + $0x1c] sm:$0x1]  ;;  %v1769_v63 = vshrl.u32 %v4616_v56, 16  ;;  %v1772_v54 = vshll.u32 %v4616_v56, 16 }
  0x60   : > { %v4555_v24 = vcombine.low %v1220_v19, %v1234_v20  ;;  %v1262_v31 = vsel %vm5836_vm5, %v1257_v28, %v1261_v21  ;;  %v1710_v20 = vrot.slane %v1708_v8, 5  ;;  %v4611_v21 = vld [vmem:[%s5772_s10 + $0x24] sm:$0x1]  ;;  %v1744_v28 = vshll.u32 %v4612_v18, 16 }
  0x61   : > { %v1706_v19 = vrot.slane %v1705_v7, 4  ;;  %v4617_v7 = vld [vmem:[%s5772_s10 + $0x3c] sm:$0x1]  ;;  %v4619_v8 = vld [vmem:[%s5772_s10 + $0x44] sm:$0x1] }
  0x63   : > { %5161 = vmatmul.mubr.msk.bf16.gmra.mxu0 %vm331_vm2, %v4483_v34  ;;  %v4556_v34 = vcombine.low %v1248_v30, %v1262_v31 }
  0x64   : > { %5188 = vmatprep.mubr.msk.bf16.mxu0 %vm5692_vm1, %v5691_v1 }
  0x65   : > { %5215 = vmatmul.mubr.msk.bf16.gmra.mxu1 %vm331_vm2, %v4553_v39  ;;  %v6034_v39 = vld [vmem:[%s5772_s10 + $0x148] sm:$0xf] }
  0x66   : > { %5218 = vmatprep.mubr.msk.bf16.mxu1 %vm5692_vm1, %v5691_v1  ;;  %v4525_v41 = vcombine.low %v6034_v39, %v4519_v40 }
  0x6b   : > { %5189 = vmatmul.mubr.msk.bf16.vlgmr.msra.gmra.mxu0 %vm331_vm2, %v4521_v57  ;;  %v4608_v57 = vld [vmem:[%s5772_s10 + $0x18] sm:$0xf] }
  0x6c   : > { %5231 = vmatpush3.bf16.msra.mxu0 %v1438_v2  ;;  %5192 = vmatprep.mubr.msk.bf16.mxu0 %vm5692_vm1, %v5691_v1  ;;  %v4610_v2 = vld [vmem:[%s5772_s10 + $0x20] sm:$0xf]  ;;  %v1713_v5 = vshrl.u32 %v4608_v57, 16  ;;  %v1716_v6 = vshll.u32 %v4608_v57, 16 }
  0x6d   : > { %5219 = vmatmul.mubr.msk.bf16.gmra.mxu1 %vm331_vm2, %v4554_v3  ;;  %5274 = vmatprep.subr.bf16.mxu0 %v5691_v1  ;;  %v1691_v3 = vor.u32 %v1690_v61, %v1687_v60  ;;  %v1727_v9 = vshrl.u32 %v4610_v2, 16  ;;  %v1730_v10 = vshll.u32 %v4610_v2, 16  ;;  %v1783_v2 = vshrl.u32 %v4618_v58, 16 }
  0x6e   : > { %5222 = vmatprep.mubr.msk.bf16.mxu1 %vm5692_vm1, %v5691_v1  ;;  %v1715_v16 = vrot.slane %v1713_v5, 4  ;;  %v1718_v17 = vrot.slane %v1716_v6, 5 }
  0x6f   : > { %v1692_v13 = vrot.slane %v1691_v3, 4  ;;  %v1786_v3 = vshll.u32 %v4618_v58, 16 }
  0x70   : > { %v1719_v31 = vor.u32 %v1718_v17, %v1715_v16  ;;  %v4620_v16 = vld [vmem:[%s5772_s10 + $0x48] sm:$0xf]  ;;  %v4622_v17 = vld [vmem:[%s5772_s10 + $0x50] sm:$0xf] }
  0x71   : > { %v1697_v30 = vsel %vm5836_vm5, %v1692_v13, %v1696_v14  ;;  %v1785_v13 = vrot.slane %v1783_v2, 4  ;;  %v1788_v14 = vrot.slane %v1786_v3, 5 }
  0x73   : > { %5193 = vmatmul.mubr.msk.bf16.gmra.mxu0 %vm331_vm2, %v4522_v23  ;;  %v1732_v23 = vrot.slane %v1730_v10, 5  ;;  %v1774_v10 = vrot.slane %v1772_v54, 5 }
  0x74   : > { %5196 = vmatprep.mubr.msk.bf16.mxu0 %vm5692_vm1, %v5691_v1 }
  0x75   : > { %5223 = vmatmul.mubr.msk.bf16.gmra.mxu1 %vm331_vm2, %v4555_v24  ;;  %v4614_v24 = vld [vmem:[%s5772_s10 + $0x30] sm:$0xf] }
  0x76   : > { %5226 = vmatprep.mubr.msk.bf16.mxu1 %vm5692_vm1, %v5691_v1  ;;  %v1755_v40 = vshrl.u32 %v4614_v24, 16 }
  0x78   : > { %v1757_v52 = vrot.slane %v1755_v40, 4 }
  0x7b   : > { %5197 = vmatmul.mubr.msk.bf16.gmra.mxu0 %vm331_vm2, %v4523_v33  ;;  %v1722_v33 = vshll.u32 %v4609_v12, 16  ;;  %v1766_v12 = vrot.slane %v1764_v62, 5 }
  0x7c   : > { %5200 = vmatprep.mubr.msk.bf16.mxu0 %vm5692_vm1, %v5691_v1 }
  0x7d   : > { %5227 = vmatmul.mubr.msk.bf16.gmra.mxu1 %vm331_vm2, %v4556_v34  ;;  %v1736_v34 = vshll.u32 %v4611_v21, 16  ;;  %v1792_v21 = vshll.u32 %v4619_v8, 16 }
  0x7e   : > { %5254 = vmatprep.mubr.msk.bf16.mxu1 %vm5692_vm1, %v5691_v1 }
  0x7f   : > { %v1738_v51 = vrot.slane %v1736_v34, 5 }
  0x83   : > { %5201 = vmatmul.mubr.msk.bf16.gmra.mxu0 %vm331_vm2, %v4524_v37  ;;  %v1711_v37 = vsel %vm5836_vm5, %v1706_v19, %v1710_v20  ;;  %v1778_v19 = vshll.u32 %v4617_v7, 16 }
  0x84   : > { %5204 = vmatprep.mubr.msk.bf16.mxu0 %vm5692_vm1, %v5691_v1 }
  0x85   : > { %5255 = vmatmul.mubr.msk.bf16.vlgmr.msra.gmra.mxu1 %vm331_vm2, %v5575_v38 }
  0x86   : > { %5258 = vmatprep.mubr.msk.bf16.mxu1 %vm5692_vm1, %v5691_v1 }
  0x8b   : > { %5205 = vmatmul.mubr.msk.bf16.gmra.mxu0 %vm331_vm2, %v4525_v41  ;;  %v1758_v41 = vshll.u32 %v4614_v24, 16 }
  0x8c   : > { %5232 = vmatprep.mubr.msk.bf16.mxu0 %vm5692_vm1, %v5691_v1 }
  0x8d   : > { %5259 = vmatmul.mubr.msk.bf16.gmra.mxu1 %vm331_vm2, %v5577_v42  ;;  %v1743_v42 = vrot.slane %v1741_v25, 4  ;;  %v1760_v53 = vrot.slane %v1758_v41, 5  ;;  %v1789_v25 = vor.u32 %v1788_v14, %v1785_v13  ;;  %v4621_v41 = vld [vmem:[%s5772_s10 + $0x4c] sm:$0x1] }
  0x8e   : > { %5262 = vmatprep.mubr.msk.bf16.mxu1 %vm5692_vm1, %v5691_v1 }
  0x8f   : > { %v1761_v0 = vor.u32 %v1760_v53, %v1757_v52  ;;  %v1790_v40 = vrot.slane %v1789_v25, 4 }
  0x93   : > { %5233 = vmatmul.mubr.msk.bf16.vlgmr.msra.gmra.mxu0 %vm331_vm2, %v5574_v43  ;;  %v1746_v43 = vrot.slane %v1744_v28, 5  ;;  %v1811_v28 = vshrl.u32 %v4622_v17, 16 }
  0x94   : > { %5275 = vmatpush3.bf16.msra.mxu0 %v1857_v22  ;;  %5236 = vmatprep.mubr.msk.bf16.mxu0 %vm5692_vm1, %v5691_v1  ;;  %v1729_v22 = vrot.slane %v1727_v9, 4  ;;  %v1771_v9 = vrot.slane %v1769_v63, 4 }
  0x95   : > { %5263 = vmatmul.mubr.msk.bf16.gmra.mxu1 %vm331_vm2, %v5579_v44  ;;  %v4625_v44 = vcombine.low %v1697_v30, %v1711_v37  ;;  %v1814_v30 = vshll.u32 %v4622_v17, 16  ;;  %v1794_v37 = vrot.slane %v1792_v21, 5 }
  0x96   : > { %5266 = vmatprep.mubr.msk.bf16.mxu1 %vm5692_vm1, %v5691_v1  ;;  %v1733_v38 = vor.u32 %v1732_v23, %v1729_v22  ;;  %v1775_v20 = vor.u32 %v1774_v10, %v1771_v9  ;;  %v1797_v22 = vshrl.u32 %v4620_v16, 16  ;;  %v1800_v23 = vshll.u32 %v4620_v16, 16 }
  0x97   : > { %v1795_v49 = vsel %vm5836_vm5, %v1790_v40, %v1794_v37 }
  0x98   : > { %v1776_v34 = vrot.slane %v1775_v20, 4 }
  0x9b   : > { %5237 = vmatmul.mubr.msk.bf16.gmra.mxu0 %vm331_vm2, %v5576_v45  ;;  %v1720_v45 = vrot.slane %v1719_v31, 4  ;;  %v1780_v31 = vrot.slane %v1778_v19, 5 }
  0x9c   : > { %5240 = vmatprep.mubr.msk.bf16.mxu0 %vm5692_vm1, %v5691_v1 }
  0x9d   : > { %5267 = vmatmul.mubr.msk.bf16.gmra.mxu1 %vm331_vm2, %v5581_v46  ;;  %v1724_v46 = vrot.slane %v1722_v33, 5 }
  0x9e   : > { %5270 = vmatprep.mubr.msk.bf16.mxu1 %vm5692_vm1, %v5691_v1 }
  0x9f   : > { %v1725_v61 = vsel %vm5836_vm5, %v1720_v45, %v1724_v46  ;;  %v4623_v45 = vld [vmem:[%s5772_s10 + $0x54] sm:$0x1]  ;;  %v1781_v46 = vsel %vm5836_vm5, %v1776_v34, %v1780_v31 }
  0xa0   : > { %v1820_v52 = vshll.u32 %v4623_v45, 16  ;;  %v4628_v53 = vcombine.low %v1781_v46, %v1795_v49 }
  0xa3   : > { %5241 = vmatmul.mubr.msk.bf16.gmra.mxu0 %vm331_vm2, %v5578_v47  ;;  %v4613_v47 = vld [vmem:[%s5772_s10 + $0x2c] sm:$0x1] }
  0xa4   : > { %5244 = vmatprep.mubr.msk.bf16.mxu0 %vm5692_vm1, %v5691_v1  ;;  %v1750_v60 = vshll.u32 %v4613_v47, 16  ;;  %v1806_v47 = vshll.u32 %v4621_v41, 16 }
  0xa5   : > { %5271 = vmatmul.mubr.msk.bf16.gmra.mxu1 %vm331_vm2, %v5583_v50  ;;  %v1734_v50 = vrot.slane %v1733_v38, 4  ;;  %v1799_v38 = vrot.slane %v1797_v22, 4 }
  0xa6   : > { %v1752_v5 = vrot.slane %v1750_v60, 5  ;;  %v1808_v58 = vrot.slane %v1806_v47, 5  ;;  %v1822_v60 = vrot.slane %v1820_v52, 5 }
  0xa7   : > { %v1739_v57 = vsel %vm5836_vm5, %v1734_v50, %v1738_v51 }
  0xa8   : > { %v4626_v6 = vcombine.low %v1725_v61, %v1739_v57 }
  0xab   : > { %5245 = vmatmul.mubr.msk.bf16.gmra.mxu0 %vm331_vm2, %v5580_v59  ;;  %v1747_v59 = vor.u32 %v1746_v43, %v1743_v42  ;;  %v1802_v42 = vrot.slane %v1800_v23, 5  ;;  %v1813_v43 = vrot.slane %v1811_v28, 4 }
  0xac   : > { %5248 = vmatprep.mubr.msk.bf16.mxu0 %vm5692_vm1, %v5691_v1 }
  0xad   : > { %v1748_v4 = vrot.slane %v1747_v59, 4  ;;  %v1803_v50 = vor.u32 %v1802_v42, %v1799_v38 }
  0xaf   : > { %v1753_v18 = vsel %vm5836_vm5, %v1748_v4, %v1752_v5  ;;  %v1804_v56 = vrot.slane %v1803_v50, 4  ;;  %v2062_v4 = vld [vmem:[%s6957_s5] sm:$0xf] }
  0xb0   : > { %5524 = vmatprep.subr.msk.bf16.mxu1 %vm347_vm0, %v2062_v4 }
  0xb1   : > { %v1809_v62 = vsel %vm5836_vm5, %v1804_v56, %v1808_v58  ;;  %v4637_v58 = vcombine.low %v5964_v48, %v5990_v15 }
  0xb3   : > { %5249 = vmatmul.mubr.msk.bf16.gmra.mxu0 %vm331_vm2, %v5582_v11  ;;  %v1762_v11 = vrot.slane %v1761_v0, 4  ;;  %5298 = vmatprep.mubr.msk.bf16.mxu1 %vm331_vm2, %v4637_v58 }
  0xb4   : > { %5276 = vmatprep.mubr.msk.bf16.mxu0 %vm5692_vm1, %v5691_v1 }
  0xb5   : > { %v1767_v24 = vsel %vm5836_vm5, %v1762_v11, %v1766_v12 }
  0xb6   : > { %v4627_v33 = vcombine.low %v1753_v18, %v1767_v24 }
  0xbb   : > { %5277 = vmatmul.mubr.msk.bf16.vlgmr.msra.gmra.mxu0 %vm331_vm2, %v4625_v44  ;;  %v1816_v44 = vrot.slane %v1814_v30, 5 }
  0xbc   : > { %5280 = vmatprep.mubr.msk.bf16.mxu0 %vm5692_vm1, %v5691_v1 }
  0xbd   : > { %v1817_v51 = vor.u32 %v1816_v44, %v1813_v43 }
  0xbf   : > { %v1818_v59 = vrot.slane %v1817_v51, 4 }
  0xc1   : > { %v1823_v63 = vsel %vm5836_vm5, %v1818_v59, %v1822_v60 }
  0xc2   : > { %v4629_v2 = vcombine.low %v1809_v62, %v1823_v63 }
  0xc3   : > { %5281 = vmatmul.mubr.msk.bf16.gmra.mxu0 %vm331_vm2, %v4626_v6 }
  0xc4   : > { %5284 = vmatprep.mubr.msk.bf16.mxu0 %vm5692_vm1, %v5691_v1 }
  0xcb   : > { %5285 = vmatmul.mubr.msk.bf16.gmra.mxu0 %vm331_vm2, %v4627_v33 }
  0xcc   : > { %5288 = vmatprep.mubr.msk.bf16.mxu0 %vm5692_vm1, %v5691_v1 }
  0xd3   : > { %v6126_v61 = vpop.f32.mrf.mxu0  ;;  %5289 = vmatmul.mubr.msk.bf16.gmra.mxu0 %vm331_vm2, %v4628_v53  ;;  %v5584_v53 = vld [vmem:[%s6955_s3 + $0x78] sm:$0xff]  }
  0xd4   : > { %5292 = vmatprep.mubr.msk.bf16.mxu0 %vm5692_vm1, %v5691_v1  ;;  %v2087_v1 = vsel %vm347_vm0, %v2062_v4, 0  ;;  %5330 = vmatprep.subr.bf16.mxu0 %v5584_v53 }
  0xd5   : > { %v5102_v54 = vpop.f32.mrf.mxu0  ;;  %v509_v57 = vpop.f32.mrf.mxu1  ;;  %5297 = vmatpush3.bf16.msra.mxu1 %v2087_v1  ;;  %5331 = vmatpush3.bf16.msra.mxu0 %v5584_v53  ;;  %v1998_v53 = vld [vmem:[#allocation2 + $0x18] sm:$0x8] }
  0xd6   : > { %v5586_v54 = vld [vmem:[%s6955_s3 + $0x70] sm:$0xff]  }
  0xd7   : > { %v6135_v0 = vpop.f32.mrf.mxu0  ;;  %v5128_v3 = vpop.f32.mrf.mxu1  ;;  %5332 = vmatprep.subr.bf16.mxu0 %v5586_v54 }
  0xd8   : > { %5299 = vmatmul.mubr.msk.bf16.vlgmr.msra.gmra.mxu1 %vm331_vm2, %v4638_v32 }
  0xd9   : > { %v5103_v5 = vpop.f32.mrf.mxu0  ;;  %v512_v6 = vpop.f32.mrf.mxu1  ;;  %5333 = vmatpush3.bf16.msra.mxu0 %v5586_v54  ;;  %v4639_v54 = vcombine.low %v6004_v29, %v6019_v35  ;;  %v5600_v29 = vld [vmem:[%s6955_s3 + $0x10] sm:$0xff]  }
  0xda   : > { %5334 = vmatprep.subr.bf16.mxu0 %v5588_v26  ;;  %v5589_v5 = vld [vmem:[%s6955_s3 + $0x30] sm:$0xff]  }
  0xdb   : > { %v393_v7 = vpop.f32.mrf.mxu0  ;;  %5293 = vmatmul.mubr.msk.bf16.gmra.mxu0 %vm331_vm2, %v4629_v2  ;;  %v5129_v8 = vpop.f32.mrf.mxu1  ;;  %v5587_v2 = vld [vmem:[%s6955_s3 + $0x38] sm:$0xff]   ;;  %5302 = vmatprep.mubr.msk.bf16.mxu1 %vm331_vm2, %v4639_v54 }
  0xdc   : > { %v6143_v9 = vadd.f32 %v509_v57, %v393_v7  ;;  %5306 = vmatprep.subr.bf16.mxu1 %v5587_v2  ;;  %v5590_v7 = vld [vmem:[%s6955_s3 + $0x60] sm:$0xff]  }
  0xdd   : > { %v5106_v10 = vpop.f32.mrf.mxu0  ;;  %v517_v11 = vpop.f32.mrf.mxu1  ;;  %5307 = vmatpush3.bf16.msra.mxu1 %v5587_v2  ;;  %5335 = vmatpush3.bf16.msra.mxu0 %v5588_v26  ;;  %v4640_v2 = vcombine.low %v6022_v36, %v6034_v39 }
  0xde   : > { %5308 = vmatprep.subr.bf16.mxu1 %v5589_v5  ;;  %5336 = vmatprep.subr.bf16.mxu0 %v5590_v7 }
  0xdf   : > { %v396_v12 = vpop.f32.mrf.mxu0  ;;  %v5132_v13 = vpop.f32.mrf.mxu1 }
  0xe0   : > { %v6145_v14 = vadd.f32 %v512_v6, %v396_v12  ;;  %v5591_v12 = vld [vmem:[%s6955_s3 + $0x28] sm:$0xff]   ;;  %5303 = vmatmul.mubr.msk.bf16.gmra.mxu1 %vm331_vm2, %v4640_v2 }
  0xe1   : > { %v5107_v16 = vpop.f32.mrf.mxu0  ;;  %v520_v17 = vpop.f32.mrf.mxu1  ;;  %5309 = vmatpush3.bf16.msra.mxu1 %v5589_v5  ;;  %5337 = vmatpush3.bf16.msra.mxu0 %v5590_v7 }
  0xe2   : > { %5310 = vmatprep.subr.bf16.mxu1 %v5591_v12 }
  0xe3   : > { %v401_v18 = vpop.f32.mrf.mxu0  ;;  %v5133_v19 = vpop.f32.mrf.mxu1 }
  0xe4   : > { %v6147_v20 = vadd.f32 %v517_v11, %v401_v18 }
  0xe5   : > { %v5110_v21 = vpop.f32.mrf.mxu0  ;;  %v525_v22 = vpop.f32.mrf.mxu1  ;;  %5311 = vmatpush3.bf16.msra.mxu1 %v5591_v12 }
  0xe7   : > { %v404_v23 = vpop.f32.mrf.mxu0  ;;  %v5136_v24 = vpop.f32.mrf.mxu1 }
  0xe8   : > { %v6149_v25 = vadd.f32 %v520_v17, %v404_v23  ;;  %v5592_v17 = vld [vmem:[%s6955_s3 + $0x58] sm:$0xff]   ;;  %v1992_v23 = vld [vmem:[#allocation2] sm:$0x8]  ;;  %v1995_v24 = vld [vmem:[#allocation2 + $0xc] sm:$0x8] }
  0xe9   : > { %v5111_v28 = vpop.f32.mrf.mxu0  ;;  %v528_v30 = vpop.f32.mrf.mxu1  ;;  %5338 = vmatprep.subr.bf16.mxu0 %v5592_v17 }
  0xea   : > { %5339 = vmatpush3.bf16.msra.mxu0 %v5592_v17 }
  0xeb   : > { %v409_v31 = vpop.f32.mrf.mxu0  ;;  %v5137_v33 = vpop.f32.mrf.mxu1 }
  0xec   : > { %v6151_v34 = vadd.f32 %v525_v22, %v409_v31  ;;  %v1993_v31 = vsel %vm6202_vm8, 0, %v1992_v23  ;;  %v1996_v33 = vsel %vm6202_vm8, 0, %v1995_v24  ;;  %v5605_v23 = vld [vmem:[%s6955_s3] sm:$0xff]  }
  0xed   : > { %v5114_v37 = vpop.f32.mrf.mxu0  ;;  %v533_v38 = vpop.f32.mrf.mxu1  ;;  %1994 = vst [vmem:[#allocation2] sm:$0x8] %v1993_v31  ;;  %1997 = vst [vmem:[#allocation2 + $0xc] sm:$0x8] %v1996_v33  ;;  %v2010_v33 = vld [vmem:[#allocation2 + $0x48] sm:$0x8] }
  0xef   : > { %v412_v40 = vpop.f32.mrf.mxu0  ;;  %v5140_v41 = vpop.f32.mrf.mxu1 }
  0xf0   : > { %v6153_v42 = vadd.f32 %v528_v30, %v412_v40  ;;  %v5593_v30 = vld [vmem:[%s6955_s3 + $0x20] sm:$0xff]   ;;  %v5594_v40 = vld [vmem:[%s6955_s3 + $0x50] sm:$0xff]  }
  0xf1   : > { %v5115_v43 = vpop.f32.mrf.mxu0  ;;  %v536_v44 = vpop.f32.mrf.mxu1  ;;  %5312 = vmatprep.subr.bf16.mxu1 %v5593_v30  ;;  %5340 = vmatprep.subr.bf16.mxu0 %v5594_v40 }
  0xf2   : > { %5313 = vmatpush3.bf16.msra.mxu1 %v5593_v30  ;;  %5341 = vmatpush3.bf16.msra.mxu0 %v5594_v40 }
  0xf3   : > { %v417_v45 = vpop.f32.mrf.mxu0  ;;  %v5141_v46 = vpop.f32.mrf.mxu1 }
  0xf4   : > { %v6155_v47 = vadd.f32 %v533_v38, %v417_v45  ;;  %v2028_v45 = vld [vmem:[#allocation2 + $0x14] sm:$0x1] }
  0xf5   : > { %v5118_v49 = vpop.f32.mrf.mxu0  ;;  %v913_v50 = vpop.f32.mrf.mxu1 }
  0xf7   : > { %v420_v51 = vpop.f32.mrf.mxu0  ;;  %v5168_v52 = vpop.f32.mrf.mxu1 }
  0xf8   : > { %v6160_v56 = vadd.f32 %v536_v44, %v420_v51  ;;  %v2025_v44 = vld [vmem:[#allocation2 + $0x8] sm:$0x1]  ;;  %v2029_v51 = vsel %vm6220_vm11, 0, %v2028_v45  ;;  %v5595_v52 = vld [vmem:[%s6955_s3 + $0x18] sm:$0xff]  }
  0xf9   : > { %v5119_v59 = vpop.f32.mrf.mxu0  ;;  %v916_v60 = vpop.f32.mrf.mxu1  ;;  %2030 = vst [vmem:[#allocation2 + $0x14] sm:$0x1] %v2029_v51  ;;  %5314 = vmatprep.subr.bf16.mxu1 %v5595_v52  ;;  %v6299_v45 = vld [vmem:[%s6955_s3 + $0xb8] sm:$0xff]   ;;  %v2013_v51 = vld [vmem:[#allocation2 + $0x54] sm:$0x8] }
  0xfa   : > { %5315 = vmatpush3.bf16.msra.mxu1 %v5595_v52 }
  0xfb   : > { %v501_v62 = vpop.f32.mrf.mxu0  ;;  %v5169_v63 = vpop.f32.mrf.mxu1  ;;  %5316 = vmatprep.subr.bf16.mxu1 %v5600_v29 }
  0xfc   : > { %v502_v57 = vadd.f32 %v501_v62, %v6126_v61  ;;  %v1999_v62 = vsel %vm6202_vm8, 0, %v1998_v53 }
  0xfd   : > { %v5124_v48 = vpop.f32.mrf.mxu0  ;;  %v6173_v15 = vpop.f32.mrf.mxu1  ;;  %2000 = vst [vmem:[#allocation2 + $0x18] sm:$0x8] %v1999_v62 }
  0xfe   : > { %5317 = vmatpush3.bf16.msra.mxu1 %v5600_v29 }
  0xff   : > { %v504_v3 = vpop.f32.mrf.mxu0  ;;  %v5172_v4 = vpop.f32.mrf.mxu1 }
 0x100   : > { %v505_v27 = vadd.f32 %v504_v3, %v6135_v0 }
 0x101   : > { %v5125_v32 = vpop.f32.mrf.mxu0  ;;  %v6182_v61 = vpop.f32.mrf.mxu1 }
 0x103   : > { %v772_v6 = vpop.f32.mrf.mxu0  ;;  %v5173_v1 = vpop.f32.mrf.mxu1 }
 0x104   : > { %v811_v8 = vadd.f32 %v772_v6, %v502_v57 }
 0x105   : > { %v5146_v0 = vpop.f32.mrf.mxu0  ;;  %v6190_v10 = vpop.f32.mrf.mxu1 }
 0x106   : > { %v6192_v11 = vadd.f32 %v913_v50, %v811_v8  ;;  %v2026_v50 = vsel %vm6220_vm11, 0, %v2025_v44  ;;  %v6274_v8 = vld [vmem:[%s6955_s3 + $0xf8] sm:$0xff]  }
 0x107   : > { %v775_v13 = vpop.f32.mrf.mxu0  ;;  %v5176_v16 = vpop.f32.mrf.mxu1  ;;  %2027 = vst [vmem:[#allocation2 + $0x8] sm:$0x1] %v2026_v50 }
 0x108   : > { %v812_v18 = vadd.f32 %v775_v13, %v505_v27  ;;  %v5601_v27 = vld [vmem:[%s6955_s3 + $0x40] sm:$0xff]   ;;  %v2007_v13 = vld [vmem:[#allocation2 + $0x3c] sm:$0x8] }
 0x109   : > { %v5147_v19 = vpop.f32.mrf.mxu0  ;;  %v6200_v21 = vpop.f32.mrf.mxu1 }
 0x10a   : > { %v6206_v28 = vadd.f32 %v916_v60, %v812_v18  ;;  %v5596_v60 = vld [vmem:[%s6955_s3 + $0x48] sm:$0xff]   ;;  %v2031_v18 = vld [vmem:[#allocation2 + $0x20] sm:$0x1] }
 0x10b   : > { %v780_v37 = vpop.f32.mrf.mxu0  ;;  %v5177_v38 = vpop.f32.mrf.mxu1  ;;  %5342 = vmatprep.subr.bf16.mxu0 %v5596_v60 }
 0x10c   : > { %v813_v41 = vadd.f32 %v780_v37, %v6143_v9  ;;  %5343 = vmatpush3.bf16.msra.mxu0 %v5596_v60  ;;  %v2034_v37 = vld [vmem:[#allocation2 + $0x2c] sm:$0x1] }
 0x10d   : > { %v5150_v46 = vpop.f32.mrf.mxu0  ;;  %v6224_v49 = vpop.f32.mrf.mxu1  ;;  %5344 = vmatprep.subr.bf16.mxu0 %v5601_v27 }
 0x10e   : > { %v6231_v9 = vadd.f32 %v6173_v15, %v813_v41  ;;  %v2035_v41 = vsel %vm6220_vm11, 0, %v2034_v37 }
 0x10f   : > { %v783_v58 = vpop.f32.mrf.mxu0  ;;  %v5180_v59 = vpop.f32.mrf.mxu1  ;;  %2036 = vst [vmem:[#allocation2 + $0x2c] sm:$0x1] %v2035_v41 }
 0x110   : > { %v814_v63 = vadd.f32 %v783_v58, %v6145_v14  ;;  %v2001_v14 = vld [vmem:[#allocation2 + $0x24] sm:$0x8]  ;;  %5345 = vmatpush3.bf16.msra.mxu0 %v5601_v27 }
 0x111   : > { %v5151_v57 = vpop.f32.mrf.mxu0  ;;  %v6244_v48 = vpop.f32.mrf.mxu1  ;;  %v2002_v35 = vsel %vm6202_vm8, 0, %v2001_v14  ;;  %5378 = vmatprep.subr.bf16.mxu0 %v6274_v8 }
 0x112   : > { %v6247_v15 = vadd.f32 %v6182_v61, %v814_v63  ;;  %2003 = vst [vmem:[#allocation2 + $0x24] sm:$0x8] %v2002_v35  ;;  %v2004_v61 = vld [vmem:[#allocation2 + $0x30] sm:$0x8]  ;;  %v2037_v35 = vld [vmem:[#allocation2 + $0x38] sm:$0x1] }
 0x113   : > { %v788_v3 = vpop.f32.mrf.mxu0  ;;  %v5181_v4 = vpop.f32.mrf.mxu1  ;;  %v2005_v1 = vsel %vm6202_vm8, 0, %v2004_v61  ;;  %v2038_v27 = vsel %vm6220_vm11, 0, %v2037_v35 }
 0x114   : > { %v815_v26 = vadd.f32 %v788_v3, %v6147_v20  ;;  %v5602_v20 = vld [vmem:[%s6955_s3 + $0x8] sm:$0xff]   ;;  %2006 = vst [vmem:[#allocation2 + $0x30] sm:$0x8] %v2005_v1  ;;  %2039 = vst [vmem:[#allocation2 + $0x38] sm:$0x1] %v2038_v27 }
 0x115   : > { %v5154_v36 = vpop.f32.mrf.mxu0  ;;  %v945_v39 = vpop.f32.mrf.mxu1  ;;  %5318 = vmatprep.subr.bf16.mxu1 %v5602_v20 }
 0x116   : > { %v6263_v32 = vadd.f32 %v6190_v10, %v815_v26  ;;  %5319 = vmatpush3.bf16.msra.mxu1 %v5602_v20 }
 0x117   : > { %v791_v5 = vpop.f32.mrf.mxu0  ;;  %v5184_v6 = vpop.f32.mrf.mxu1  ;;  %5320 = vmatprep.subr.bf16.mxu1 %v5605_v23 }
 0x118   : > { %v816_v7 = vadd.f32 %v791_v5, %v6149_v25  ;;  %v2008_v25 = vsel %vm6202_vm8, 0, %v2007_v13  ;;  %v2040_v5 = vld [vmem:[#allocation2 + $0x44] sm:$0x1] }
 0x119   : > { %v5155_v0 = vpop.f32.mrf.mxu0  ;;  %v948_v10 = vpop.f32.mrf.mxu1  ;;  %2009 = vst [vmem:[#allocation2 + $0x3c] sm:$0x8] %v2008_v25  ;;  %v2041_v1 = vsel %vm6220_vm11, 0, %v2040_v5 }
 0x11a   : > { %v6277_v12 = vadd.f32 %v6200_v21, %v816_v7  ;;  %v2032_v21 = vsel %vm6220_vm11, 0, %v2031_v18  ;;  %5321 = vmatpush3.bf16.msra.mxu1 %v5605_v23  ;;  %2042 = vst [vmem:[#allocation2 + $0x44] sm:$0x1] %v2041_v1 }
 0x11b   : > { %v796_v16 = vpop.f32.mrf.mxu0  ;;  %v5185_v17 = vpop.f32.mrf.mxu1  ;;  %2033 = vst [vmem:[#allocation2 + $0x20] sm:$0x1] %v2032_v21  ;;  %5354 = vmatprep.subr.bf16.mxu1 %v6299_v45 }
 0x11c   : > { %v817_v19 = vadd.f32 %v796_v16, %v6151_v34  ;;  %v2011_v34 = vsel %vm6202_vm8, 0, %v2010_v33 }
 0x11d   : > { %v5158_v24 = vpop.f32.mrf.mxu0  ;;  %v1332_v30 = vpop.f32.mrf.mxu1  ;;  %2012 = vst [vmem:[#allocation2 + $0x48] sm:$0x8] %v2011_v34 }
 0x11e   : > { %v6289_v31 = vadd.f32 %v6224_v49, %v817_v19  ;;  %v2016_v24 = vld [vmem:[#allocation2 + $0x60] sm:$0x8] }
 0x11f   : > { %v799_v38 = vpop.f32.mrf.mxu0  ;;  %v5212_v40 = vpop.f32.mrf.mxu1  ;;  %v2017_v37 = vsel %vm6202_vm8, 0, %v2016_v24  ;;  %v2019_v24 = vld [vmem:[#allocation2 + $0x6c] sm:$0x8] }
 0x120   : > { %v818_v44 = vadd.f32 %v799_v38, %v6153_v42  ;;  %v2014_v42 = vsel %vm6202_vm8, 0, %v2013_v51  ;;  %2018 = vst [vmem:[#allocation2 + $0x60] sm:$0x8] %v2017_v37 }
 0x121   : > { %v5159_v46 = vpop.f32.mrf.mxu0  ;;  %v1335_v49 = vpop.f32.mrf.mxu1  ;;  %2015 = vst [vmem:[#allocation2 + $0x54] sm:$0x8] %v2014_v42 }
 0x122   : > { %v6302_v50 = vadd.f32 %v6244_v48, %v818_v44 }
 0x123   : > { %v804_v52 = vpop.f32.mrf.mxu0  ;;  %v5213_v53 = vpop.f32.mrf.mxu1 }
 0x124   : > { %v819_v58 = vadd.f32 %v804_v52, %v6155_v47  ;;  %v2043_v52 = vld [vmem:[#allocation2 + $0x50] sm:$0x1] }
 0x125   : > { %v5162_v59 = vpop.f32.mrf.mxu0  ;;  %v1340_v60 = vpop.f32.mrf.mxu1 }
 0x126   : > { %v6308_v62 = vadd.f32 %v945_v39, %v819_v58  ;;  %v2044_v58 = vsel %vm6220_vm11, 0, %v2043_v52 }
 0x127   : > { %v807_v63 = vpop.f32.mrf.mxu0  ;;  %v5216_v54 = vpop.f32.mrf.mxu1  ;;  %2045 = vst [vmem:[#allocation2 + $0x50] sm:$0x1] %v2044_v58 }
 0x128   : > { %v820_v57 = vadd.f32 %v807_v63, %v6160_v56  ;;  %v2046_v54 = vld [vmem:[#allocation2 + $0x5c] sm:$0x1] }
 0x129   : > { %v5163_v48 = vpop.f32.mrf.mxu0  ;;  %v1343_v2 = vpop.f32.mrf.mxu1 }
 0x12a   : > { %v6311_v14 = vadd.f32 %v948_v10, %v820_v57  ;;  %v2047_v48 = vsel %vm6220_vm11, 0, %v2046_v54 }
 0x12b   : > { %v1054_v3 = vpop.f32.mrf.mxu0  ;;  %v5217_v4 = vpop.f32.mrf.mxu1  ;;  %2048 = vst [vmem:[#allocation2 + $0x5c] sm:$0x1] %v2047_v48 }
 0x12c   : > { %v1093_v29 = vadd.f32 %v1054_v3, %v6192_v11 }
 0x12d   : > { %v5190_v26 = vpop.f32.mrf.mxu0  ;;  %v1348_v47 = vpop.f32.mrf.mxu1 }
 0x12e   : > { %v6316_v36 = vadd.f32 %v1332_v30, %v1093_v29 }
 0x12f   : > { %v1057_v39 = vpop.f32.mrf.mxu0  ;;  %v5220_v61 = vpop.f32.mrf.mxu1 }
 0x130   : > { %v1094_v56 = vadd.f32 %v1057_v39, %v6206_v28 }
 0x131   : > { %v5191_v6 = vpop.f32.mrf.mxu0  ;;  %v1351_v20 = vpop.f32.mrf.mxu1 }
 0x132   : > { %v6321_v11 = vadd.f32 %v1335_v49, %v1094_v56 }
 0x133   : > { %v1062_v7 = vpop.f32.mrf.mxu0  ;;  %v5221_v0 = vpop.f32.mrf.mxu1 }
 0x134   : > { %v1095_v10 = vadd.f32 %v1062_v7, %v6231_v9 }
 0x135   : > { %v5194_v13 = vpop.f32.mrf.mxu0  ;;  %v1356_v16 = vpop.f32.mrf.mxu1 }
 0x136   : > { %v6324_v17 = vadd.f32 %v1340_v60, %v1095_v10 }
 0x137   : > { %v1065_v25 = vpop.f32.mrf.mxu0  ;;  %v5224_v18 = vpop.f32.mrf.mxu1 }
 0x138   : > { %v1096_v28 = vadd.f32 %v1065_v25, %v6247_v15 }
 0x139   : > { %v5195_v19 = vpop.f32.mrf.mxu0  ;;  %v1359_v23 = vpop.f32.mrf.mxu1 }
 0x13a   : > { %v6327_v21 = vadd.f32 %v1343_v2, %v1096_v28 }
 0x13b   : > { %v1070_v30 = vpop.f32.mrf.mxu0  ;;  %v5225_v33 = vpop.f32.mrf.mxu1 }
 0x13c   : > { %v1097_v9 = vadd.f32 %v1070_v30, %v6263_v32  ;;  %v2020_v33 = vsel %vm6202_vm8, 0, %v2019_v24 }
 0x13d   : > { %v5198_v38 = vpop.f32.mrf.mxu0  ;;  %v1364_v40 = vpop.f32.mrf.mxu1  ;;  %2021 = vst [vmem:[#allocation2 + $0x6c] sm:$0x8] %v2020_v33 }
 0x13e   : > { %v6332_v34 = vadd.f32 %v1348_v47, %v1097_v9  ;;  %v2049_v47 = vld [vmem:[#allocation2 + $0x68] sm:$0x1] }
 0x13f   : > { %v1073_v41 = vpop.f32.mrf.mxu0  ;;  %v5228_v44 = vpop.f32.mrf.mxu1  ;;  %v2050_v61 = vsel %vm6220_vm11, 0, %v2049_v47 }
 0x140   : > { %v1098_v15 = vadd.f32 %v1073_v41, %v6277_v12  ;;  %2051 = vst [vmem:[#allocation2 + $0x68] sm:$0x1] %v2050_v61 }
 0x141   : > { %v5199_v46 = vpop.f32.mrf.mxu0  ;;  %v1367_v49 = vpop.f32.mrf.mxu1 }
 0x142   : > { %v6335_v51 = vadd.f32 %v1351_v20, %v1098_v15 }
 0x143   : > { %v1078_v53 = vpop.f32.mrf.mxu0  ;;  %v5229_v42 = vpop.f32.mrf.mxu1 }
 0x144   : > { %v1099_v32 = vadd.f32 %v1078_v53, %v6289_v31 }
 0x145   : > { %v5202_v59 = vpop.f32.mrf.mxu0  ;;  %v6340_v60 = vpop.f32.mrf.mxu1 }
 0x146   : > { %v6342_v63 = vadd.f32 %v1356_v16, %v1099_v32  ;;  %v2052_v32 = vld [vmem:[#allocation2 + $0x74] sm:$0x1] }
 0x147   : > { %v1081_v12 = vpop.f32.mrf.mxu0  ;;  %v5256_v57 = vpop.f32.mrf.mxu1  ;;  %v2053_v54 = vsel %vm6220_vm11, 0, %v2052_v32 }
 0x148   : > { %v1100_v2 = vadd.f32 %v1081_v12, %v6302_v50  ;;  %2054 = vst [vmem:[#allocation2 + $0x74] sm:$0x1] %v2053_v54  ;;  %v2164_v54 = vld [vmem:[#allocation2 + $0x3c] sm:$0x8] }
 0x149   : > { %v5203_v3 = vpop.f32.mrf.mxu0  ;;  %v6347_v4 = vpop.f32.mrf.mxu1 }
 0x14a   : > { %v6349_v29 = vadd.f32 %v1359_v23, %v1100_v2 }
 0x14b   : > { %v1086_v31 = vpop.f32.mrf.mxu0  ;;  %v5257_v35 = vpop.f32.mrf.mxu1 }
 0x14c   : > { %v1101_v26 = vadd.f32 %v1086_v31, %v6308_v62  ;;  %v2154_v35 = vld [vmem:[#allocation2] sm:$0x8] }
 0x14d   : > { %v5206_v27 = vpop.f32.mrf.mxu0  ;;  %v6352_v39 = vpop.f32.mrf.mxu1 }
 0x14e   : > { %v6356_v56 = vadd.f32 %v1364_v40, %v1101_v26  ;;  %v2156_v26 = vld [vmem:[#allocation2 + $0xc] sm:$0x8] }
 0x14f   : > { %v1089_v50 = vpop.f32.mrf.mxu0  ;;  %v5260_v5 = vpop.f32.mrf.mxu1  ;;  %v2874_v27 = vld [vmem:[#allocation2 + $0xc] sm:$0x8] }
 0x150   : > { %v1102_v6 = vadd.f32 %v1089_v50, %v6311_v14  ;;  %v2158_v50 = vld [vmem:[#allocation2 + $0x18] sm:$0x8] }
 0x151   : > { %v5207_v20 = vpop.f32.mrf.mxu0  ;;  %v6359_v1 = vpop.f32.mrf.mxu1  ;;  %v2876_v5 = vld [vmem:[#allocation2 + $0x18] sm:$0x8]  ;;  %v2199_v24 = vshrl.u32 %v2158_v50, 16  ;;  %v2880_v50 = vld [vmem:[#allocation2 + $0x30] sm:$0x8] }
 0x152   : > { %v6361_v7 = vadd.f32 %v1367_v49, %v1102_v6  ;;  %v2592_v6 = vld [vmem:[#allocation2 + $0x8] sm:$0x1]  ;;  %v2904_v33 = vshrl.u32 %v2876_v5, 16 }
 0x153   : > { %v1474_v62 = vpop.f32.mrf.mxu0  ;;  %v5261_v0 = vpop.f32.mrf.mxu1 }
 0x154   : > { %v1513_v3 = vadd.f32 %v1474_v62, %v6316_v36  ;;  %v6399_v0 = vld [vmem:[%s6954_s2] ss:$0 sm:$0xff]  ;;  %v2173_v36 = vshrl.u32 %v2154_v35, 16  ;;  %v2186_v62 = vshrl.u32 %v2156_v26, 16  ;;  %v6408_v35 = vrot.slane %v2199_v24, 11 }
 0x155   : > { %v5234_v10 = vpop.f32.mrf.mxu0  ;;  %v6363_v13 = vpop.f32.mrf.mxu1 }
 0x156   : > { %v1654_v61 = vadd.f32 %v6340_v60, %v1513_v3  ;;  %v2891_v60 = vshrl.u32 %v2874_v27, 16 }
 0x157   : > { %v1477_v16 = vpop.f32.mrf.mxu0  ;;  %v5264_v25 = vpop.f32.mrf.mxu1 }
 0x158   : > { %v1514_v43 = vadd.f32 %v1477_v16, %v6321_v11  ;;  %v2160_v25 = vld [vmem:[#allocation2 + $0x24] sm:$0x8]  ;;  %v2617_v11 = vshll.u32 %v2592_v6, 16 }
 0x159   : > { %v5235_v18 = vpop.f32.mrf.mxu0  ;;  %v6365_v28 = vpop.f32.mrf.mxu1 }
 0x15a   : > { %v2594_v18 = vld [vmem:[#allocation2 + $0x14] sm:$0x1]  ;;  %v1655_v16 = vadd.f32 %v6347_v4, %v1514_v43  ;;  %v6410_v4 = vrot.slane %v2891_v60, 11  ;;  %v2166_v43 = vld [vmem:[#allocation2 + $0x48] sm:$0x8] }
 0x15b   : > { %v1482_v19 = vpop.f32.mrf.mxu0  ;;  %v5265_v23 = vpop.f32.mrf.mxu1  ;;  %v2251_v24 = vshrl.u32 %v2166_v43, 16  ;;  %v2884_v60 = vld [vmem:[#allocation2 + $0x48] sm:$0x8] }
 0x15d   : > { %v5238_v30 = vpop.f32.mrf.mxu0  ;;  %v6367_v14 = vpop.f32.mrf.mxu1 }
 0x15e   : > { %v2162_v30 = vld [vmem:[#allocation2 + $0x30] sm:$0x8] }
 0x15f   : > { %v6371_v37 = vpop.f32.mrf.mxu0  ;;  %v5268_v9 = vpop.f32.mrf.mxu1 }
 0x160   : > { %v1515_v9 = vadd.f32 %v1482_v19, %v6324_v17  ;;  %v6412_v17 = vrot.slane %v2904_v33, 11  ;;  %v6414_v19 = vrot.slane %v2617_v11, 5  ;;  %v2596_v33 = vld [vmem:[#allocation2 + $0x20] sm:$0x1] }
 0x161   : > { %v5239_v38 = vpop.f32.mrf.mxu0  ;;  %v6373_v40 = vpop.f32.mrf.mxu1 }
 0x162   : > { %v1656_v26 = vadd.f32 %v6352_v39, %v1515_v9  ;;  %v2168_v39 = vld [vmem:[#allocation2 + $0x54] sm:$0x8] }
 0x163   : > { %v6375_v41 = vpop.f32.mrf.mxu0  ;;  %v5269_v44 = vpop.f32.mrf.mxu1 }
 0x165   : > { %v5242_v15 = vpop.f32.mrf.mxu0  ;;  %v6377_v46 = vpop.f32.mrf.mxu1 }
 0x166   : > { %v6404_v15 = vrot.slane %v2173_v36, 11 }
 0x167   : > { %v6379_v49 = vpop.f32.mrf.mxu0  ;;  %v5272_v52 = vpop.f32.mrf.mxu1 }
 0x168   : > { %v6406_v52 = vrot.slane %v2186_v62, 11 }
 0x169   : > { %v5243_v53 = vpop.f32.mrf.mxu0  ;;  %v6381_v42 = vpop.f32.mrf.mxu1 }
 0x16a   : > { %v2212_v53 = vshrl.u32 %v2160_v25, 16 }
 0x16b   : > { %v6383_v22 = vpop.f32.mrf.mxu0  ;;  %v5273_v58 = vpop.f32.mrf.mxu1 }
 0x16c   : > { %v2631_v58 = vshll.u32 %v2594_v18, 16  ;;  %v6420_v6 = vrot.slane %v2212_v53, 11  ;;  %v2600_v53 = vld [vmem:[#allocation2 + $0x38] sm:$0x1] }
 0x16d   : > { %v5246_v59 = vpop.f32.mrf.mxu0 }
 0x16e   : > { %v6422_v36 = vrot.slane %v2631_v58, 5 }
 0x16f   : > { %v6387_v12 = vpop.f32.mrf.mxu0 }
 0x171   : > { %v5247_v57 = vpop.f32.mrf.mxu0 }
 0x172   : > { %v2225_v57 = vshrl.u32 %v2162_v30, 16  ;;  %v2930_v30 = vshrl.u32 %v2880_v50, 16  ;;  %v2673_v50 = vshll.u32 %v2600_v53, 16 }
 0x173   : > { %v6389_v48 = vpop.f32.mrf.mxu0 }
 0x174   : > { %v6424_v18 = vrot.slane %v2225_v57, 11 }
 0x175   : > { %v5250_v2 = vpop.f32.mrf.mxu0 }
 0x176   : > { %v2878_v2 = vld [vmem:[#allocation2 + $0x24] sm:$0x8] }
 0x177   : > { %v6392_v31 = vpop.f32.mrf.mxu0  ;;  %v2917_v62 = vshrl.u32 %v2878_v2, 16  ;;  %v3311_v2 = vld [vmem:[#allocation2 + $0x14] sm:$0x1] }
 0x179   : > { %v5251_v47 = vpop.f32.mrf.mxu0 }
 0x17a   : > { %v1516_v47 = vadd.f32 %v6371_v37, %v6327_v21  ;;  %v5693_v21 = vmov 0  }
 0x17b   : > { %v1893_v20 = vpop.f32.mrf.mxu0 }
 0x17c   : > { %v1932_v10 = vadd.f32 %v1893_v20, %v1654_v61  ;;  %v2238_v20 = vshrl.u32 %v2164_v54, 16  ;;  %v1657_v11 = vadd.f32 %v6359_v1, %v1516_v47  ;;  %v6433_v54 = vrot.slane %v2917_v62, 11 }
 0x17d   : > { %v5278_v23 = vpop.f32.mrf.mxu0  ;;  %v2956_v1 = vshrl.u32 %v2884_v60, 16  ;;  %v2645_v47 = vshll.u32 %v2596_v33, 16 }
 0x17e   : > { %v1949_v38 = vadd.f32 %v6399_v0, %v1932_v10  ;;  %v2882_v23 = vld [vmem:[#allocation2 + $0x3c] sm:$0x8] }
 0x17f   : > { %v1896_v44 = vpop.f32.mrf.mxu0  ;;  %v2943_v57 = vshrl.u32 %v2882_v23, 16 }
 0x180   : > { %v1959_v32 = vmax.f32 %v1949_v38, 0.0  ;;  %v1933_v59 = vadd.f32 %v1896_v44, %v1655_v16  ;;  %v1517_v16 = vadd.f32 %v6375_v41, %v6332_v34  ;;  %v2598_v44 = vld [vmem:[#allocation2 + $0x2c] sm:$0x1]  ;;  %v6435_v41 = vrot.slane %v2251_v24, 11 }
 0x181   : > { %v5279_v3 = vpop.f32.mrf.mxu0  ;;  %v2659_v43 = vshll.u32 %v2598_v44, 16  ;;  %v6445_v23 = vrot.slane %v2943_v57, 11  ;;  %v3336_v24 = vshll.u32 %v3311_v2, 16  ;;  %v6455_v44 = vld [vmem:[#allocation2 + $0x20] sm:$0x1]  ;;  %v6459_v57 = vrot.slane %v2673_v50, 5 }
 0x182   : > { %v1969_v27 = vpack.c.bf16 %v1959_v32, %v1959_v32  ;;  %v1950_v61 = vadd.f32 %v6399_v0, %v1933_v59  ;;  %v6431_v32 = vrot.slane %v2238_v20, 11  ;;  %v2264_v59 = vshrl.u32 %v2168_v39, 16 }
 0x183   : > { %v1901_v5 = vpop.f32.mrf.mxu0  ;;  %v1518_v20 = vadd.f32 %v6379_v49, %v6335_v51  ;;  %v1519_v51 = vadd.f32 %v6383_v22, %v6342_v63  ;;  %v1520_v2 = vadd.f32 %v6387_v12, %v6349_v29  ;;  %v3350_v29 = vshll.u32 %v6455_v44, 16 }
 0x184   : > { %1979 = vst [vmem:[#allocation2 + $0x4] sm:$0xf] %v1969_v27  ;;  %v1960_v10 = vmax.f32 %v1950_v61, 0.0  ;;  %v1934_v25 = vadd.f32 %v1901_v5, %v1656_v26  ;;  %v2602_v27 = vld [vmem:[#allocation2 + $0x44] sm:$0x1]  ;;  %v6437_v61 = vrot.slane %v2930_v30, 11  ;;  %v1658_v5 = vadd.f32 %v6363_v13, %v1517_v16 }
 0x185   : > { %2059 = vst [vmem:[#allocation2 + $0x4] sm:$0xf] %v5693_v21  ;;  %v5282_v37 = vpop.f32.mrf.mxu0  ;;  %v6443_v39 = vrot.slane %v2264_v59, 11  ;;  %v6449_v13 = vrot.slane %v2645_v47, 5  ;;  %v1659_v53 = vadd.f32 %v6365_v28, %v1518_v20  ;;  %v1660_v12 = vadd.f32 %v6367_v14, %v1519_v51  ;;  %v5663_v28 = vld [vmem:[%s6955_s3 + $0x218] sm:$0xff]  }
 0x186   : > { %v1970_v9 = vpack.c.bf16 %v1960_v10, %v1960_v10  ;;  %v1951_v38 = vadd.f32 %v6399_v0, %v1934_v25  ;;  %v2687_v37 = vshll.u32 %v2602_v27, 16  ;;  %v1521_v50 = vadd.f32 %v6389_v48, %v6356_v56 }
 0x187   : > { %v1904_v58 = vpop.f32.mrf.mxu0 }
 0x188   : > { %1980 = vst [vmem:[#allocation2 + $0x10] sm:$0xf] %v1970_v9  ;;  %v1961_v3 = vmax.f32 %v1951_v38, 0.0  ;;  %v1935_v26 = vadd.f32 %v1904_v58, %v1657_v11  ;;  %v6447_v11 = vrot.slane %v2956_v1, 11  ;;  %v6453_v38 = vrot.slane %v2659_v43, 5 }
 0x189   : > { %v5283_v34 = vpop.f32.mrf.mxu0  ;;  %v6463_v22 = vrot.slane %v2687_v37, 5  ;;  %v6465_v1 = vrot.slane %v3336_v24, 5 }
 0x18a   : > { %v1971_v62 = vpack.c.bf16 %v1961_v3, %v1961_v3  ;;  %v1952_v10 = vadd.f32 %v6399_v0, %v1935_v26 }
 0x18b   : > { %v1909_v25 = vpop.f32.mrf.mxu0 }
 0x18c   : > { %1981 = vst [vmem:[#allocation2 + $0x1c] sm:$0xf] %v1971_v62  ;;  %v1962_v30 = vmax.f32 %v1952_v10, 0.0  ;;  %v1936_v60 = vadd.f32 %v1909_v25, %v1658_v5  ;;  %v2155_v33 = vld [vmem:[#allocation2 + $0x4] sm:$0xf] }
 0x18d   : > { %v5286_v49 = vpop.f32.mrf.mxu0  ;;  %v2178_v16 = vshrl.u32 %v2155_v33, 16  ;;  %v2181_v9 = vshll.u32 %v2155_v33, 16  ;;  %v2591_v43 = vld [vmem:[#allocation2 + $0x4] sm:$0xf] }
 0x18e   : > { %v1972_v58 = vpack.c.bf16 %v1962_v30, %v1962_v30  ;;  %v1953_v59 = vadd.f32 %v6399_v0, %v1936_v60  ;;  %v1661_v60 = vadd.f32 %v6373_v40, %v1520_v2  ;;  %v2608_v48 = vshrl.u32 %v2591_v43, 16 }
 0x18f   : > { %v1912_v3 = vpop.f32.mrf.mxu0  ;;  %v2157_v26 = vld [vmem:[#allocation2 + $0x10] sm:$0xf]  ;;  %v2180_v63 = vrot.slane %v2178_v16, 7  ;;  %v1522_v40 = vadd.f32 %v6392_v31, %v6361_v7 }
 0x190   : > { %1982 = vst [vmem:[#allocation2 + $0x28] sm:$0xf] %v1972_v58  ;;  %v1963_v47 = vmax.f32 %v1953_v59, 0.0  ;;  %v1937_v27 = vadd.f32 %v1912_v3, %v1659_v53  ;;  %v2191_v34 = vshrl.u32 %v2157_v26, 16  ;;  %v4681_v20 = vcombine.low %v2155_v33, %v2157_v26  ;;  %v6478_v30 = vld [vmem:[#allocation2 + $0x10] sm:$0xf] }
 0x191   : > { %v5287_v5 = vpop.f32.mrf.mxu0  ;;  %v2183_v62 = vor.u32 %v2181_v9, %v2180_v63  ;;  %v2194_v24 = vshll.u32 %v2157_v26, 16  ;;  %v2611_v33 = vshll.u32 %v2591_v43, 16  ;;  %v1662_v59 = vadd.f32 %v6377_v46, %v1521_v50 }
 0x192   : > { %v1973_v10 = vpack.c.bf16 %v1963_v47, %v1963_v47  ;;  %v1954_v25 = vadd.f32 %v6399_v0, %v1937_v27  ;;  %v2193_v37 = vrot.slane %v2191_v34, 7  ;;  %5346 = vmatprep.mubr.bf16.mxu0 %v4681_v20  ;;  %v2896_v3 = vshrl.u32 %v6478_v30, 16 }
 0x193   : > { %v1917_v49 = vpop.f32.mrf.mxu0  ;;  %v2184_v14 = vsel %vm6469_vm13, %v6404_v15, %v2183_v62  ;;  %v2159_v51 = vld [vmem:[#allocation2 + $0x1c] sm:$0xf]  ;;  %v2610_v50 = vrot.slane %v2608_v48, 4  ;;  %v2613_v5 = vrot.slane %v2611_v33, 5  ;;  %v2899_v62 = vshll.u32 %v6478_v30, 16 }
 0x194   : > { %v6484_v56 = vld [vmem:[#allocation2 + $0x1c] sm:$0xf]  ;;  %1983 = vst [vmem:[#allocation2 + $0x34] sm:$0xf] %v1973_v10  ;;  %v1964_v16 = vmax.f32 %v1954_v25, 0.0  ;;  %v1938_v9 = vadd.f32 %v1917_v49, %v1660_v12  ;;  %v2196_v53 = vor.u32 %v2194_v24, %v2193_v37  ;;  %v2204_v58 = vshrl.u32 %v2159_v51, 16 }
 0x195   : > { %v5290_v2 = vpop.f32.mrf.mxu0  ;;  %v2909_v15 = vshrl.u32 %v6484_v56, 16  ;;  %v2207_v46 = vshll.u32 %v2159_v51, 16  ;;  %v2593_v10 = vld [vmem:[#allocation2 + $0x10] sm:$0xf]  ;;  %v2898_v49 = vrot.slane %v2896_v3, 7 }
 0x196   : > { %v1974_v26 = vpack.c.bf16 %v1964_v16, %v1964_v16  ;;  %v1955_v63 = vadd.f32 %v6399_v0, %v1938_v9  ;;  %v2197_v47 = vsel %vm6469_vm13, %v6406_v52, %v2196_v53  ;;  %v2206_v27 = vrot.slane %v2204_v58, 7  ;;  %v5606_v52 = vld [vmem:[%s6955_s3 + $0xf0] sm:$0xff]  }
 0x197   : > { %v1920_v34 = vpop.f32.mrf.mxu0  ;;  %v4653_v43 = vcombine.low %v2184_v14, %v2197_v47  ;;  %v2161_v12 = vld [vmem:[#allocation2 + $0x28] sm:$0xf]  ;;  %v2911_v14 = vrot.slane %v2909_v15, 7  ;;  %v2912_v58 = vshll.u32 %v6484_v56, 16  ;;  %v2614_v2 = vor.u32 %v2613_v5, %v2610_v50 }
 0x198   : > { %1984 = vst [vmem:[#allocation2 + $0x40] sm:$0xf] %v1974_v26  ;;  %v1965_v7 = vmax.f32 %v1955_v63, 0.0  ;;  %v1939_v31 = vadd.f32 %v1920_v34, %v1661_v60  ;;  %v2217_v20 = vshrl.u32 %v2161_v12, 16  ;;  %v4682_v37 = vcombine.low %v2159_v51, %v2161_v12 }
 0x199   : > { %v5291_v25 = vpop.f32.mrf.mxu0  ;;  %5322 = vmatprep.mubr.bf16.mxu1 %v4653_v43  ;;  %v2209_v24 = vor.u32 %v2207_v46, %v2206_v27  ;;  %v2220_v9 = vshll.u32 %v2161_v12, 16  ;;  %v2622_v26 = vshrl.u32 %v2593_v10, 16  ;;  %v2625_v51 = vshll.u32 %v2593_v10, 16  ;;  %v5608_v12 = vld [vmem:[%s6955_s3 + $0xe8] sm:$0xff]  }
 0x19a   : > { %v1975_v16 = vpack.c.bf16 %v1965_v7, %v1965_v7  ;;  %v1956_v48 = vadd.f32 %v6399_v0, %v1939_v31  ;;  %v2219_v33 = vrot.slane %v2217_v20, 7  ;;  %5347 = vmatmul.mubr.bf16.vlgmr.msra.gmra.mxu0 %v4682_v37  ;;  %v1663_v27 = vadd.f32 %v6381_v42, %v1522_v40  ;;  %v6513_v40 = vld [vmem:[#allocation2 + $0x28] sm:$0xf]  ;;  %v6515_v7 = vld [vmem:[#allocation2 + $0x54] sm:$0x8] }
 0x19b   : > { %v1925_v60 = vpop.f32.mrf.mxu0  ;;  %v2163_v53 = vld [vmem:[#allocation2 + $0x34] sm:$0xf]  ;;  %5379 = vmatpush3.bf16.msra.mxu0 %v6274_v8  ;;  %v2210_v43 = vsel %vm6469_vm13, %v6408_v35, %v2209_v24  ;;  %v2901_v46 = vor.u32 %v2899_v62, %v2898_v49  ;;  %v2914_v50 = vor.u32 %v2912_v58, %v2911_v14  ;;  %v2624_v25 = vrot.slane %v2622_v26, 4 }
 0x19c   : > { %1985 = vst [vmem:[#allocation2 + $0x4c] sm:$0xf] %v1975_v16  ;;  %v1966_v63 = vmax.f32 %v1956_v48, 0.0  ;;  %v1940_v47 = vadd.f32 %v1925_v60, %v1662_v59  ;;  %v2222_v3 = vor.u32 %v2220_v9, %v2219_v33  ;;  %v2230_v15 = vshrl.u32 %v2163_v53, 16  ;;  %5380 = vmatprep.subr.bf16.mxu0 %v5606_v52  ;;  %v5610_v62 = vld [vmem:[%s6955_s3 + $0xb0] sm:$0xff]   ;;  %v5611_v33 = vld [vmem:[%s6955_s3 + $0xe0] sm:$0xff]  }
 0x19d   : > { %v5294_v34 = vpop.f32.mrf.mxu0  ;;  %v2233_v10 = vshll.u32 %v2163_v53, 16  ;;  %v2627_v37 = vrot.slane %v2625_v51, 5  ;;  %v6520_v14 = vrot.slane %v2614_v2, 4  ;;  %v6522_v16 = vld [vmem:[#allocation2 + $0x34] sm:$0xf]  ;;  %v2915_v60 = vsel %vm6469_vm13, %v6412_v17, %v2914_v50 }
 0x19e   : > { %v1976_v5 = vpack.c.bf16 %v1966_v63, %v1966_v63  ;;  %v1957_v8 = vadd.f32 %v6399_v0, %v1940_v47  ;;  %v2223_v59 = vsel %vm6469_vm13, %v6420_v6, %v2222_v3  ;;  %v2232_v42 = vrot.slane %v2230_v15, 7 }
 0x19f   : > { %v1928_v31 = vpop.f32.mrf.mxu0  ;;  %v4654_v35 = vcombine.low %v2210_v43, %v2223_v59  ;;  %v2165_v20 = vld [vmem:[#allocation2 + $0x40] sm:$0xf]  ;;  %5381 = vmatpush3.bf16.msra.mxu0 %v5606_v52  ;;  %v2922_v52 = vshrl.u32 %v6513_v40, 16  ;;  %v2628_v3 = vor.u32 %v2627_v37, %v2624_v25  ;;  %v2935_v17 = vshrl.u32 %v6522_v16, 16 }
 0x1a0   : > { %1986 = vst [vmem:[#allocation2 + $0x58] sm:$0xf] %v1976_v5  ;;  %v1967_v24 = vmax.f32 %v1957_v8, 0.0  ;;  %v1941_v49 = vadd.f32 %v1928_v31, %v1663_v27  ;;  %v2243_v6 = vshrl.u32 %v2165_v20, 16  ;;  %5382 = vmatprep.subr.bf16.mxu0 %v5608_v12  ;;  %v4683_v48 = vcombine.low %v2163_v53, %v2165_v20  ;;  %v5612_v53 = vld [vmem:[%s6955_s3 + $0xa8] sm:$0xff]   ;;  %v5613_v5 = vld [vmem:[%s6955_s3 + $0xd8] sm:$0xff]  }
 0x1a1   : > { %5323 = vmatmul.mubr.bf16.vlgmr.msra.gmra.mxu1 %v4654_v35  ;;  %v2235_v9 = vor.u32 %v2233_v10, %v2232_v42  ;;  %v5295_v58 = vpop.f32.mrf.mxu0  ;;  %v2246_v63 = vshll.u32 %v2165_v20, 16  ;;  %v2969_v27 = vshrl.u32 %v6515_v7, 16  ;;  %v2902_v43 = vsel %vm6469_vm13, %v6410_v4, %v2901_v46  ;;  %v6553_v42 = vld [vmem:[#allocation2 + $0x40] sm:$0xf]  ;;  %v2595_v35 = vld [vmem:[#allocation2 + $0x1c] sm:$0xf] }
 0x1a2   : > { %v1977_v26 = vpack.c.bf16 %v1967_v24, %v1967_v24  ;;  %v1958_v2 = vadd.f32 %v6399_v0, %v1941_v49  ;;  %5355 = vmatpush3.bf16.msra.mxu1 %v6299_v45  ;;  %v2245_v51 = vrot.slane %v2243_v6, 7  ;;  %5350 = vmatprep.mubr.bf16.mxu0 %v4683_v48  ;;  %v4745_v8 = vcombine.low %v2902_v43, %v2915_v60  ;;  %v5615_v37 = vld [vmem:[%s6955_s3 + $0xa0] sm:$0xff]   ;;  %v5626_v7 = vld [vmem:[%s6955_s3 + $0x168] sm:$0xff]  }
 0x1a3   : > { %5356 = vmatprep.subr.bf16.mxu1 %v5610_v62  ;;  %v2167_v47 = vld [vmem:[#allocation2 + $0x4c] sm:$0xf]  ;;  %5383 = vmatpush3.bf16.msra.mxu0 %v5608_v12  ;;  %v2236_v50 = vsel %vm6469_vm13, %v6424_v18, %v2235_v9  ;;  %v2620_v12 = vsel %vm5836_vm5, %v6520_v14, %v6414_v19  ;;  %v2924_v59 = vrot.slane %v2922_v52, 7  ;;  %v2629_v24 = vrot.slane %v2628_v3, 4  ;;  %v5616_v9 = vld [vmem:[%s6955_s3 + $0xd0] sm:$0xff]  }
 0x1a4   : > { %v6537_v15 = vld [vmem:[#allocation2 + $0x4c] sm:$0xf]  ;;  %1987 = vst [vmem:[#allocation2 + $0x64] sm:$0xf] %v1977_v26  ;;  %v1968_v0 = vmax.f32 %v1958_v2, 0.0  ;;  %v2248_v45 = vor.u32 %v2246_v63, %v2245_v51  ;;  %v2256_v34 = vshrl.u32 %v2167_v47, 16  ;;  %5384 = vmatprep.subr.bf16.mxu0 %v5611_v33 }
 0x1a5   : > { %v2961_v46 = vshrl.u32 %v6537_v15, 16  ;;  %v2259_v25 = vshll.u32 %v2167_v47, 16  ;;  %v2937_v49 = vrot.slane %v2935_v17, 7  ;;  %v2948_v48 = vshrl.u32 %v6553_v42, 16  ;;  %v2597_v26 = vld [vmem:[#allocation2 + $0x28] sm:$0xf] }
 0x1a6   : > { %v1978_v31 = vpack.c.bf16 %v1968_v0, %v1968_v0  ;;  %5357 = vmatpush3.bf16.msra.mxu1 %v5610_v62  ;;  %v2249_v4 = vsel %vm6469_vm13, %v6431_v32, %v2248_v45  ;;  %v2258_v18 = vrot.slane %v2256_v34, 7  ;;  %v2925_v32 = vshll.u32 %v6513_v40, 16  ;;  %v2601_v3 = vld [vmem:[#allocation2 + $0x40] sm:$0xf]  ;;  %v2599_v34 = vld [vmem:[#allocation2 + $0x34] sm:$0xf] }
 0x1a7   : > { %5358 = vmatprep.subr.bf16.mxu1 %v5612_v53  ;;  %v4655_v20 = vcombine.low %v2236_v50, %v2249_v4  ;;  %v2169_v10 = vld [vmem:[#allocation2 + $0x58] sm:$0xf]  ;;  %5385 = vmatpush3.bf16.msra.mxu0 %v5611_v33  ;;  %v2938_v52 = vshll.u32 %v6522_v16, 16  ;;  %v2963_v58 = vrot.slane %v2961_v46, 7  ;;  %v2636_v33 = vshrl.u32 %v2595_v35, 16 }
 0x1a8   : > { %1988 = vst [vmem:[#allocation2 + $0x70] sm:$0xf] %v1978_v31  ;;  %v2269_v62 = vshrl.u32 %v2169_v10, 16  ;;  %v4684_v6 = vcombine.low %v2167_v47, %v2169_v10  ;;  %5386 = vmatprep.subr.bf16.mxu0 %v5613_v5  ;;  %v2261_v60 = vor.u32 %v2259_v25, %v2258_v18  ;;  %v2272_v51 = vshll.u32 %v2169_v10, 16  ;;  %v2888_v31 = vld [vmem:[#allocation2 + $0x60] sm:$0x8] }
 0x1a9   : > { %2061 = vst [vmem:[#allocation2 + $0x70] sm:$0xf] %v5693_v21  ;;  %5326 = vmatprep.mubr.bf16.mxu1 %v4655_v20  ;;  %v2927_v63 = vor.u32 %v2925_v32, %v2924_v59  ;;  %v2639_v47 = vshll.u32 %v2595_v35, 16  ;;  %v5617_v21 = vld [vmem:[%s6955_s3 + $0x98] sm:$0xff]   ;;  %v2634_v17 = vsel %vm5836_vm5, %v2629_v24, %v6422_v36  ;;  %v2940_v0 = vor.u32 %v2938_v52, %v2937_v49  ;;  %v5618_v36 = vld [vmem:[%s6955_s3 + $0xc8] sm:$0xff]  }
 0x1aa   : > { %5359 = vmatpush3.bf16.msra.mxu1 %v5612_v53  ;;  %v2271_v2 = vrot.slane %v2269_v62, 7  ;;  %5351 = vmatmul.mubr.bf16.gmra.mxu0 %v4684_v6  ;;  %v2951_v45 = vshll.u32 %v6553_v42, 16  ;;  %v2964_v53 = vshll.u32 %v6537_v15, 16  ;;  %v2950_v50 = vrot.slane %v2948_v48, 7  ;;  %v5620_v6 = vld [vmem:[%s6955_s3 + $0xc0] sm:$0xff]  }
 0x1ab   : > { %5394 = vmatprep.mubr.bf16.mxu0 %v4745_v8  ;;  %5360 = vmatprep.subr.bf16.mxu1 %v5615_v37  ;;  %v2650_v59 = vshrl.u32 %v2597_v26, 16  ;;  %v2653_v8 = vshll.u32 %v2597_v26, 16  ;;  %v2262_v4 = vsel %vm6469_vm13, %v6435_v41, %v2261_v60  ;;  %v2638_v46 = vrot.slane %v2636_v33, 4  ;;  %v6586_v24 = vld [vmem:[#allocation2 + $0x64] sm:$0xf] }
 0x1ac   : > { %5387 = vmatpush3.bf16.msra.mxu0 %v5613_v5  ;;  %v2274_v43 = vor.u32 %v2272_v51, %v2271_v2  ;;  %v2966_v18 = vor.u32 %v2964_v53, %v2963_v58  ;;  %v2678_v35 = vshrl.u32 %v2601_v3, 16  ;;  %v2641_v20 = vrot.slane %v2639_v47, 5  ;;  %v3310_v19 = vld [vmem:[#allocation2 + $0x10] sm:$0xf]  ;;  %v3312_v26 = vld [vmem:[#allocation2 + $0x1c] sm:$0xf] }
 0x1ad   : > { %5388 = vmatprep.subr.bf16.mxu0 %v5616_v9  ;;  %v2664_v10 = vshrl.u32 %v2599_v34, 16  ;;  %v2667_v25 = vshll.u32 %v2599_v34, 16  ;;  %v4709_v41 = vcombine.low %v2620_v12, %v2634_v17  ;;  %v2982_v62 = vshrl.u32 %v2888_v31, 16  ;;  %v2603_v34 = vld [vmem:[#allocation2 + $0x4c] sm:$0xf] }
 0x1ae   : > { %5361 = vmatpush3.bf16.msra.mxu1 %v5615_v37  ;;  %v2275_v5 = vsel %vm6469_vm13, %v6443_v39, %v2274_v43  ;;  %v5619_v37 = vld [vmem:[%s6955_s3 + $0x90] sm:$0xff]   ;;  %v2941_v39 = vsel %vm6469_vm13, %v6437_v61, %v2940_v0  ;;  %v2953_v32 = vor.u32 %v2951_v45, %v2950_v50  ;;  %v2652_v48 = vrot.slane %v2650_v59, 4  ;;  %v5622_v43 = vld [vmem:[%s6955_s3 + $0x178] sm:$0xff]  }
 0x1af   : > { %5362 = vmatprep.subr.bf16.mxu1 %v5617_v21  ;;  %v4656_v49 = vcombine.low %v2262_v4, %v2275_v5  ;;  %v2655_v60 = vrot.slane %v2653_v8, 5  ;;  %v2681_v52 = vshll.u32 %v2601_v3, 16  ;;  %v2928_v14 = vsel %vm6469_vm13, %v6433_v54, %v2927_v63  ;;  %v5621_v54 = vld [vmem:[%s6955_s3 + $0x88] sm:$0xff]   ;;  %v2605_v4 = vld [vmem:[#allocation2 + $0x58] sm:$0xf] }
 0x1b0   : > { %5389 = vmatpush3.bf16.msra.mxu0 %v5616_v9  ;;  %v2967_v61 = vsel %vm6469_vm13, %v6447_v11, %v2966_v18  ;;  %v2680_v12 = vrot.slane %v2678_v35, 4  ;;  %v6608_v9 = vld [vmem:[#allocation2 + $0x58] sm:$0xf]  ;;  %v2987_v58 = vshrl.u32 %v6586_v24, 16  ;;  %v2642_v33 = vor.u32 %v2641_v20, %v2638_v46  ;;  %v5623_v35 = vld [vmem:[%s6955_s3 + $0x80] sm:$0xff]  }
 0x1b1   : > { %5327 = vmatmul.mubr.bf16.gmra.mxu1 %v4656_v49  ;;  %5390 = vmatprep.subr.bf16.mxu0 %v5618_v36  ;;  %v2666_v2 = vrot.slane %v2664_v10, 4  ;;  %v2669_v51 = vrot.slane %v2667_v25, 5  ;;  %v2683_v47 = vrot.slane %v2681_v52, 5  ;;  %v4746_v63 = vcombine.low %v2928_v14, %v2941_v39  ;;  %v2604_v14 = vld [vmem:[#allocation2 + $0x50] sm:$0x1] }
 0x1b2   : > { %5363 = vmatpush3.bf16.msra.mxu1 %v5617_v21  ;;  %5370 = vmatprep.mubr.bf16.mxu1 %v4709_v41  ;;  %v6614_v3 = vrot.slane %v2982_v62, 11  ;;  %v3327_v11 = vshrl.u32 %v3310_v19, 16  ;;  %v3330_v17 = vshll.u32 %v3310_v19, 16  ;;  %v2954_v21 = vsel %vm6469_vm13, %v6445_v23, %v2953_v32  ;;  %v5624_v62 = vld [vmem:[%s6955_s3 + $0x170] sm:$0xff]   ;;  %v2606_v19 = vld [vmem:[#allocation2 + $0x5c] sm:$0x1] }
 0x1b3   : > { %5364 = vmatprep.subr.bf16.mxu1 %v5619_v37  ;;  %v2656_v0 = vor.u32 %v2655_v60, %v2652_v48  ;;  %v2974_v45 = vshrl.u32 %v6608_v9, 16  ;;  %v3341_v53 = vshrl.u32 %v3312_v26, 16  ;;  %v4747_v50 = vcombine.low %v2954_v21, %v2967_v61 }
 0x1b4   : > { %5391 = vmatpush3.bf16.msra.mxu0 %v5618_v36  ;;  %v2684_v59 = vor.u32 %v2683_v47, %v2680_v12  ;;  %v2989_v8 = vrot.slane %v2987_v58, 7  ;;  %v3329_v31 = vrot.slane %v3327_v11, 4  ;;  %v2643_v36 = vrot.slane %v2642_v33, 4 }
 0x1b5   : > { %5392 = vmatprep.subr.bf16.mxu0 %v5620_v6  ;;  %v2670_v18 = vor.u32 %v2669_v51, %v2666_v2  ;;  %v2990_v23 = vshll.u32 %v6586_v24, 16  ;;  %v3332_v46 = vrot.slane %v3330_v17, 5  ;;  %v3343_v5 = vrot.slane %v3341_v53, 4 }
 0x1b6   : > { %5365 = vmatpush3.bf16.msra.mxu1 %v5619_v37  ;;  %v3344_v20 = vshll.u32 %v3312_v26, 16  ;;  %v2692_v10 = vshrl.u32 %v2603_v34, 16  ;;  %v2695_v25 = vshll.u32 %v2603_v34, 16  ;;  %v2657_v49 = vrot.slane %v2656_v0, 4  ;;  %v5625_v26 = vld [vmem:[%s6955_s3 + $0x138] sm:$0xff]  }
 0x1b7   : > { %5366 = vmatprep.subr.bf16.mxu1 %v5621_v54  ;;  %v2976_v41 = vrot.slane %v2974_v45, 7  ;;  %v2977_v39 = vshll.u32 %v6608_v9, 16  ;;  %v2706_v37 = vshrl.u32 %v2605_v4, 16  ;;  %v2685_v32 = vrot.slane %v2684_v59, 4 }
 0x1b8   : > { %5393 = vmatpush3.bf16.msra.mxu0 %v5620_v6  ;;  %v2992_v48 = vor.u32 %v2990_v23, %v2989_v8  ;;  %v3333_v60 = vor.u32 %v3332_v46, %v3329_v31  ;;  %v3346_v52 = vrot.slane %v3344_v20, 5  ;;  %v2694_v61 = vrot.slane %v2692_v10, 4  ;;  %v5629_v46 = vld [vmem:[%s6955_s3 + $0x128] sm:$0xff]   ;;  %v5630_v20 = vld [vmem:[%s6955_s3 + $0x158] sm:$0xff]  }
 0x1b9   : > { %5426 = vmatprep.subr.bf16.mxu0 %v5622_v43  ;;  %v2697_v12 = vrot.slane %v2695_v25, 5  ;;  %v2708_v6 = vrot.slane %v2706_v37, 4  ;;  %v2709_v58 = vshll.u32 %v2605_v4, 16  ;;  %v2671_v33 = vrot.slane %v2670_v18, 4  ;;  %v5628_v4 = vld [vmem:[%s6955_s3 + $0x160] sm:$0xff]  }
 0x1ba   : > { %5367 = vmatpush3.bf16.msra.mxu1 %v5621_v54  ;;  %v4727_v2 = vrot.slane %v2969_v27, 11  ;;  %v3347_v51 = vor.u32 %v3346_v52, %v3343_v5  ;;  %v3352_v47 = vrot.slane %v3350_v29, 5  ;;  %v2662_v54 = vsel %vm5836_vm5, %v2657_v49, %v6453_v38  ;;  %v3320_v5 = vld [vmem:[#allocation2 + $0x4c] sm:$0xf]  ;;  %v3314_v10 = vld [vmem:[#allocation2 + $0x28] sm:$0xf] }
 0x1bb   : > { %5395 = vmatmul.mubr.bf16.vlgmr.msra.gmra.mxu0 %v4746_v63  ;;  %5368 = vmatprep.subr.bf16.mxu1 %v5623_v35  ;;  %v2979_v63 = vor.u32 %v2977_v39, %v2976_v41  ;;  %v2711_v11 = vrot.slane %v2709_v58, 5  ;;  %v2715_v17 = vshll.u32 %v2606_v19, 16  ;;  %v2690_v21 = vsel %vm5836_vm5, %v2685_v32, %v6463_v22  ;;  %v3318_v39 = vld [vmem:[#allocation2 + $0x40] sm:$0xf] }
 0x1bc   : > { %5398 = vmatprep.mubr.bf16.mxu0 %v4747_v50  ;;  %5427 = vmatpush3.bf16.msra.mxu0 %v5622_v43  ;;  %v3334_v44 = vrot.slane %v3333_v60, 4  ;;  %v3348_v29 = vrot.slane %v3347_v51, 4  ;;  %v2701_v27 = vshll.u32 %v2604_v14, 16  ;;  %v2648_v38 = vsel %vm5836_vm5, %v2643_v36, %v6449_v13  ;;  %v5627_v50 = vld [vmem:[%s6955_s3 + $0x130] sm:$0xff]   ;;  %v3315_v51 = vld [vmem:[#allocation2 + $0x2c] sm:$0x1] }
 0x1bd   : > { %5428 = vmatprep.subr.bf16.mxu0 %v5624_v62  ;;  %v2993_v0 = vsel %vm6469_vm13, %v6614_v3, %v2992_v48  ;;  %v2698_v45 = vor.u32 %v2697_v12, %v2694_v61  ;;  %v2712_v53 = vor.u32 %v2711_v11, %v2708_v6  ;;  %v4710_v34 = vcombine.low %v2648_v38, %v2662_v54  ;;  %v5632_v14 = vld [vmem:[%s6955_s3 + $0x150] sm:$0xff]   ;;  %v3317_v6 = vld [vmem:[#allocation2 + $0x38] sm:$0x1]  ;;  %v5634_v11 = vld [vmem:[%s6955_s3 + $0x148] sm:$0xff]  }
 0x1be   : > { %5369 = vmatpush3.bf16.msra.mxu1 %v5623_v35  ;;  %v2676_v22 = vsel %vm5836_vm5, %v2671_v33, %v6459_v57  ;;  %v3353_v43 = vsel %vm5836_vm5, %v3348_v29, %v3352_v47  ;;  %v2980_v3 = vsel %vm6469_vm13, %v4727_v2, %v2979_v63  ;;  %v2717_v8 = vrot.slane %v2715_v17, 5  ;;  %v3316_v35 = vld [vmem:[#allocation2 + $0x34] sm:$0xf]  ;;  %v3324_v2 = vld [vmem:[#allocation2 + $0x64] sm:$0xf] }
 0x1bf   : > { %5402 = vmatprep.subr.bf16.mxu1 %v5625_v26  ;;  %v4711_v13 = vcombine.low %v2676_v22, %v2690_v21  ;;  %v2713_v59 = vrot.slane %v2712_v53, 4  ;;  %v4748_v31 = vcombine.low %v2980_v3, %v2993_v0  ;;  %v3339_v57 = vsel %vm5836_vm5, %v3334_v44, %v6465_v1  ;;  %v3321_v63 = vld [vmem:[#allocation2 + $0x50] sm:$0x1]  ;;  %v5636_v3 = vld [vmem:[%s6955_s3 + $0x140] sm:$0xff]  }
 0x1c0   : > { %5429 = vmatpush3.bf16.msra.mxu0 %v5624_v62  ;;  %v4801_v36 = vcombine.low %v3339_v57, %v3353_v43  ;;  %v2699_v18 = vrot.slane %v2698_v45, 4  ;;  %v2703_v23 = vrot.slane %v2701_v27, 5  ;;  %v3369_v49 = vshrl.u32 %v3316_v35, 16  ;;  %v5631_v62 = vld [vmem:[%s6955_s3 + $0x120] sm:$0xff]   ;;  %v5635_v45 = vld [vmem:[%s6955_s3 + $0x110] sm:$0xff]  }
 0x1c1   : > { %5371 = vmatmul.mubr.bf16.vlgmr.msra.gmra.mxu1 %v4710_v34  ;;  %5430 = vmatprep.subr.bf16.mxu0 %v5626_v7  ;;  %v2718_v1 = vsel %vm5836_vm5, %v2713_v59, %v2717_v8  ;;  %v3372_v41 = vshll.u32 %v3316_v35, 16  ;;  %v3397_v32 = vshrl.u32 %v3320_v5, 16  ;;  %v3400_v48 = vshll.u32 %v3320_v5, 16  ;;  %v3319_v27 = vld [vmem:[#allocation2 + $0x44] sm:$0x1] }
 0x1c2   : > { %5374 = vmatprep.mubr.bf16.mxu1 %v4711_v13  ;;  %5403 = vmatpush3.bf16.msra.mxu1 %v5625_v26  ;;  %v2704_v25 = vsel %vm5836_vm5, %v2699_v18, %v2703_v23  ;;  %v4773_v60 = vcombine.low %v6478_v30, %v6484_v56  ;;  %v3355_v52 = vshrl.u32 %v3314_v10, 16  ;;  %v3358_v19 = vshll.u32 %v3314_v10, 16  ;;  %v5633_v30 = vld [vmem:[%s6955_s3 + $0x118] sm:$0xff]   ;;  %v5637_v18 = vld [vmem:[%s6955_s3 + $0x108] sm:$0xff]  }
 0x1c3   : > { %5399 = vmatmul.mubr.bf16.gmra.mxu0 %v4748_v31  ;;  %5404 = vmatprep.subr.bf16.mxu1 %v5627_v50  ;;  %v4712_v37 = vcombine.low %v2704_v25, %v2718_v1  ;;  %v3383_v61 = vshrl.u32 %v3318_v39, 16  ;;  %v3386_v12 = vshll.u32 %v3318_v39, 16  ;;  %v3371_v58 = vrot.slane %v3369_v49, 4  ;;  %v3325_v35 = vld [vmem:[#allocation2 + $0x68] sm:$0x1]  ;;  %v5638_v25 = vld [vmem:[%s6955_s3 + $0x1f8] sm:$0xff]  }
 0x1c4   : > { %5431 = vmatpush3.bf16.msra.mxu0 %v5626_v7  ;;  %5442 = vmatprep.mubr.bf16.mxu0 %v4801_v36  ;;  %v3374_v26 = vrot.slane %v3372_v41, 5  ;;  %v3399_v56 = vrot.slane %v3397_v32, 4  ;;  %v3402_v33 = vrot.slane %v3400_v48, 5  ;;  %v3357_v47 = vrot.slane %v3355_v52, 4  ;;  %v3322_v7 = vld [vmem:[#allocation2 + $0x58] sm:$0xf] }
 0x1c5   : > { %5432 = vmatprep.subr.bf16.mxu0 %v5628_v4  ;;  %v3360_v54 = vrot.slane %v3358_v19, 5  ;;  %v3385_v17 = vrot.slane %v3383_v61, 4  ;;  %v3388_v21 = vrot.slane %v3386_v12, 5  ;;  %v3378_v29 = vshll.u32 %v3317_v6, 16  ;;  %v3323_v39 = vld [vmem:[#allocation2 + $0x5c] sm:$0x1] }
 0x1c6   : > { %5405 = vmatpush3.bf16.msra.mxu1 %v5627_v50  ;;  %v3375_v44 = vor.u32 %v3374_v26, %v3371_v58  ;;  %v3425_v38 = vshrl.u32 %v3324_v2, 16  ;;  %v3428_v0 = vshll.u32 %v3324_v2, 16  ;;  %v3403_v53 = vor.u32 %v3402_v33, %v3399_v56  ;;  %v3596_v48 = vld [vmem:[#allocation2 + $0x28] sm:$0xf]  ;;  %v5639_v52 = vld [vmem:[%s6955_s3 + $0x100] sm:$0xff]   ;;  %v5640_v26 = vld [vmem:[%s6955_s3 + $0x1f0] sm:$0xff]  }
 0x1c7   : > { %5406 = vmatprep.subr.bf16.mxu1 %v5629_v46  ;;  %v3406_v34 = vshll.u32 %v3321_v63, 16  ;;  %v3361_v22 = vor.u32 %v3360_v54, %v3357_v47  ;;  %v3364_v43 = vshll.u32 %v3315_v51, 16  ;;  %v3411_v50 = vshrl.u32 %v3322_v7, 16  ;;  %v3594_v12 = vld [vmem:[#allocation2 + $0x1c] sm:$0xf] }
 0x1c8   : > { %5433 = vmatpush3.bf16.msra.mxu0 %v5628_v4  ;;  %v3414_v13 = vshll.u32 %v3322_v7, 16  ;;  %v3389_v59 = vor.u32 %v3388_v21, %v3385_v17  ;;  %v3392_v8 = vshll.u32 %v3319_v27, 16  ;;  %v3376_v31 = vrot.slane %v3375_v44, 4  ;;  %v3595_v51 = vld [vmem:[#allocation2 + $0x24] sm:$0x8]  ;;  %v5641_v47 = vld [vmem:[%s6955_s3 + $0x1b8] sm:$0xff]  }
 0x1c9   : > { %5375 = vmatmul.mubr.bf16.gmra.mxu1 %v4712_v37  ;;  %5434 = vmatprep.subr.bf16.mxu0 %v5630_v20  ;;  %v3380_v57 = vrot.slane %v3378_v29, 5  ;;  %v3427_v4 = vrot.slane %v3425_v38, 4  ;;  %v3430_v36 = vrot.slane %v3428_v0, 5  ;;  %v3404_v23 = vrot.slane %v3403_v53, 4  ;;  %v3593_v17 = vld [vmem:[#allocation2 + $0x18] sm:$0x8] }
 0x1ca   : > { %5407 = vmatpush3.bf16.msra.mxu1 %v5629_v46  ;;  %5418 = vmatprep.mubr.bf16.mxu1 %v4773_v60  ;;  %v3408_v46 = vrot.slane %v3406_v34, 5  ;;  %v3362_v1 = vrot.slane %v3361_v22, 4  ;;  %v3366_v5 = vrot.slane %v3364_v43, 5  ;;  %v3416_v10 = vrot.slane %v3414_v13, 5  ;;  %v5642_v21 = vld [vmem:[%s6955_s3 + $0x1e8] sm:$0xff]  }
 0x1cb   : > { %5408 = vmatprep.subr.bf16.mxu1 %v5631_v62  ;;  %v3390_v49 = vrot.slane %v3389_v59, 4  ;;  %v3394_v41 = vrot.slane %v3392_v8, 5  ;;  %v3381_v37 = vsel %vm5836_vm5, %v3376_v31, %v3380_v57  ;;  %v3434_v32 = vshll.u32 %v3325_v35, 16  ;;  %v5647_v31 = vld [vmem:[%s6955_s3 + $0x1d8] sm:$0xff]  }
 0x1cc   : > { %5435 = vmatpush3.bf16.msra.mxu0 %v5630_v20  ;;  %v3413_v20 = vrot.slane %v3411_v50, 4  ;;  %v3409_v60 = vsel %vm5836_vm5, %v3404_v23, %v3408_v46  ;;  %v3367_v19 = vsel %vm5836_vm5, %v3362_v1, %v3366_v5  ;;  %v3420_v61 = vshll.u32 %v3323_v39, 16  ;;  %v5649_v23 = vld [vmem:[%s6955_s3 + $0x1d0] sm:$0xff]   ;;  %v3600_v46 = vld [vmem:[#allocation2 + $0x40] sm:$0xf] }
 0x1cd   : > { %5436 = vmatprep.subr.bf16.mxu0 %v5632_v14  ;;  %v4802_v6 = vcombine.low %v3367_v19, %v3381_v37  ;;  %v3395_v58 = vsel %vm5836_vm5, %v3390_v49, %v3394_v41  ;;  %v3436_v2 = vrot.slane %v3434_v32, 5  ;;  %v3615_v54 = vshrl.u32 %v3594_v12, 16  ;;  %v6763_v35 = vld [vmem:[#allocation2 + $0x58] sm:$0xf]  ;;  %v3599_v1 = vld [vmem:[#allocation2 + $0x3c] sm:$0x8] }
 0x1ce   : > { %5409 = vmatpush3.bf16.msra.mxu1 %v5631_v62  ;;  %v3431_v62 = vor.u32 %v3430_v36, %v3427_v4  ;;  %v4803_v56 = vcombine.low %v3395_v58, %v3409_v60  ;;  %v3623_v44 = vshrl.u32 %v3595_v51, 16  ;;  %v4774_v27 = vcombine.low %v6513_v40, %v6522_v16  ;;  %v5645_v40 = vld [vmem:[%s6955_s3 + $0x1e0] sm:$0xff]   ;;  %v5652_v5 = vld [vmem:[%s6955_s3 + $0x190] sm:$0xff]   ;;  %v4031_v60 = vld [vmem:[#allocation2 + $0x28] sm:$0xf] }
 0x1cf   : > { %5410 = vmatprep.subr.bf16.mxu1 %v5633_v30  ;;  %v3617_v38 = vrot.slane %v3615_v54, 7  ;;  %v3631_v0 = vshll.u32 %v3596_v48, 16  ;;  %v3610_v53 = vshrl.u32 %v3593_v17, 16  ;;  %v4775_v34 = vcombine.low %v6553_v42, %v6537_v15  ;;  %v5646_v15 = vld [vmem:[%s6955_s3 + $0x1a8] sm:$0xff]   ;;  %v5648_v36 = vld [vmem:[%s6955_s3 + $0x1a0] sm:$0xff]  }
 0x1d0   : > { %5437 = vmatpush3.bf16.msra.mxu0 %v5632_v14  ;;  %v3417_v14 = vor.u32 %v3416_v10, %v3413_v20  ;;  %v3432_v33 = vrot.slane %v3431_v62, 4  ;;  %v3618_v50 = vshll.u32 %v3594_v12, 16  ;;  %v4814_v16 = vrot.slane %v3623_v44, 11  ;;  %v3598_v20 = vld [vmem:[#allocation2 + $0x34] sm:$0xf]  ;;  %v5653_v41 = vld [vmem:[%s6955_s3 + $0x1c0] sm:$0xff]  }
 0x1d1   : > { %5438 = vmatprep.subr.bf16.mxu0 %v5634_v11  ;;  %v4813_v42 = vrot.slane %v3610_v53, 11  ;;  %v4776_v57 = vcombine.low %v6608_v9, %v6586_v24  ;;  %v5650_v24 = vld [vmem:[%s6955_s3 + $0x198] sm:$0xff]   ;;  %v5651_v9 = vld [vmem:[%s6955_s3 + $0x1c8] sm:$0xff]   ;;  %v3603_v10 = vld [vmem:[#allocation2 + $0x54] sm:$0x8]  ;;  %v3654_v49 = vshrl.u32 %v3600_v46, 16 }
 0x1d2   : > { %5411 = vmatpush3.bf16.msra.mxu1 %v5633_v30  ;;  %v3628_v30 = vshrl.u32 %v3596_v48, 16  ;;  %v3418_v63 = vrot.slane %v3417_v14, 4  ;;  %v3437_v29 = vsel %vm5836_vm5, %v3432_v33, %v3436_v2  ;;  %v3620_v59 = vor.u32 %v3618_v50, %v3617_v38  ;;  %v3597_v37 = vld [vmem:[#allocation2 + $0x30] sm:$0x8]  ;;  %v3601_v14 = vld [vmem:[#allocation2 + $0x48] sm:$0x8] }
 0x1d3   : > { %5412 = vmatprep.subr.bf16.mxu1 %v5635_v45  ;;  %v3680_v39 = vshrl.u32 %v6763_v35, 16  ;;  %v3649_v62 = vshrl.u32 %v3599_v1, 16  ;;  %v3641_v32 = vshrl.u32 %v3598_v20, 16  ;;  %v4063_v33 = vshll.u32 %v4031_v60, 16  ;;  %v5657_v2 = vld [vmem:[%s6955_s3 + $0x180] sm:$0xff]  }
 0x1d4   : > { %5439 = vmatpush3.bf16.msra.mxu0 %v5634_v11  ;;  %v3422_v11 = vrot.slane %v3420_v61, 5  ;;  %v3630_v7 = vrot.slane %v3628_v30, 7  ;;  %v3621_v4 = vsel %vm6469_vm13, %v4813_v42, %v3620_v59  ;;  %v3636_v61 = vshrl.u32 %v3597_v37, 16  ;;  %v6775_v30 = vld [vmem:[#allocation2 + $0x70] sm:$0xf] }
 0x1d5   : > { %5440 = vmatprep.subr.bf16.mxu0 %v5636_v3  ;;  %v3682_v58 = vrot.slane %v3680_v39, 7  ;;  %v3643_v51 = vrot.slane %v3641_v32, 7  ;;  %v3662_v54 = vshrl.u32 %v3601_v14, 16  ;;  %v3683_v17 = vshll.u32 %v6763_v35, 16 }
 0x1d6   : > { %5413 = vmatpush3.bf16.msra.mxu1 %v5635_v45  ;;  %v5644_v45 = vld [vmem:[%s6955_s3 + $0x1b0] sm:$0xff]   ;;  %v3423_v22 = vsel %vm5836_vm5, %v3418_v63, %v3422_v11  ;;  %v3633_v13 = vor.u32 %v3631_v0, %v3630_v7  ;;  %v3706_v0 = vshrl.u32 %v6775_v30, 16 }
 0x1d7   : > { %5414 = vmatprep.subr.bf16.mxu1 %v5637_v18  ;;  %v4804_v43 = vcombine.low %v3423_v22, %v3437_v29  ;;  %v4866_v29 = vcombine.low %v3598_v20, %v3600_v46  ;;  %v3685_v53 = vor.u32 %v3683_v17, %v3682_v58  ;;  %v4817_v42 = vrot.slane %v3662_v54, 11  ;;  %v4035_v54 = vld [vmem:[#allocation2 + $0x40] sm:$0xf] }
 0x1d8   : > { %5441 = vmatpush3.bf16.msra.mxu0 %v5636_v3  ;;  %v4865_v3 = vcombine.low %v3594_v12, %v3596_v48  ;;  %v3634_v8 = vsel %vm6469_vm13, %v4814_v16, %v3633_v13  ;;  %v3675_v48 = vshrl.u32 %v3603_v10, 16  ;;  %v3656_v12 = vrot.slane %v3654_v49, 7  ;;  %v5660_v49 = vld [vmem:[%s6955_s3 + $0x230] sm:$0xff]  }
 0x1d9   : > { %5474 = vmatprep.subr.bf16.mxu0 %v5638_v25  ;;  %v4088_v17 = vshrl.u32 %v4035_v54, 16 }
 0x1da   : > { %5415 = vmatpush3.bf16.msra.mxu1 %v5637_v18  ;;  %v4837_v18 = vcombine.low %v3621_v4, %v3634_v8  ;;  %v4818_v63 = vrot.slane %v3675_v48, 11  ;;  %v3605_v8 = vld [vmem:[#allocation2 + $0x60] sm:$0x8] }
 0x1db   : > { %5443 = vmatmul.mubr.bf16.vlgmr.msra.gmra.mxu0 %v4802_v6  ;;  %5416 = vmatprep.subr.bf16.mxu1 %v5639_v52  ;;  %v4029_v6 = vld [vmem:[#allocation2 + $0x1c] sm:$0xf] }
 0x1dc   : > { %5446 = vmatprep.mubr.bf16.mxu0 %v4803_v56  ;;  %5475 = vmatpush3.bf16.msra.mxu0 %v5638_v25  ;;  %v3602_v25 = vld [vmem:[#allocation2 + $0x4c] sm:$0xf]  ;;  %v4060_v56 = vshrl.u32 %v4031_v60, 16  ;;  %v4046_v7 = vshrl.u32 %v4029_v6, 16  ;;  %v4049_v44 = vshll.u32 %v4029_v6, 16 }
 0x1dd   : > { %5476 = vmatprep.subr.bf16.mxu0 %v5640_v26  ;;  %v3667_v19 = vshrl.u32 %v3602_v25, 16  ;;  %v4867_v50 = vcombine.low %v3602_v25, %v6763_v35 }
 0x1de   : > { %5417 = vmatpush3.bf16.msra.mxu1 %v5639_v52  ;;  %v5654_v52 = vld [vmem:[%s6955_s3 + $0x188] sm:$0xff]   ;;  %v4062_v22 = vrot.slane %v4060_v56, 4 }
 0x1df   : > { %5450 = vmatprep.subr.bf16.mxu1 %v5641_v47  ;;  %v3669_v11 = vrot.slane %v3667_v19, 7 }
 0x1e0   : > { %5477 = vmatpush3.bf16.msra.mxu0 %v5640_v26  ;;  %v4816_v26 = vrot.slane %v3649_v62, 11 }
 0x1e1   : > { %5419 = vmatmul.mubr.bf16.vlgmr.msra.gmra.mxu1 %v4774_v27  ;;  %5478 = vmatprep.subr.bf16.mxu0 %v5642_v21  ;;  %v3644_v27 = vshll.u32 %v3598_v20, 16  ;;  %v3688_v20 = vshrl.u32 %v3605_v8, 16 }
 0x1e2   : > { %5422 = vmatprep.mubr.bf16.mxu1 %v4775_v34  ;;  %5451 = vmatpush3.bf16.msra.mxu1 %v5641_v47  ;;  %v3657_v47 = vshll.u32 %v3600_v46, 16  ;;  %v3607_v34 = vld [vmem:[#allocation2 + $0x6c] sm:$0x8] }
 0x1e3   : > { %5447 = vmatmul.mubr.bf16.gmra.mxu0 %v4804_v43  ;;  %5452 = vmatprep.subr.bf16.mxu1 %v5644_v45  ;;  %v4065_v43 = vrot.slane %v4063_v33, 5  ;;  %v3646_v16 = vor.u32 %v3644_v27, %v3643_v51  ;;  %v4819_v14 = vrot.slane %v3688_v20, 11  ;;  %v5662_v51 = vld [vmem:[%s6955_s3 + $0x220] sm:$0xff]  }
 0x1e4   : > { %5479 = vmatpush3.bf16.msra.mxu0 %v5642_v21  ;;  %5490 = vmatprep.mubr.bf16.mxu0 %v4865_v3  ;;  %v3606_v21 = vld [vmem:[#allocation2 + $0x64] sm:$0xf]  ;;  %v3659_v38 = vor.u32 %v3657_v47, %v3656_v12  ;;  %v4032_v3 = vld [vmem:[#allocation2 + $0x2c] sm:$0x1] }
 0x1e5   : > { %5480 = vmatprep.subr.bf16.mxu0 %v5645_v40  ;;  %v3693_v13 = vshrl.u32 %v3606_v21, 16  ;;  %v4066_v46 = vor.u32 %v4065_v43, %v4062_v22  ;;  %v4069_v35 = vshll.u32 %v4032_v3, 16  ;;  %v3696_v62 = vshll.u32 %v3606_v21, 16  ;;  %v5661_v12 = vld [vmem:[%s6955_s3 + $0x228] sm:$0xff]   ;;  %v4036_v43 = vld [vmem:[#allocation2 + $0x44] sm:$0x1] }
 0x1e6   : > { %5453 = vmatpush3.bf16.msra.mxu1 %v5644_v45  ;;  %v3670_v45 = vshll.u32 %v3602_v25, 16  ;;  %v3660_v4 = vsel %vm6469_vm13, %v4816_v26, %v3659_v38  ;;  %v4868_v60 = vcombine.low %v3606_v21, %v6775_v30  ;;  %v4091_v21 = vshll.u32 %v4035_v54, 16 }
 0x1e7   : > { %5454 = vmatprep.subr.bf16.mxu1 %v5646_v15  ;;  %v4071_v19 = vrot.slane %v4069_v35, 5 }
 0x1e8   : > { %5481 = vmatpush3.bf16.msra.mxu0 %v5645_v40  ;;  %v4815_v40 = vrot.slane %v3636_v61, 11  ;;  %v3672_v59 = vor.u32 %v3670_v45, %v3669_v11  ;;  %v4033_v11 = vld [vmem:[#allocation2 + $0x34] sm:$0xf]  ;;  %v4093_v22 = vrot.slane %v4091_v21, 5 }
 0x1e9   : > { %5423 = vmatmul.mubr.bf16.gmra.mxu1 %v4776_v57  ;;  %5482 = vmatprep.subr.bf16.mxu0 %v5647_v31  ;;  %v4051_v57 = vrot.slane %v4049_v44, 5  ;;  %v4074_v27 = vshrl.u32 %v4033_v11, 16  ;;  %v4077_v38 = vshll.u32 %v4033_v11, 16 }
 0x1ea   : > { %5455 = vmatpush3.bf16.msra.mxu1 %v5646_v15  ;;  %5466 = vmatprep.mubr.bf16.mxu1 %v4837_v18  ;;  %v5658_v15 = vld [vmem:[%s6955_s3 + $0x238] sm:$0xff]   ;;  %v3709_v18 = vshll.u32 %v6775_v30, 16  ;;  %v3647_v1 = vsel %vm6469_vm13, %v4815_v40, %v3646_v16  ;;  %v3673_v25 = vsel %vm6469_vm13, %v4817_v42, %v3672_v59  ;;  %v4043_v16 = vld [vmem:[#allocation2 + $0x70] sm:$0xf]  ;;  %v5665_v59 = vld [vmem:[%s6955_s3 + $0x208] sm:$0xff]  }
 0x1eb   : > { %5456 = vmatprep.subr.bf16.mxu1 %v5648_v36  ;;  %v4838_v10 = vcombine.low %v3647_v1, %v3660_v4  ;;  %v4076_v3 = vrot.slane %v4074_v27, 4  ;;  %v4040_v42 = vld [vmem:[#allocation2 + $0x5c] sm:$0x1] }
 0x1ec   : > { %5483 = vmatpush3.bf16.msra.mxu0 %v5647_v31  ;;  %v4048_v31 = vrot.slane %v4046_v7, 4  ;;  %v4037_v7 = vld [vmem:[#allocation2 + $0x4c] sm:$0xf] }
 0x1ed   : > { %5484 = vmatprep.subr.bf16.mxu0 %v5649_v23  ;;  %v4102_v45 = vshrl.u32 %v4037_v7, 16 }
 0x1ee   : > { %5457 = vmatpush3.bf16.msra.mxu1 %v5648_v36  ;;  %v3708_v36 = vrot.slane %v3706_v0, 7  ;;  %v5664_v0 = vld [vmem:[%s6955_s3 + $0x210] sm:$0xff]  }
 0x1ef   : > { %5458 = vmatprep.subr.bf16.mxu1 %v5650_v24  ;;  %v4104_v8 = vrot.slane %v4102_v45, 4 }
 0x1f0   : > { %5485 = vmatpush3.bf16.msra.mxu0 %v5649_v23  ;;  %v3701_v23 = vshrl.u32 %v3607_v34, 16  ;;  %v3711_v48 = vor.u32 %v3709_v18, %v3708_v36  ;;  %v4090_v34 = vrot.slane %v4088_v17, 4  ;;  %v4097_v36 = vshll.u32 %v4036_v43, 16  ;;  %v4038_v18 = vld [vmem:[#allocation2 + $0x50] sm:$0x1] }
 0x1f1   : > { %5486 = vmatprep.subr.bf16.mxu0 %v5651_v9 }
 0x1f2   : > { %5459 = vmatpush3.bf16.msra.mxu1 %v5650_v24  ;;  %v4030_v24 = vld [vmem:[#allocation2 + $0x20] sm:$0x1]  ;;  %v4820_v32 = vrot.slane %v3701_v23, 11  ;;  %v4094_v4 = vor.u32 %v4093_v22, %v4090_v34  ;;  %v4144_v23 = vshrl.u32 %v4043_v16, 16 }
 0x1f3   : > { %5460 = vmatprep.subr.bf16.mxu1 %v5652_v5  ;;  %v4055_v39 = vshll.u32 %v4030_v24, 16  ;;  %v4147_v24 = vshll.u32 %v4043_v16, 16 }
 0x1f4   : > { %5487 = vmatpush3.bf16.msra.mxu0 %v5651_v9  ;;  %v3686_v9 = vsel %vm6469_vm13, %v4818_v63, %v3685_v53  ;;  %v3712_v26 = vsel %vm6469_vm13, %v4820_v32, %v3711_v48  ;;  %v4039_v63 = vld [vmem:[#allocation2 + $0x58] sm:$0xf]  ;;  %v4105_v53 = vshll.u32 %v4037_v7, 16 }
 0x1f5   : > { %5488 = vmatprep.subr.bf16.mxu0 %v5653_v41  ;;  %v4839_v37 = vcombine.low %v3673_v25, %v3686_v9  ;;  %v4057_v58 = vrot.slane %v4055_v39, 5  ;;  %v4116_v44 = vshrl.u32 %v4039_v63, 16  ;;  %v4099_v39 = vrot.slane %v4097_v36, 5 }
 0x1f6   : > { %5461 = vmatpush3.bf16.msra.mxu1 %v5652_v5  ;;  %v3695_v5 = vrot.slane %v3693_v13, 7  ;;  %v4034_v13 = vld [vmem:[#allocation2 + $0x38] sm:$0x1] }
 0x1f7   : > { %5462 = vmatprep.subr.bf16.mxu1 %v5654_v52  ;;  %v4083_v1 = vshll.u32 %v4034_v13, 16 }
 0x1f8   : > { %5489 = vmatpush3.bf16.msra.mxu0 %v5653_v41  ;;  %v4052_v41 = vor.u32 %v4051_v57, %v4048_v31  ;;  %v3698_v61 = vor.u32 %v3696_v62, %v3695_v5  ;;  %v4107_v31 = vrot.slane %v4105_v53, 5  ;;  %v4041_v57 = vld [vmem:[#allocation2 + $0x64] sm:$0xf]  ;;  %v4149_v62 = vrot.slane %v4147_v24, 5 }
 0x1f9   : > { %v4130_v5 = vshrl.u32 %v4041_v57, 16  ;;  %v4133_v20 = vshll.u32 %v4041_v57, 16 }
 0x1fa   : > { %5463 = vmatpush3.bf16.msra.mxu1 %v5654_v52  ;;  %v4067_v52 = vrot.slane %v4066_v46, 4  ;;  %v4053_v6 = vrot.slane %v4052_v41, 4  ;;  %v3699_v56 = vsel %vm6469_vm13, %v4819_v14, %v3698_v61  ;;  %v4125_v46 = vshll.u32 %v4040_v42, 16 }
 0x1fb   : > { %5491 = vmatmul.mubr.bf16.vlgmr.msra.gmra.mxu0 %v4866_v29  ;;  %5464 = vmatprep.subr.bf16.mxu1 %v5657_v2  ;;  %v4840_v33 = vcombine.low %v3699_v56, %v3712_v26  ;;  %v4119_v29 = vshll.u32 %v4039_v63, 16  ;;  %v4108_v25 = vor.u32 %v4107_v31, %v4104_v8  ;;  %v4095_v41 = vrot.slane %v4094_v4, 4 }
 0x1fc   : > { %5494 = vmatprep.mubr.bf16.mxu0 %v4867_v50  ;;  %v4072_v30 = vsel %vm5836_vm5, %v4067_v52, %v4071_v19  ;;  %v4118_v50 = vrot.slane %v4116_v44, 4  ;;  %v4127_v48 = vrot.slane %v4125_v46, 5  ;;  %v4085_v19 = vrot.slane %v4083_v1, 5 }
 0x1fd   : > { %v4121_v40 = vrot.slane %v4119_v29, 5  ;;  %v4132_v14 = vrot.slane %v4130_v5, 4  ;;  %v4135_v61 = vrot.slane %v4133_v20, 5  ;;  %v4100_v26 = vsel %vm5836_vm5, %v4095_v41, %v4099_v39 }
 0x1fe   : > { %5465 = vmatpush3.bf16.msra.mxu1 %v5657_v2  ;;  %v4058_v2 = vsel %vm5836_vm5, %v4053_v6, %v4057_v58  ;;  %v4042_v58 = vld [vmem:[#allocation2 + $0x68] sm:$0x1] }
 0x1ff   : > { %5498 = vmatprep.subr.bf16.mxu1 %v5658_v15  ;;  %v4893_v47 = vcombine.low %v4058_v2, %v4072_v30  ;;  %v4122_v9 = vor.u32 %v4121_v40, %v4118_v50 }
 0x201   : > { %5467 = vmatmul.mubr.bf16.vlgmr.msra.gmra.mxu1 %v4838_v10  ;;  %v5666_v10 = vld [vmem:[%s6955_s3 + $0x200] sm:$0xff]   ;;  %v4123_v32 = vrot.slane %v4122_v9, 4 }
 0x202   : > { %5470 = vmatprep.mubr.bf16.mxu1 %v4839_v37  ;;  %5499 = vmatpush3.bf16.msra.mxu1 %v5658_v15  ;;  %v4079_v15 = vrot.slane %v4077_v38, 5  ;;  %v4146_v37 = vrot.slane %v4144_v23, 4  ;;  %v5300_v38 = vpop.f32.mrf.mxu1 }
 0x203   : > { %5495 = vmatmul.mubr.bf16.gmra.mxu0 %v4868_v60  ;;  %5500 = vmatprep.subr.bf16.mxu1 %v5660_v49  ;;  %v4044_v60 = vld [vmem:[#allocation2 + $0x74] sm:$0x1] }
 0x204   : > { %v4080_v35 = vor.u32 %v4079_v15, %v4076_v3  ;;  %v4150_v30 = vor.u32 %v4149_v62, %v4146_v37  ;;  %v4153_v56 = vshll.u32 %v4044_v60, 16 }
 0x206   : > { %5501 = vmatpush3.bf16.msra.mxu1 %v5660_v49  ;;  %v4111_v49 = vshll.u32 %v4038_v18, 16  ;;  %v4081_v52 = vrot.slane %v4080_v35, 4  ;;  %v4151_v11 = vrot.slane %v4150_v30, 4  ;;  %v4155_v17 = vrot.slane %v4153_v56, 5 }
 0x207   : > { %5502 = vmatprep.subr.bf16.mxu1 %v5661_v12 }
 0x208   : > { %v4113_v6 = vrot.slane %v4111_v49, 5  ;;  %v4086_v2 = vsel %vm5836_vm5, %v4081_v52, %v4085_v19  ;;  %v4156_v44 = vsel %vm5836_vm5, %v4151_v11, %v4155_v17 }
 0x209   : > { %5471 = vmatmul.mubr.bf16.gmra.mxu1 %v4840_v33  ;;  %v4128_v33 = vsel %vm5836_vm5, %v4123_v32, %v4127_v48  ;;  %v4894_v54 = vcombine.low %v4086_v2, %v4100_v26 }
 0x20a   : > { %5503 = vmatpush3.bf16.msra.mxu1 %v5661_v12  ;;  %5514 = vmatprep.mubr.bf16.mxu1 %v4893_v47  ;;  %v4109_v12 = vrot.slane %v4108_v25, 4  ;;  %v4139_v47 = vshll.u32 %v4042_v58, 16 }
 0x20b   : > { %5504 = vmatprep.subr.bf16.mxu1 %v5662_v51 }
 0x20c   : > { %v4114_v63 = vsel %vm5836_vm5, %v4109_v12, %v4113_v6  ;;  %v4141_v7 = vrot.slane %v4139_v47, 5 }
 0x20e   : > { %5505 = vmatpush3.bf16.msra.mxu1 %v5662_v51  ;;  %v4136_v51 = vor.u32 %v4135_v61, %v4132_v14 }
 0x20f   : > { %5506 = vmatprep.subr.bf16.mxu1 %v5663_v28 }
 0x210   : > { %v4137_v21 = vrot.slane %v4136_v51, 4 }
 0x212   : > { %5507 = vmatpush3.bf16.msra.mxu1 %v5663_v28  ;;  %v4895_v28 = vcombine.low %v4114_v63, %v4128_v33  ;;  %v4142_v29 = vsel %vm5836_vm5, %v4137_v21, %v4141_v7 }
 0x213   : > { %5508 = vmatprep.subr.bf16.mxu1 %v5664_v0  ;;  %v4896_v27 = vcombine.low %v4142_v29, %v4156_v44 }
 0x216   : > { %5509 = vmatpush3.bf16.msra.mxu1 %v5664_v0  ;;  %v2123_v0 = vpop.f32.mrf.mxu1 }
 0x217   : > { %5510 = vmatprep.subr.bf16.mxu1 %v5665_v59 }
 0x218   : > { %v5301_v45 = vpop.f32.mrf.mxu1 }
 0x21a   : > { %5511 = vmatpush3.bf16.msra.mxu1 %v5665_v59  ;;  %v2126_v53 = vpop.f32.mrf.mxu1 }
 0x21b   : > { %5512 = vmatprep.subr.bf16.mxu1 %v5666_v10 }
 0x21c   : > { %v6837_v34 = vpop.f32.mrf.mxu1 }
 0x21e   : > { %5513 = vmatpush3.bf16.msra.mxu1 %v5666_v10  ;;  %v6839_v22 = vpop.f32.mrf.mxu1 }
 0x220   : > { %v6841_v43 = vpop.f32.mrf.mxu1 }
 0x221   : > { %5515 = vmatmul.mubr.bf16.vlgmr.msra.gmra.mxu1 %v4894_v54  ;;  %v4636_v54 = vld [vmem:[%s6956_s4] ss:$0 sm:$0xff] }
 0x222   : > { %5518 = vmatprep.mubr.bf16.mxu1 %v4895_v28  ;;  %v6843_v50 = vpop.f32.mrf.mxu1  ;;  %v2132_v11 = vadd.f32 %v5300_v38, %v4636_v54  ;;  %v2124_v7 = vadd.f32 %v4636_v54, %v2123_v0  ;;  %v2135_v44 = vadd.f32 %v5301_v45, %v4636_v54 }
 0x229   : > { %5519 = vmatmul.mubr.bf16.gmra.mxu1 %v4896_v27  ;;  %v2127_v27 = vadd.f32 %v4636_v54, %v2126_v53  ;;  %v2151_v53 = vadd.f32 %v6841_v43, %v4636_v54 }
 0x25a   : > { %v5348_v55 = vpop.f32.mrf.mxu0 }
 0x25c   : > { %v2552_v42 = vpop.f32.mrf.mxu0 }
 0x25e   : > { %v5349_v8 = vpop.f32.mrf.mxu0 }
 0x260   : > { %v6851_v57 = vpop.f32.mrf.mxu0 }
 0x261   : > { %v5324_v40 = vpop.f32.mrf.mxu1 }
 0x262   : > { %v2423_v29 = vadd.f32 %v5324_v40, %v2132_v11 }
 0x263   : > { %v2390_v16 = vpop.f32.mrf.mxu1 }
 0x265   : > { %v5325_v13 = vpop.f32.mrf.mxu1 }
 0x267   : > { %v2393_v3 = vpop.f32.mrf.mxu1 }
 0x26a   : > { %v6855_v36 = vpop.f32.mrf.mxu0 }
 0x26c   : > { %v6857_v23 = vpop.f32.mrf.mxu0 }
 0x26e   : > { %v6859_v9 = vpop.f32.mrf.mxu0 }
 0x270   : > { %v6861_v35 = vpop.f32.mrf.mxu0 }
 0x271   : > { %v6845_v15 = vpop.f32.mrf.mxu1 }
 0x273   : > { %v6847_v59 = vpop.f32.mrf.mxu1 }
 0x275   : > { %v6849_v31 = vpop.f32.mrf.mxu1 }
 0x277   : > { %v6853_v4 = vpop.f32.mrf.mxu1 }
 0x27b   : > { %v5396_v5 = vpop.f32.mrf.mxu0 }
 0x27d   : > { %v3109_v10 = vpop.f32.mrf.mxu0 }
 0x27f   : > { %v5397_v49 = vpop.f32.mrf.mxu0 }
 0x281   : > { %v5372_v18 = vpop.f32.mrf.mxu1  ;;  %v6869_v39 = vpop.f32.mrf.mxu0 }
 0x283   : > { %v2834_v24 = vpop.f32.mrf.mxu1  ;;  %v6873_v62 = vpop.f32.mrf.mxu0 }
 0x285   : > { %v5373_v46 = vpop.f32.mrf.mxu1  ;;  %v6875_v48 = vpop.f32.mrf.mxu0 }
 0x286   : > { %6967 = vst [vmem:[#allocation3_spill] sm:$0xff] %v6875_v48 }
 0x287   : > { %v2837_v1 = vpop.f32.mrf.mxu1  ;;  %v6877_v52 = vpop.f32.mrf.mxu0 }
 0x288   : > { %6968 = vst [vmem:[#allocation4_spill] sm:$0xff] %v6877_v52  ;;  %v2148_v52 = vadd.f32 %v6837_v34, %v4636_v54 }
 0x289   : > { %v6863_v20 = vpop.f32.mrf.mxu1  ;;  %v6879_v14 = vpop.f32.mrf.mxu0 }
 0x28a   : > { %6969 = vst [vmem:[#allocation5_spill] sm:$0xff] %v6879_v14  ;;  %v2427_v0 = vadd.f32 %v6845_v15, %v2148_v52 }
 0x28b   : > { %v6865_v25 = vpop.f32.mrf.mxu1 }
 0x28c   : > { %v2589_v15 = vadd.f32 %v6855_v36, %v2427_v0 }
 0x28d   : > { %v6867_v41 = vpop.f32.mrf.mxu1 }
 0x28f   : > { %v6871_v37 = vpop.f32.mrf.mxu1 }
 0x29b   : > { %v5444_v12 = vpop.f32.mrf.mxu0 }
 0x29d   : > { %v6883_v58 = vpop.f32.mrf.mxu0 }
 0x29f   : > { %v6887_v30 = vpop.f32.mrf.mxu0 }
 0x2a1   : > { %v5420_v32 = vpop.f32.mrf.mxu1  ;;  %v6891_v33 = vpop.f32.mrf.mxu0 }
 0x2a2   : > { %6973 = vst [vmem:[#allocation9_spill] sm:$0xff] %v6891_v33  ;;  %v2585_v33 = vadd.f32 %v5348_v55, %v2423_v29 }
 0x2a3   : > { %v3271_v60 = vpop.f32.mrf.mxu1  ;;  %v6895_v51 = vpop.f32.mrf.mxu0 }
 0x2a4   : > { %6975 = vst [vmem:[#allocation11_spill] sm:$0xff] %v6895_v51 }
 0x2a5   : > { %v5421_v19 = vpop.f32.mrf.mxu1  ;;  %v6900_v63 = vpop.f32.mrf.mxu0 }
 0x2a6   : > { %6976 = vst [vmem:[#allocation12_spill] sm:$0xff] %v6900_v63  ;;  %v2867_v63 = vadd.f32 %v5372_v18, %v2585_v33  ;;  %v2428_v18 = vadd.f32 %v6849_v31, %v2151_v53 }
 0x2a7   : > { %v3274_v61 = vpop.f32.mrf.mxu1  ;;  %v6902_v17 = vpop.f32.mrf.mxu0 }
 0x2a8   : > { %6977 = vst [vmem:[#allocation13_spill] sm:$0xff] %v6902_v17  ;;  %v2140_v17 = vadd.f32 %v4636_v54, %v6839_v22 }
 0x2a9   : > { %v6881_v6 = vpop.f32.mrf.mxu1  ;;  %v6904_v14 = vpop.f32.mrf.mxu0 }
 0x2aa   : > { %6970 = vst [vmem:[#allocation6_spill] sm:$0xff] %v6881_v6  ;;  %v2425_v55 = vadd.f32 %v6847_v59, %v2140_v17  ;;  %v2590_v59 = vadd.f32 %v6859_v9, %v2428_v18 }
 0x2ab   : > { %v6885_v26 = vpop.f32.mrf.mxu1  ;;  %v6986_v53 = vld [vmem:[#allocation11_spill] sm:$0xff] }
 0x2ac   : > { %6971 = vst [vmem:[#allocation7_spill] sm:$0xff] %v6885_v26  ;;  %v2422_v26 = vadd.f32 %v2393_v3, %v2127_v27  ;;  %v2143_v3 = vadd.f32 %v4636_v54, %v6843_v50  ;;  %v6980_v54 = vld [vmem:[#allocation4_spill] sm:$0xff] }
 0x2ad   : > { %v6889_v56 = vpop.f32.mrf.mxu1  ;;  %v6987_v18 = vld [vmem:[#allocation12_spill] sm:$0xff] }
 0x2ae   : > { %6972 = vst [vmem:[#allocation8_spill] sm:$0xff] %v6889_v56  ;;  %v2421_v56 = vadd.f32 %v2390_v16, %v2124_v7  ;;  %v2426_v22 = vadd.f32 %v6853_v4, %v2143_v3 }
 0x2af   : > { %v6893_v2 = vpop.f32.mrf.mxu1 }
 0x2b0   : > { %6974 = vst [vmem:[#allocation10_spill] sm:$0xff] %v6893_v2  ;;  %v2424_v2 = vadd.f32 %v5325_v13, %v2135_v44  ;;  %v2583_v6 = vadd.f32 %v2552_v42, %v2421_v56  ;;  %v2584_v13 = vadd.f32 %v6851_v57, %v2422_v26  ;;  %v2587_v57 = vadd.f32 %v6857_v23, %v2425_v55 }
 0x2b1   : > { %v2588_v4 = vadd.f32 %v6861_v35, %v2426_v22  ;;  %v6988_v22 = vld [vmem:[#allocation13_spill] sm:$0xff] }
 0x2b2   : > { %v2586_v38 = vadd.f32 %v5349_v8, %v2424_v2  ;;  %v2865_v40 = vadd.f32 %v2834_v24, %v2583_v6  ;;  %v2866_v42 = vadd.f32 %v2837_v1, %v2584_v13  ;;  %v3142_v8 = vadd.f32 %v5396_v5, %v2867_v63 }
 0x2b3   : > { %v2869_v1 = vadd.f32 %v6865_v25, %v2587_v57  ;;  %v2872_v5 = vadd.f32 %v6867_v41, %v2590_v59  ;;  %v6979_v25 = vld [vmem:[#allocation3_spill] sm:$0xff] }
 0x2b4   : > { %v2868_v16 = vadd.f32 %v5373_v46, %v2586_v38  ;;  %v3304_v56 = vadd.f32 %v5420_v32, %v3142_v8  ;;  %v3140_v43 = vadd.f32 %v3109_v10, %v2865_v40  ;;  %v2871_v46 = vadd.f32 %v6863_v20, %v2589_v15 }
 0x2b5   : > { %v3141_v31 = vadd.f32 %v6869_v39, %v2866_v42  ;;  %v2870_v20 = vadd.f32 %v6871_v37, %v2588_v4  ;;  %v6978_v39 = vld [vmem:[#allocation6_spill] sm:$0xff]  ;;  %v3144_v2 = vadd.f32 %v6979_v25, %v2869_v1  ;;  %v3147_v63 = vadd.f32 %v6980_v54, %v2872_v5  ;;  %v6982_v37 = vld [vmem:[#allocation7_spill] sm:$0xff] }
 0x2b6   : > { %v3143_v24 = vadd.f32 %v5397_v49, %v2868_v16  ;;  %v3302_v6 = vadd.f32 %v3271_v60, %v3140_v43  ;;  %v3586_v49 = vadd.f32 %v5444_v12, %v3304_v56  ;;  %v3146_v23 = vadd.f32 %v6873_v62, %v2871_v46  ;;  %v6981_v12 = vld [vmem:[#allocation9_spill] sm:$0xff] }
 0x2b7   : > { %v3303_v10 = vadd.f32 %v3274_v61, %v3141_v31  ;;  %v3306_v17 = vadd.f32 %v6982_v37, %v3144_v2  ;;  %v6983_v62 = vld [vmem:[#allocation5_spill] sm:$0xff]  ;;  %v6985_v38 = vld [vmem:[#allocation10_spill] sm:$0xff] }
 0x2b8   : > { %v3305_v26 = vadd.f32 %v5421_v19, %v3143_v24  ;;  %v3584_v9 = vadd.f32 %v6883_v58, %v3302_v6  ;;  %v3308_v19 = vadd.f32 %v6978_v39, %v3146_v23  ;;  %v3145_v7 = vadd.f32 %v6983_v62, %v2870_v20  ;;  %v6984_v58 = vld [vmem:[#allocation8_spill] sm:$0xff] }
 0x2b9   : > { %v3585_v11 = vadd.f32 %v6981_v12, %v3303_v10  ;;  %v3588_v42 = vadd.f32 %v6987_v18, %v3306_v17 }
 0x2ba   : > { %v3587_v60 = vadd.f32 %v6887_v30, %v3305_v26  ;;  %v3309_v30 = vadd.f32 %v6984_v58, %v3147_v63  ;;  %v3307_v0 = vadd.f32 %v6985_v38, %v3145_v7  ;;  %v3590_v40 = vadd.f32 %v6986_v53, %v3308_v19 }
 0x2bb   : > { %v5492_v48 = vpop.f32.mrf.mxu0 }
 0x2bc   : > { %v3591_v15 = vadd.f32 %v6988_v22, %v3309_v30  ;;  %v3589_v24 = vadd.f32 %v6904_v14, %v3307_v0 }
 0x2bd   : > { %v3990_v34 = vpop.f32.mrf.mxu0 }
 0x2bf   : > { %v5493_v50 = vpop.f32.mrf.mxu0 }
 0x2c1   : > { %v5468_v47 = vpop.f32.mrf.mxu1  ;;  %v3993_v32 = vpop.f32.mrf.mxu0 }
 0x2c2   : > { %v3861_v33 = vadd.f32 %v5468_v47, %v3586_v49 }
 0x2c3   : > { %v3828_v28 = vpop.f32.mrf.mxu1  ;;  %v5496_v47 = vpop.f32.mrf.mxu0 }
 0x2c4   : > { %v3859_v41 = vadd.f32 %v3828_v28, %v3584_v9  ;;  %v4023_v27 = vadd.f32 %v5492_v48, %v3861_v33 }
 0x2c5   : > { %v5469_v21 = vpop.f32.mrf.mxu1  ;;  %v4006_v3 = vpop.f32.mrf.mxu0 }
 0x2c6   : > { %v3862_v61 = vadd.f32 %v5469_v21, %v3587_v60  ;;  %v4021_v21 = vadd.f32 %v3990_v34, %v3859_v41 }
 0x2c7   : > { %v3831_v51 = vpop.f32.mrf.mxu1 }
 0x2c8   : > { %v3860_v29 = vadd.f32 %v3831_v51, %v3585_v11  ;;  %v4024_v13 = vadd.f32 %v5493_v50, %v3862_v61  ;;  %v5497_v50 = vpop.f32.mrf.mxu0 }
 0x2c9   : > { %v5472_v45 = vpop.f32.mrf.mxu1 }
 0x2ca   : > { %v3865_v55 = vadd.f32 %v5472_v45, %v3590_v40  ;;  %v4022_v51 = vadd.f32 %v3993_v32, %v3860_v29  ;;  %v4009_v20 = vpop.f32.mrf.mxu0 }
 0x2cb   : > { %v3844_v52 = vpop.f32.mrf.mxu1 }
 0x2cc   : > { %v3863_v48 = vadd.f32 %v3844_v52, %v3588_v42  ;;  %v4027_v45 = vadd.f32 %v5496_v47, %v3865_v55 }
 0x2cd   : > { %v5473_v36 = vpop.f32.mrf.mxu1 }
 0x2ce   : > { %v3866_v57 = vadd.f32 %v5473_v36, %v3591_v15  ;;  %v4025_v49 = vadd.f32 %v4006_v3, %v3863_v48 }
 0x2cf   : > { %v3847_v35 = vpop.f32.mrf.mxu1 }
 0x2d0   : > { %v3864_v31 = vadd.f32 %v3847_v35, %v3589_v24  ;;  %v4028_v36 = vadd.f32 %v5497_v50, %v3866_v57 }
 0x2d2   : > { %v4026_v9 = vadd.f32 %v4009_v20, %v3864_v31 }
 0x2e1   : > { %v5516_v44 = vpop.f32.mrf.mxu1 }
 0x2e2   : > { %v4305_v28 = vadd.f32 %v5516_v44, %v4023_v27 }
 0x2e3   : > { %v4272_v16 = vpop.f32.mrf.mxu1 }
 0x2e4   : > { %v4303_v56 = vadd.f32 %v4272_v16, %v4021_v21  ;;  %v4313_v59 = vmax.f32 %v4305_v28, 0.0 }
 0x2e5   : > { %v5517_v8 = vpop.f32.mrf.mxu1 }
 0x2e6   : > { %v4306_v43 = vadd.f32 %v5517_v8, %v4024_v13  ;;  %v4311_v1 = vmax.f32 %v4303_v56, 0.0 }
 0x2e7   : > { %v4275_v46 = vpop.f32.mrf.mxu1 }
 0x2e8   : > { %v4314_v6 = vmax.f32 %v4306_v43, 0.0  ;;  %v4304_v34 = vadd.f32 %v4275_v46, %v4022_v51 }
 0x2e9   : > { %v5520_v26 = vpop.f32.mrf.mxu1 }
 0x2ea   : > { %v4916_v4 = vpack.c.bf16 %v4314_v6, %v4313_v59  ;;  %v4312_v5 = vmax.f32 %v4304_v34, 0.0  ;;  %v4309_v14 = vadd.f32 %v5520_v26, %v4027_v45 }
 0x2eb   : > { %v4288_v10 = vpop.f32.mrf.mxu1 }
 0x2ec   : > { %4928 = vst [vmem:[%s273_s16 + $0x8] sm:$0xff] %v4916_v4   ;;  %v4911_v52 = vpack.c.bf16 %v4312_v5, %v4311_v1  ;;  %v4307_v32 = vadd.f32 %v4288_v10, %v4025_v49  ;;  %v4317_v39 = vmax.f32 %v4309_v14, 0.0 }
 0x2ed   : > { %v5521_v23 = vpop.f32.mrf.mxu1 }
 0x2ee   : > { %4912 = vst [vmem:[%s273_s16] sm:$0xff] %v4911_v52   ;;  %v4310_v33 = vadd.f32 %v5521_v23, %v4028_v36  ;;  %v4315_v2 = vmax.f32 %v4307_v32, 0.0 }
 0x2ef   : > { %v4291_v60 = vpop.f32.mrf.mxu1 }
 0x2f0   : > { %v4318_v19 = vmax.f32 %v4310_v33, 0.0  ;;  %v4308_v25 = vadd.f32 %v4291_v60, %v4026_v9 }
 0x2f2   : > { %v4926_v35 = vpack.c.bf16 %v4318_v19, %v4317_v39  ;;  %v4316_v54 = vmax.f32 %v4308_v25, 0.0 }
 0x2f4   : > { %4930 = vst [vmem:[%s273_s16 + $0x18] sm:$0xff] %v4926_v35   ;;  %v4921_v63 = vpack.c.bf16 %v4316_v54, %v4315_v2 }
 0x2f6   : > { %4929 = vst [vmem:[%s273_s16 + $0x10] sm:$0xff] %v4921_v63  }
 0x2f7 PF: > { %s16_s23 = sadd.s32 1, %s5689_s23   ;;  %s6989_s21 = smov %s5685_s22 }
 0x2f8   : > { %p13_p5 = scmp.ge.s32.totalorder %s16_s23, 4   ;;  %s6990_s22 = smov %s6992_s24 }
 0x2fa   :  { %15 = sbr.rel (!%p13_p5) target bundleno = 2 (0x2), region = 103 }

</bundles_post_ra>
